<compile_context>
chip_gen: v7x
topology: tpu7x:2x2x1
jax: 0.10.0
libtpu: 0.0.40
codegen_flags: <defaults>
</compile_context>

<pallas_src>
import functools

import numpy as np
import jax
import jax.numpy as jnp
from jax.experimental import pallas as pl
from jax.experimental.pallas import tpu as pltpu


# ----------------------------- in-kernel helpers ---------------------------

def _conv_bn_relu(xin, wm, bias, mask, h, w, K, pad_ref, patch_ref):
    """KxK 'same' conv + folded BN + ReLU on a (Cin, h*w) lane-dense tile.

    xin   : (Cin, h*w)       activation, spatial flattened on lanes
    wm    : (Cout, K*K*Cin)  conv weight, BN scale folded, col order (ky*K+kx)*Cin+ci
    bias  : (Cout, 1)        folded BN bias
    mask  : (K*K*Cin, h*w)   0/1 mask implementing the horizontal zero padding
    pad_ref, patch_ref : VMEM scratch (reused across stages)
    """
    Cin, S = xin.shape
    p = (K - 1) // 2
    M = p * w + p                                  # max |flattened tap offset|

    # zero-padded flattened row buffer:  [0]*M ++ x ++ [0]*M  (vertical padding)
    pad_ref[...] = jnp.zeros(pad_ref.shape, jnp.float32)
    pad_ref[:, M:M + S] = xin

    # im2col: K*K lane-shifted taps stacked along sublanes into VMEM scratch.
    t = 0
    for ky in range(K):
        for kx in range(K):
            off = M + (ky - p) * w + (kx - p)
            patch_ref[t * Cin:(t + 1) * Cin, 0:S] = pad_ref[:, off:off + S]
            t += 1
    patch = patch_ref[0:K * K * Cin, 0:S] * mask   # (K*K*Cin, S)

    # one deep MXU contraction for the whole conv
    y = jnp.dot(wm, patch, preferred_element_type=jnp.float32) + bias
    return jnp.maximum(y, 0.0)                     # (Cout, S)


def _maxpool2(xin, sel, h, w, pad_ref):
    """2x2 / stride-2 max pool of a (C, h*w) tile: shifted max + select matmul."""
    C, S = xin.shape
    pad_ref[...] = jnp.zeros(pad_ref.shape, jnp.float32)
    pad_ref[:, 0:S] = xin
    m = jnp.maximum(
        jnp.maximum(pad_ref[:, 0:S], pad_ref[:, 1:S + 1]),
        jnp.maximum(pad_ref[:, w:w + S], pad_ref[:, w + 1:w + 1 + S]))
    # m[:, s] = max of the 2x2 window whose top-left corner is s;
    # sel (h*w, h*w/4) picks the stride-2 grid of top-left corners.
    return jnp.dot(m, sel, preferred_element_type=jnp.float32)


def _upsample(xin, k1, k2):
    """Separable-split bilinear upsample: X @ kron(Ah^T, I_wi) @ kron(I_ho, Aw^T)."""
    y = jnp.dot(xin, k1, preferred_element_type=jnp.float32)
    return jnp.dot(y, k2, preferred_element_type=jnp.float32)


# ----------------------------- fused kernel --------------------------------

def fpa_kernel(H, W, x_ref,
               w7, b7, w5, b5, w3, b3,
               w72, b72, w52, b52, w32, b32,
               mk7, mk5, mk3,
               sel1, sel2, sel3,
               k1q, k2q, k1h, k2h, k1f, k2f,
               o_ref, pad_s, patch_s):
    h2, w2 = H // 2, W // 2
    h4, w4 = H // 4, W // 4
    h8, w8 = H // 8, W // 8

    x = x_ref[...]                                              # (C, H*W)

    # encoder: MaxPool(2,2) -> ConvBNReLU
    p1 = _maxpool2(x, sel1[...], H, W, pad_s)                   # (C, H*W/4)
    d1 = _conv_bn_relu(p1, w7[...], b7[...], mk7[...], h2, w2, 7,
                       pad_s, patch_s)
    p2 = _maxpool2(d1, sel2[...], h2, w2, pad_s)
    d2 = _conv_bn_relu(p2, w5[...], b5[...], mk5[...], h4, w4, 5,
                       pad_s, patch_s)
    p3 = _maxpool2(d2, sel3[...], h4, w4, pad_s)
    d3 = _conv_bn_relu(p3, w3[...], b3[...], mk3[...], h8, w8, 3,
                       pad_s, patch_s)

    # lateral convs
    d1_1 = _conv_bn_relu(d1, w72[...], b72[...], mk7[...], h2, w2, 7,
                         pad_s, patch_s)
    d2_1 = _conv_bn_relu(d2, w52[...], b52[...], mk5[...], h4, w4, 5,
                         pad_s, patch_s)
    d3_1 = _conv_bn_relu(d3, w32[...], b32[...], mk3[...], h8, w8, 3,
                         pad_s, patch_s)

    # decoder: bilinear upsample (align_corners=True) + residual add
    d2_1 = d2_1 + _upsample(d3_1, k1q[...], k2q[...])           # (C, H*W/16)
    d1_1 = d1_1 + _upsample(d2_1, k1h[...], k2h[...])           # (C, H*W/4)
    up = _upsample(d1_1, k1f[...], k2f[...])                    # (C, H*W)

    u = jnp.mean(x, axis=1, keepdims=True)                      # AdaptiveAvgPool2d(1)
    o_ref[...] = (x * up + u).astype(o_ref.dtype)               # lane-dense store


# ----------------------------- Pallas wrapper ------------------------------

def feature_pyramid_attention(x_nchw, params, consts):
    N, C, H, W = x_nchw.shape
    S = H * W
    x_flat = x_nchw.reshape(N, C, S)        # free reshape: spatial on lanes

    ops = [
        params["conv7"]["wm"], params["conv7"]["bias"],
        params["conv5"]["wm"], params["conv5"]["bias"],
        params["conv3"]["wm"], params["conv3"]["bias"],
        params["conv7_2"]["wm"], params["conv7_2"]["bias"],
        params["conv5_2"]["wm"], params["conv5_2"]["bias"],
        params["conv3_2"]["wm"], params["conv3_2"]["bias"],
        consts["mask7"], consts["mask5"], consts["mask3"],
        consts["sel1"], consts["sel2"], consts["sel3"],
        consts["k1_q"], consts["k2_q"],
        consts["k1_h"], consts["k2_h"],
        consts["k1_f"], consts["k2_f"],
    ]
    const_specs = [pl.BlockSpec(a.shape, lambda n: (0, 0)) for a in ops]

    pad_lanes = ((S + W + 1 + 127) // 128) * 128    # covers pool & conv padding
    patch_rows = 7 * 7 * C                          # largest im2col height
    patch_cols = (H // 2) * (W // 2)                # largest conv spatial size

    out_flat = pl.pallas_call(
        functools.partial(fpa_kernel, H, W),
        out_shape=jax.ShapeDtypeStruct((N, C, S), x_nchw.dtype),
        grid=(N,),
        in_specs=[pl.BlockSpec((None, C, S), lambda n: (n, 0, 0))] + const_specs,
        out_specs=pl.BlockSpec((None, C, S), lambda n: (n, 0, 0)),
        scratch_shapes=[
            pltpu.VMEM((C, pad_lanes), jnp.float32),
            pltpu.VMEM((patch_rows, patch_cols), jnp.float32),
        ],
        compiler_params=pltpu.CompilerParams(
            dimension_semantics=("parallel",)),
    )(x_flat, *ops)
    return out_flat.reshape(N, C, H, W)


# ----------------------------- constants / params --------------------------

def interp_matrix(out_size, in_size):
    """PyTorch bilinear, align_corners=True (1-D)."""
    A = np.zeros((out_size, in_size), np.float32)
    if in_size == 1:
        A[:, 0] = 1.0
        return A
    for o in range(out_size):
        src = 0.0 if out_size == 1 else o * (in_size - 1) / (out_size - 1)
        i0 = min(int(np.floor(src)), in_size - 1)
        i1 = min(i0 + 1, in_size - 1)
        f = src - i0
        A[o, i0] += 1.0 - f
        A[o, i1] += f
    return A


def upsample_factors(hi, wi, ho, wo):
    """Separable-split bilinear operator: X(C,hi*wi) @ k1 @ k2 = upsampled."""
    A_h = interp_matrix(ho, hi)                           # (ho, hi)
    A_w = interp_matrix(wo, wi)                           # (wo, wi)
    k1 = np.kron(A_h.T, np.eye(wi, dtype=np.float32))     # (hi*wi, ho*wi)
    k2 = np.kron(np.eye(ho, dtype=np.float32), A_w.T)     # (ho*wi, ho*wo)
    return jnp.asarray(k1), jnp.asarray(k2)


def pool_select_matrix(h, w):
    """(h*w, h*w/4) 0/1 matrix picking the stride-2 grid of top-left corners."""
    h2, w2 = h // 2, w // 2
    sel = np.zeros((h * w, h2 * w2), np.float32)
    for j in range(h2):
        for i in range(w2):
            sel[(2 * j) * w + 2 * i, j * w2 + i] = 1.0
    return jnp.asarray(sel)


def conv_pad_mask(K, C, h, w):
    """(K*K*C, h*w) 0/1 mask implementing the horizontal zero padding."""
    p = (K - 1) // 2
    xs = np.arange(h * w) % w
    m = np.zeros((K * K * C, h * w), np.float32)
    for ky in range(K):
        for kx in range(K):
            ok = ((xs + kx - p) >= 0) & ((xs + kx - p) < w)
            t = ky * K + kx
            m[t * C:(t + 1) * C, :] = ok[None, :].astype(np.float32)
    return jnp.asarray(m)


def make_convbnrelu_params(key, cin, cout, K):
    """Conv2d + BatchNorm2d(eval) + ReLU parameters, with GEMM-folded forms."""
    kw, kb, kg, kbe = jax.random.split(key, 4)
    w = 0.1 * jax.random.normal(kw, (cout, cin, K, K), jnp.float32)   # OIHW
    b = 0.1 * jax.random.normal(kb, (cout,), jnp.float32)
    gamma = 1.0 + 0.1 * jax.random.normal(kg, (cout,), jnp.float32)
    beta = 0.1 * jax.random.normal(kbe, (cout,), jnp.float32)
    mean = jnp.zeros((cout,), jnp.float32)
    var = jnp.ones((cout,), jnp.float32)
    eps = 1e-5
    s = gamma / jnp.sqrt(var + eps)
    t = beta + (b - mean) * s
    # lane-dense GEMM weight (Cout, K*K*Cin); column order (ky*K+kx)*Cin + ci,
    # BN scale folded into the rows.
    wm = jnp.transpose(w, (0, 2, 3, 1)).reshape(cout, K * K * cin) * s[:, None]
    return {"w": w, "s": s, "t": t, "wm": wm, "bias": t.reshape(cout, 1)}


# ----------------------------- pure-JAX reference --------------------------

def reference_forward(x_nchw, params):
    x = jnp.transpose(x_nchw, (0, 2, 3, 1))   # NHWC

    def conv_ref(inp, p, K, pad):
        w = jnp.transpose(p["w"], (2, 3, 1, 0))   # OIHW -> HWIO
        y = jax.lax.conv_general_dilated(
            inp, w, (1, 1), [(pad, pad), (pad, pad)],
            dimension_numbers=("NHWC", "HWIO", "NHWC"))
        return jnp.maximum(y * p["s"] + p["t"], 0.0)

    def pool_ref(inp):
        return jax.lax.reduce_window(inp, -jnp.inf, jax.lax.max,
                                     (1, 2, 2, 1), (1, 2, 2, 1), "VALID")

    def up_ref(inp, ho, wo):
        N_, hi, wi, C_ = inp.shape
        M = jnp.asarray(np.kron(interp_matrix(ho, hi), interp_matrix(wo, wi)))
        return jnp.einsum("oi,nic->noc", M,
                          inp.reshape(N_, hi * wi, C_)).reshape(N_, ho, wo, C_)

    H, W = x.shape[1], x.shape[2]
    d1 = conv_ref(pool_ref(x), params["conv7"], 7, 3)
    d2 = conv_ref(pool_ref(d1), params["conv5"], 5, 2)
    d3 = conv_ref(pool_ref(d2), params["conv3"], 3, 1)
    d1_1 = conv_ref(d1, params["conv7_2"], 7, 3)
    d2_1 = conv_ref(d2, params["conv5_2"], 5, 2)
    d3_1 = conv_ref(d3, params["conv3_2"], 3, 1)
    d2_1 = d2_1 + up_ref(d3_1, H // 4, W // 4)
    d1_1 = d1_1 + up_ref(d2_1, H // 2, W // 2)
    up = up_ref(d1_1, H, W)
    u = jnp.mean(x, axis=(1, 2), keepdims=True)
    out = x * up + u
    return jnp.transpose(out, (0, 3, 1, 2))


# ----------------------------- main -----------------------------

if __name__ == "__main__":
    N, C, H, W = 2, 4, 16, 16   # module requires in_channels == out_channels
    key = jax.random.PRNGKey(0)
    kx, k7, k5, k3, k72, k52, k32 = jax.random.split(key, 7)
    x_nchw = jax.random.normal(kx, (N, C, H, W), jnp.float32)

    params = {
        "conv7":   make_convbnrelu_params(k7, C, C, 7),
        "conv5":   make_convbnrelu_params(k5, C, C, 5),
        "conv3":   make_convbnrelu_params(k3, C, C, 3),
        "conv7_2": make_convbnrelu_params(k72, C, C, 7),
        "conv5_2": make_convbnrelu_params(k52, C, C, 5),
        "conv3_2": make_convbnrelu_params(k32, C, C, 3),
    }

    k1_q, k2_q = upsample_factors(H // 8, W // 8, H // 4, W // 4)
    k1_h, k2_h = upsample_factors(H // 4, W // 4, H // 2, W // 2)
    k1_f, k2_f = upsample_factors(H // 2, W // 2, H, W)
    consts = {
        "mask7": conv_pad_mask(7, C, H // 2, W // 2),
        "mask5": conv_pad_mask(5, C, H // 4, W // 4),
        "mask3": conv_pad_mask(3, C, H // 8, W // 8),
        "sel1": pool_select_matrix(H, W),
        "sel2": pool_select_matrix(H // 2, W // 2),
        "sel3": pool_select_matrix(H // 4, W // 4),
        "k1_q": k1_q, "k2_q": k2_q,
        "k1_h": k1_h, "k2_h": k2_h,
        "k1_f": k1_f, "k2_f": k2_f,
    }

    # TODO(synk): BatchNorm is evaluated in inference mode (folded affine);
    # training-mode batch statistics are not reproduced.
    out = feature_pyramid_attention(x_nchw, params, consts)
    out = jax.block_until_ready(out)
    assert out.shape == (N, C, H, W)

    ref = jax.block_until_ready(reference_forward(x_nchw, params))
    np.testing.assert_allclose(np.asarray(out), np.asarray(ref),
                               rtol=5e-2, atol=5e-2)
    print("KERNEL_OK")
</pallas_src>

<mosaic_0001>
module attributes {stable_mosaic.version = 11 : i64} {
  func.func @fpa_kernel(%arg0: i32, %arg1: memref<1x4x256xf32, #tpu.memory_space<vmem>>, %arg2: memref<4x196xf32, #tpu.memory_space<vmem>>, %arg3: memref<4x1xf32, #tpu.memory_space<vmem>>, %arg4: memref<4x100xf32, #tpu.memory_space<vmem>>, %arg5: memref<4x1xf32, #tpu.memory_space<vmem>>, %arg6: memref<4x36xf32, #tpu.memory_space<vmem>>, %arg7: memref<4x1xf32, #tpu.memory_space<vmem>>, %arg8: memref<4x196xf32, #tpu.memory_space<vmem>>, %arg9: memref<4x1xf32, #tpu.memory_space<vmem>>, %arg10: memref<4x100xf32, #tpu.memory_space<vmem>>, %arg11: memref<4x1xf32, #tpu.memory_space<vmem>>, %arg12: memref<4x36xf32, #tpu.memory_space<vmem>>, %arg13: memref<4x1xf32, #tpu.memory_space<vmem>>, %arg14: memref<196x64xf32, #tpu.memory_space<vmem>>, %arg15: memref<100x16xf32, #tpu.memory_space<vmem>>, %arg16: memref<36x4xf32, #tpu.memory_space<vmem>>, %arg17: memref<256x64xf32, #tpu.memory_space<vmem>>, %arg18: memref<64x16xf32, #tpu.memory_space<vmem>>, %arg19: memref<16x4xf32, #tpu.memory_space<vmem>>, %arg20: memref<4x8xf32, #tpu.memory_space<vmem>>, %arg21: memref<8x16xf32, #tpu.memory_space<vmem>>, %arg22: memref<16x32xf32, #tpu.memory_space<vmem>>, %arg23: memref<32x64xf32, #tpu.memory_space<vmem>>, %arg24: memref<64x128xf32, #tpu.memory_space<vmem>>, %arg25: memref<128x256xf32, #tpu.memory_space<vmem>>, %arg26: memref<1x4x256xf32, #tpu.memory_space<vmem>>, %arg27: memref<4x384xf32, #tpu.memory_space<vmem>>, %arg28: memref<196x64xf32, #tpu.memory_space<vmem>>) attributes {dimension_semantics = [#tpu.dimension_semantics<parallel>], iteration_bounds = array<i64: 2>, scalar_prefetch = 0 : i64, scratch_operands = 2 : i64, tpu.core_type = #tpu.core_type<tc>, window_params = [{transform_indices = @transform_0, window_bounds = array<i64: 1, 4, 256>}, {pipeline_mode = #tpu.pipeline_mode<synchronous>, transform_indices = @transform_1, window_bounds = array<i64: 4, 196>}, {pipeline_mode = #tpu.pipeline_mode<synchronous>, transform_indices = @transform_2, window_bounds = array<i64: 4, 1>}, {pipeline_mode = #tpu.pipeline_mode<synchronous>, transform_indices = @transform_3, window_bounds = array<i64: 4, 100>}, {pipeline_mode = #tpu.pipeline_mode<synchronous>, transform_indices = @transform_4, window_bounds = array<i64: 4, 1>}, {pipeline_mode = #tpu.pipeline_mode<synchronous>, transform_indices = @transform_5, window_bounds = array<i64: 4, 36>}, {pipeline_mode = #tpu.pipeline_mode<synchronous>, transform_indices = @transform_6, window_bounds = array<i64: 4, 1>}, {pipeline_mode = #tpu.pipeline_mode<synchronous>, transform_indices = @transform_7, window_bounds = array<i64: 4, 196>}, {pipeline_mode = #tpu.pipeline_mode<synchronous>, transform_indices = @transform_8, window_bounds = array<i64: 4, 1>}, {pipeline_mode = #tpu.pipeline_mode<synchronous>, transform_indices = @transform_9, window_bounds = array<i64: 4, 100>}, {pipeline_mode = #tpu.pipeline_mode<synchronous>, transform_indices = @transform_10, window_bounds = array<i64: 4, 1>}, {pipeline_mode = #tpu.pipeline_mode<synchronous>, transform_indices = @transform_11, window_bounds = array<i64: 4, 36>}, {pipeline_mode = #tpu.pipeline_mode<synchronous>, transform_indices = @transform_12, window_bounds = array<i64: 4, 1>}, {pipeline_mode = #tpu.pipeline_mode<synchronous>, transform_indices = @transform_13, window_bounds = array<i64: 196, 64>}, {pipeline_mode = #tpu.pipeline_mode<synchronous>, transform_indices = @transform_14, window_bounds = array<i64: 100, 16>}, {pipeline_mode = #tpu.pipeline_mode<synchronous>, transform_indices = @transform_15, window_bounds = array<i64: 36, 4>}, {pipeline_mode = #tpu.pipeline_mode<synchronous>, transform_indices = @transform_16, window_bounds = array<i64: 256, 64>}, {pipeline_mode = #tpu.pipeline_mode<synchronous>, transform_indices = @transform_17, window_bounds = array<i64: 64, 16>}, {pipeline_mode = #tpu.pipeline_mode<synchronous>, transform_indices = @transform_18, window_bounds = array<i64: 16, 4>}, {pipeline_mode = #tpu.pipeline_mode<synchronous>, transform_indices = @transform_19, window_bounds = array<i64: 4, 8>}, {pipeline_mode = #tpu.pipeline_mode<synchronous>, transform_indices = @transform_20, window_bounds = array<i64: 8, 16>}, {pipeline_mode = #tpu.pipeline_mode<synchronous>, transform_indices = @transform_21, window_bounds = array<i64: 16, 32>}, {pipeline_mode = #tpu.pipeline_mode<synchronous>, transform_indices = @transform_22, window_bounds = array<i64: 32, 64>}, {pipeline_mode = #tpu.pipeline_mode<synchronous>, transform_indices = @transform_23, window_bounds = array<i64: 64, 128>}, {pipeline_mode = #tpu.pipeline_mode<synchronous>, transform_indices = @transform_24, window_bounds = array<i64: 128, 256>}, {transform_indices = @transform_25, window_bounds = array<i64: 1, 4, 256>}]} {
    %c0 = arith.constant 0 : index
    %c0_0 = arith.constant 0 : index
    %c0_1 = arith.constant 0 : index
    %0 = vector.load %arg1[%c0, %c0_0, %c0_1] : memref<1x4x256xf32, #tpu.memory_space<vmem>>, vector<1x4x256xf32>
    %1 = vector.shape_cast %0 : vector<1x4x256xf32> to vector<4x256xf32>
    %c0_2 = arith.constant 0 : index
    %c0_3 = arith.constant 0 : index
    %2 = vector.load %arg17[%c0_2, %c0_3] : memref<256x64xf32, #tpu.memory_space<vmem>>, vector<256x64xf32>
    %cst = arith.constant 0.000000e+00 : f32
    %3 = vector.broadcast %cst : f32 to vector<4x384xf32>
    %c0_4 = arith.constant 0 : index
    %c0_5 = arith.constant 0 : index
    %4 = vector.load %arg27[%c0_4, %c0_5] : memref<4x384xf32, #tpu.memory_space<vmem>>, vector<4x384xf32>
    tpu.vector_store %arg27[%c0_4, %c0_5], %3 {strides = array<i32>} : memref<4x384xf32, #tpu.memory_space<vmem>>, vector<4x384xf32>,
    %c0_6 = arith.constant 0 : index
    %c0_7 = arith.constant 0 : index
    %5 = vector.load %arg27[%c0_6, %c0_7] : memref<4x384xf32, #tpu.memory_space<vmem>>, vector<4x256xf32>
    tpu.vector_store %arg27[%c0_6, %c0_7], %1 {strides = array<i32>} : memref<4x384xf32, #tpu.memory_space<vmem>>, vector<4x256xf32>,
    %c0_8 = arith.constant 0 : index
    %c0_9 = arith.constant 0 : index
    %6 = vector.load %arg27[%c0_8, %c0_9] : memref<4x384xf32, #tpu.memory_space<vmem>>, vector<4x256xf32>
    %c0_10 = arith.constant 0 : index
    %c1 = arith.constant 1 : index
    %7 = vector.load %arg27[%c0_10, %c1] : memref<4x384xf32, #tpu.memory_space<vmem>>, vector<4x256xf32>
    %8 = arith.maximumf %6, %7 : vector<4x256xf32>
    %c0_11 = arith.constant 0 : index
    %c16 = arith.constant 16 : index
    %9 = vector.load %arg27[%c0_11, %c16] : memref<4x384xf32, #tpu.memory_space<vmem>>, vector<4x256xf32>
    %c0_12 = arith.constant 0 : index
    %c17 = arith.constant 17 : index
    %10 = vector.load %arg27[%c0_12, %c17] : memref<4x384xf32, #tpu.memory_space<vmem>>, vector<4x256xf32>
    %11 = arith.maximumf %9, %10 : vector<4x256xf32>
    %12 = arith.maximumf %8, %11 : vector<4x256xf32>
    %cst_13 = arith.constant dense<0.000000e+00> : vector<4x64xf32>
    %13 = tpu.matmul %12, %2, %cst_13 {dimension_numbers = #tpu.dot_dimension_numbers<[1], [0], [0], [1], [0, 0, 1, 1], [], []>} : vector<4x256xf32>, vector<256x64xf32>, vector<4x64xf32> -> vector<4x64xf32>
    %c0_14 = arith.constant 0 : index
    %c0_15 = arith.constant 0 : index
    %14 = vector.load %arg2[%c0_14, %c0_15] : memref<4x196xf32, #tpu.memory_space<vmem>>, vector<4x196xf32>
    %c0_16 = arith.constant 0 : index
    %c0_17 = arith.constant 0 : index
    %15 = vector.load %arg3[%c0_16, %c0_17] : memref<4x1xf32, #tpu.memory_space<vmem>>, vector<4x1xf32>
    %c0_18 = arith.constant 0 : index
    %c0_19 = arith.constant 0 : index
    %16 = vector.load %arg14[%c0_18, %c0_19] : memref<196x64xf32, #tpu.memory_space<vmem>>, vector<196x64xf32>
    %cst_20 = arith.constant 0.000000e+00 : f32
    %17 = vector.broadcast %cst_20 : f32 to vector<4x384xf32>
    %c0_21 = arith.constant 0 : index
    %c0_22 = arith.constant 0 : index
    %18 = vector.load %arg27[%c0_21, %c0_22] : memref<4x384xf32, #tpu.memory_space<vmem>>, vector<4x384xf32>
    tpu.vector_store %arg27[%c0_21, %c0_22], %17 {strides = array<i32>} : memref<4x384xf32, #tpu.memory_space<vmem>>, vector<4x384xf32>,
    %c0_23 = arith.constant 0 : index
    %c27 = arith.constant 27 : index
    %19 = vector.load %arg27[%c0_23, %c27] : memref<4x384xf32, #tpu.memory_space<vmem>>, vector<4x64xf32>
    tpu.vector_store %arg27[%c0_23, %c27], %13 {strides = array<i32>} : memref<4x384xf32, #tpu.memory_space<vmem>>, vector<4x64xf32>,
    %c0_24 = arith.constant 0 : index
    %c0_25 = arith.constant 0 : index
    %20 = vector.load %arg27[%c0_24, %c0_25] : memref<4x384xf32, #tpu.memory_space<vmem>>, vector<4x64xf32>
    %c0_26 = arith.constant 0 : index
    %c0_27 = arith.constant 0 : index
    %21 = vector.load %arg28[%c0_26, %c0_27] : memref<196x64xf32, #tpu.memory_space<vmem>>, vector<4x64xf32>
    tpu.vector_store %arg28[%c0_26, %c0_27], %20 {strides = array<i32>} : memref<196x64xf32, #tpu.memory_space<vmem>>, vector<4x64xf32>,
    %c0_28 = arith.constant 0 : index
    %c1_29 = arith.constant 1 : index
    %22 = vector.load %arg27[%c0_28, %c1_29] : memref<4x384xf32, #tpu.memory_space<vmem>>, vector<4x64xf32>
    %c4 = arith.constant 4 : index
    %c0_30 = arith.constant 0 : index
    %23 = vector.load %arg28[%c4, %c0_30] : memref<196x64xf32, #tpu.memory_space<vmem>>, vector<4x64xf32>
    tpu.vector_store %arg28[%c4, %c0_30], %22 {strides = array<i32>} : memref<196x64xf32, #tpu.memory_space<vmem>>, vector<4x64xf32>,
    %c0_31 = arith.constant 0 : index
    %c2 = arith.constant 2 : index
    %24 = vector.load %arg27[%c0_31, %c2] : memref<4x384xf32, #tpu.memory_space<vmem>>, vector<4x64xf32>
    %c8 = arith.constant 8 : index
    %c0_32 = arith.constant 0 : index
    %25 = vector.load %arg28[%c8, %c0_32] : memref<196x64xf32, #tpu.memory_space<vmem>>, vector<4x64xf32>
    tpu.vector_store %arg28[%c8, %c0_32], %24 {strides = array<i32>} : memref<196x64xf32, #tpu.memory_space<vmem>>, vector<4x64xf32>,
    %c0_33 = arith.constant 0 : index
    %c3 = arith.constant 3 : index
    %26 = vector.load %arg27[%c0_33, %c3] : memref<4x384xf32, #tpu.memory_space<vmem>>, vector<4x64xf32>
    %c12 = arith.constant 12 : index
    %c0_34 = arith.constant 0 : index
    %27 = vector.load %arg28[%c12, %c0_34] : memref<196x64xf32, #tpu.memory_space<vmem>>, vector<4x64xf32>
    tpu.vector_store %arg28[%c12, %c0_34], %26 {strides = array<i32>} : memref<196x64xf32, #tpu.memory_space<vmem>>, vector<4x64xf32>,
    %c0_35 = arith.constant 0 : index
    %c4_36 = arith.constant 4 : index
    %28 = vector.load %arg27[%c0_35, %c4_36] : memref<4x384xf32, #tpu.memory_space<vmem>>, vector<4x64xf32>
    %c16_37 = arith.constant 16 : index
    %c0_38 = arith.constant 0 : index
    %29 = vector.load %arg28[%c16_37, %c0_38] : memref<196x64xf32, #tpu.memory_space<vmem>>, vector<4x64xf32>
    tpu.vector_store %arg28[%c16_37, %c0_38], %28 {strides = array<i32>} : memref<196x64xf32, #tpu.memory_space<vmem>>, vector<4x64xf32>,
    %c0_39 = arith.constant 0 : index
    %c5 = arith.constant 5 : index
    %30 = vector.load %arg27[%c0_39, %c5] : memref<4x384xf32, #tpu.memory_space<vmem>>, vector<4x64xf32>
    %c20 = arith.constant 20 : index
    %c0_40 = arith.constant 0 : index
    %31 = vector.load %arg28[%c20, %c0_40] : memref<196x64xf32, #tpu.memory_space<vmem>>, vector<4x64xf32>
    tpu.vector_store %arg28[%c20, %c0_40], %30 {strides = array<i32>} : memref<196x64xf32, #tpu.memory_space<vmem>>, vector<4x64xf32>,
    %c0_41 = arith.constant 0 : index
    %c6 = arith.constant 6 : index
    %32 = vector.load %arg27[%c0_41, %c6] : memref<4x384xf32, #tpu.memory_space<vmem>>, vector<4x64xf32>
    %c24 = arith.constant 24 : index
    %c0_42 = arith.constant 0 : index
    %33 = vector.load %arg28[%c24, %c0_42] : memref<196x64xf32, #tpu.memory_space<vmem>>, vector<4x64xf32>
    tpu.vector_store %arg28[%c24, %c0_42], %32 {strides = array<i32>} : memref<196x64xf32, #tpu.memory_space<vmem>>, vector<4x64xf32>,
    %c0_43 = arith.constant 0 : index
    %c8_44 = arith.constant 8 : index
    %34 = vector.load %arg27[%c0_43, %c8_44] : memref<4x384xf32, #tpu.memory_space<vmem>>, vector<4x64xf32>
    %c28 = arith.constant 28 : index
    %c0_45 = arith.constant 0 : index
    %35 = vector.load %arg28[%c28, %c0_45] : memref<196x64xf32, #tpu.memory_space<vmem>>, vector<4x64xf32>
    tpu.vector_store %arg28[%c28, %c0_45], %34 {strides = array<i32>} : memref<196x64xf32, #tpu.memory_space<vmem>>, vector<4x64xf32>,
    %c0_46 = arith.constant 0 : index
    %c9 = arith.constant 9 : index
    %36 = vector.load %arg27[%c0_46, %c9] : memref<4x384xf32, #tpu.memory_space<vmem>>, vector<4x64xf32>
    %c32 = arith.constant 32 : index
    %c0_47 = arith.constant 0 : index
    %37 = vector.load %arg28[%c32, %c0_47] : memref<196x64xf32, #tpu.memory_space<vmem>>, vector<4x64xf32>
    tpu.vector_store %arg28[%c32, %c0_47], %36 {strides = array<i32>} : memref<196x64xf32, #tpu.memory_space<vmem>>, vector<4x64xf32>,
    %c0_48 = arith.constant 0 : index
    %c10 = arith.constant 10 : index
    %38 = vector.load %arg27[%c0_48, %c10] : memref<4x384xf32, #tpu.memory_space<vmem>>, vector<4x64xf32>
    %c36 = arith.constant 36 : index
    %c0_49 = arith.constant 0 : index
    %39 = vector.load %arg28[%c36, %c0_49] : memref<196x64xf32, #tpu.memory_space<vmem>>, vector<4x64xf32>
    tpu.vector_store %arg28[%c36, %c0_49], %38 {strides = array<i32>} : memref<196x64xf32, #tpu.memory_space<vmem>>, vector<4x64xf32>,
    %c0_50 = arith.constant 0 : index
    %c11 = arith.constant 11 : index
    %40 = vector.load %arg27[%c0_50, %c11] : memref<4x384xf32, #tpu.memory_space<vmem>>, vector<4x64xf32>
    %c40 = arith.constant 40 : index
    %c0_51 = arith.constant 0 : index
    %41 = vector.load %arg28[%c40, %c0_51] : memref<196x64xf32, #tpu.memory_space<vmem>>, vector<4x64xf32>
    tpu.vector_store %arg28[%c40, %c0_51], %40 {strides = array<i32>} : memref<196x64xf32, #tpu.memory_space<vmem>>, vector<4x64xf32>,
    %c0_52 = arith.constant 0 : index
    %c12_53 = arith.constant 12 : index
    %42 = vector.load %arg27[%c0_52, %c12_53] : memref<4x384xf32, #tpu.memory_space<vmem>>, vector<4x64xf32>
    %c44 = arith.constant 44 : index
    %c0_54 = arith.constant 0 : index
    %43 = vector.load %arg28[%c44, %c0_54] : memref<196x64xf32, #tpu.memory_space<vmem>>, vector<4x64xf32>
    tpu.vector_store %arg28[%c44, %c0_54], %42 {strides = array<i32>} : memref<196x64xf32, #tpu.memory_space<vmem>>, vector<4x64xf32>,
    %c0_55 = arith.constant 0 : index
    %c13 = arith.constant 13 : index
    %44 = vector.load %arg27[%c0_55, %c13] : memref<4x384xf32, #tpu.memory_space<vmem>>, vector<4x64xf32>
    %c48 = arith.constant 48 : index
    %c0_56 = arith.constant 0 : index
    %45 = vector.load %arg28[%c48, %c0_56] : memref<196x64xf32, #tpu.memory_space<vmem>>, vector<4x64xf32>
    tpu.vector_store %arg28[%c48, %c0_56], %44 {strides = array<i32>} : memref<196x64xf32, #tpu.memory_space<vmem>>, vector<4x64xf32>,
    %c0_57 = arith.constant 0 : index
    %c14 = arith.constant 14 : index
    %46 = vector.load %arg27[%c0_57, %c14] : memref<4x384xf32, #tpu.memory_space<vmem>>, vector<4x64xf32>
    %c52 = arith.constant 52 : index
    %c0_58 = arith.constant 0 : index
    %47 = vector.load %arg28[%c52, %c0_58] : memref<196x64xf32, #tpu.memory_space<vmem>>, vector<4x64xf32>
    tpu.vector_store %arg28[%c52, %c0_58], %46 {strides = array<i32>} : memref<196x64xf32, #tpu.memory_space<vmem>>, vector<4x64xf32>,
    %c0_59 = arith.constant 0 : index
    %c16_60 = arith.constant 16 : index
    %48 = vector.load %arg27[%c0_59, %c16_60] : memref<4x384xf32, #tpu.memory_space<vmem>>, vector<4x64xf32>
    %c56 = arith.constant 56 : index
    %c0_61 = arith.constant 0 : index
    %49 = vector.load %arg28[%c56, %c0_61] : memref<196x64xf32, #tpu.memory_space<vmem>>, vector<4x64xf32>
    tpu.vector_store %arg28[%c56, %c0_61], %48 {strides = array<i32>} : memref<196x64xf32, #tpu.memory_space<vmem>>, vector<4x64xf32>,
    %c0_62 = arith.constant 0 : index
    %c17_63 = arith.constant 17 : index
    %50 = vector.load %arg27[%c0_62, %c17_63] : memref<4x384xf32, #tpu.memory_space<vmem>>, vector<4x64xf32>
    %c60 = arith.constant 60 : index
    %c0_64 = arith.constant 0 : index
    %51 = vector.load %arg28[%c60, %c0_64] : memref<196x64xf32, #tpu.memory_space<vmem>>, vector<4x64xf32>
    tpu.vector_store %arg28[%c60, %c0_64], %50 {strides = array<i32>} : memref<196x64xf32, #tpu.memory_space<vmem>>, vector<4x64xf32>,
    %c0_65 = arith.constant 0 : index
    %c18 = arith.constant 18 : index
    %52 = vector.load %arg27[%c0_65, %c18] : memref<4x384xf32, #tpu.memory_space<vmem>>, vector<4x64xf32>
    %c64 = arith.constant 64 : index
    %c0_66 = arith.constant 0 : index
    %53 = vector.load %arg28[%c64, %c0_66] : memref<196x64xf32, #tpu.memory_space<vmem>>, vector<4x64xf32>
    tpu.vector_store %arg28[%c64, %c0_66], %52 {strides = array<i32>} : memref<196x64xf32, #tpu.memory_space<vmem>>, vector<4x64xf32>,
    %c0_67 = arith.constant 0 : index
    %c19 = arith.constant 19 : index
    %54 = vector.load %arg27[%c0_67, %c19] : memref<4x384xf32, #tpu.memory_space<vmem>>, vector<4x64xf32>
    %c68 = arith.constant 68 : index
    %c0_68 = arith.constant 0 : index
    %55 = vector.load %arg28[%c68, %c0_68] : memref<196x64xf32, #tpu.memory_space<vmem>>, vector<4x64xf32>
    tpu.vector_store %arg28[%c68, %c0_68], %54 {strides = array<i32>} : memref<196x64xf32, #tpu.memory_space<vmem>>, vector<4x64xf32>,
    %c0_69 = arith.constant 0 : index
    %c20_70 = arith.constant 20 : index
    %56 = vector.load %arg27[%c0_69, %c20_70] : memref<4x384xf32, #tpu.memory_space<vmem>>, vector<4x64xf32>
    %c72 = arith.constant 72 : index
    %c0_71 = arith.constant 0 : index
    %57 = vector.load %arg28[%c72, %c0_71] : memref<196x64xf32, #tpu.memory_space<vmem>>, vector<4x64xf32>
    tpu.vector_store %arg28[%c72, %c0_71], %56 {strides = array<i32>} : memref<196x64xf32, #tpu.memory_space<vmem>>, vector<4x64xf32>,
    %c0_72 = arith.constant 0 : index
    %c21 = arith.constant 21 : index
    %58 = vector.load %arg27[%c0_72, %c21] : memref<4x384xf32, #tpu.memory_space<vmem>>, vector<4x64xf32>
    %c76 = arith.constant 76 : index
    %c0_73 = arith.constant 0 : index
    %59 = vector.load %arg28[%c76, %c0_73] : memref<196x64xf32, #tpu.memory_space<vmem>>, vector<4x64xf32>
    tpu.vector_store %arg28[%c76, %c0_73], %58 {strides = array<i32>} : memref<196x64xf32, #tpu.memory_space<vmem>>, vector<4x64xf32>,
    %c0_74 = arith.constant 0 : index
    %c22 = arith.constant 22 : index
    %60 = vector.load %arg27[%c0_74, %c22] : memref<4x384xf32, #tpu.memory_space<vmem>>, vector<4x64xf32>
    %c80 = arith.constant 80 : index
    %c0_75 = arith.constant 0 : index
    %61 = vector.load %arg28[%c80, %c0_75] : memref<196x64xf32, #tpu.memory_space<vmem>>, vector<4x64xf32>
    tpu.vector_store %arg28[%c80, %c0_75], %60 {strides = array<i32>} : memref<196x64xf32, #tpu.memory_space<vmem>>, vector<4x64xf32>,
    %c0_76 = arith.constant 0 : index
    %c24_77 = arith.constant 24 : index
    %62 = vector.load %arg27[%c0_76, %c24_77] : memref<4x384xf32, #tpu.memory_space<vmem>>, vector<4x64xf32>
    %c84 = arith.constant 84 : index
    %c0_78 = arith.constant 0 : index
    %63 = vector.load %arg28[%c84, %c0_78] : memref<196x64xf32, #tpu.memory_space<vmem>>, vector<4x64xf32>
    tpu.vector_store %arg28[%c84, %c0_78], %62 {strides = array<i32>} : memref<196x64xf32, #tpu.memory_space<vmem>>, vector<4x64xf32>,
    %c0_79 = arith.constant 0 : index
    %c25 = arith.constant 25 : index
    %64 = vector.load %arg27[%c0_79, %c25] : memref<4x384xf32, #tpu.memory_space<vmem>>, vector<4x64xf32>
    %c88 = arith.constant 88 : index
    %c0_80 = arith.constant 0 : index
    %65 = vector.load %arg28[%c88, %c0_80] : memref<196x64xf32, #tpu.memory_space<vmem>>, vector<4x64xf32>
    tpu.vector_store %arg28[%c88, %c0_80], %64 {strides = array<i32>} : memref<196x64xf32, #tpu.memory_space<vmem>>, vector<4x64xf32>,
    %c0_81 = arith.constant 0 : index
    %c26 = arith.constant 26 : index
    %66 = vector.load %arg27[%c0_81, %c26] : memref<4x384xf32, #tpu.memory_space<vmem>>, vector<4x64xf32>
    %c92 = arith.constant 92 : index
    %c0_82 = arith.constant 0 : index
    %67 = vector.load %arg28[%c92, %c0_82] : memref<196x64xf32, #tpu.memory_space<vmem>>, vector<4x64xf32>
    tpu.vector_store %arg28[%c92, %c0_82], %66 {strides = array<i32>} : memref<196x64xf32, #tpu.memory_space<vmem>>, vector<4x64xf32>,
    %c0_83 = arith.constant 0 : index
    %c27_84 = arith.constant 27 : index
    %68 = vector.load %arg27[%c0_83, %c27_84] : memref<4x384xf32, #tpu.memory_space<vmem>>, vector<4x64xf32>
    %c96 = arith.constant 96 : index
    %c0_85 = arith.constant 0 : index
    %69 = vector.load %arg28[%c96, %c0_85] : memref<196x64xf32, #tpu.memory_space<vmem>>, vector<4x64xf32>
    tpu.vector_store %arg28[%c96, %c0_85], %68 {strides = array<i32>} : memref<196x64xf32, #tpu.memory_space<vmem>>, vector<4x64xf32>,
    %c0_86 = arith.constant 0 : index
    %c28_87 = arith.constant 28 : index
    %70 = vector.load %arg27[%c0_86, %c28_87] : memref<4x384xf32, #tpu.memory_space<vmem>>, vector<4x64xf32>
    %c100 = arith.constant 100 : index
    %c0_88 = arith.constant 0 : index
    %71 = vector.load %arg28[%c100, %c0_88] : memref<196x64xf32, #tpu.memory_space<vmem>>, vector<4x64xf32>
    tpu.vector_store %arg28[%c100, %c0_88], %70 {strides = array<i32>} : memref<196x64xf32, #tpu.memory_space<vmem>>, vector<4x64xf32>,
    %c0_89 = arith.constant 0 : index
    %c29 = arith.constant 29 : index
    %72 = vector.load %arg27[%c0_89, %c29] : memref<4x384xf32, #tpu.memory_space<vmem>>, vector<4x64xf32>
    %c104 = arith.constant 104 : index
    %c0_90 = arith.constant 0 : index
    %73 = vector.load %arg28[%c104, %c0_90] : memref<196x64xf32, #tpu.memory_space<vmem>>, vector<4x64xf32>
    tpu.vector_store %arg28[%c104, %c0_90], %72 {strides = array<i32>} : memref<196x64xf32, #tpu.memory_space<vmem>>, vector<4x64xf32>,
    %c0_91 = arith.constant 0 : index
    %c30 = arith.constant 30 : index
    %74 = vector.load %arg27[%c0_91, %c30] : memref<4x384xf32, #tpu.memory_space<vmem>>, vector<4x64xf32>
    %c108 = arith.constant 108 : index
    %c0_92 = arith.constant 0 : index
    %75 = vector.load %arg28[%c108, %c0_92] : memref<196x64xf32, #tpu.memory_space<vmem>>, vector<4x64xf32>
    tpu.vector_store %arg28[%c108, %c0_92], %74 {strides = array<i32>} : memref<196x64xf32, #tpu.memory_space<vmem>>, vector<4x64xf32>,
    %c0_93 = arith.constant 0 : index
    %c32_94 = arith.constant 32 : index
    %76 = vector.load %arg27[%c0_93, %c32_94] : memref<4x384xf32, #tpu.memory_space<vmem>>, vector<4x64xf32>
    %c112 = arith.constant 112 : index
    %c0_95 = arith.constant 0 : index
    %77 = vector.load %arg28[%c112, %c0_95] : memref<196x64xf32, #tpu.memory_space<vmem>>, vector<4x64xf32>
    tpu.vector_store %arg28[%c112, %c0_95], %76 {strides = array<i32>} : memref<196x64xf32, #tpu.memory_space<vmem>>, vector<4x64xf32>,
    %c0_96 = arith.constant 0 : index
    %c33 = arith.constant 33 : index
    %78 = vector.load %arg27[%c0_96, %c33] : memref<4x384xf32, #tpu.memory_space<vmem>>, vector<4x64xf32>
    %c116 = arith.constant 116 : index
    %c0_97 = arith.constant 0 : index
    %79 = vector.load %arg28[%c116, %c0_97] : memref<196x64xf32, #tpu.memory_space<vmem>>, vector<4x64xf32>
    tpu.vector_store %arg28[%c116, %c0_97], %78 {strides = array<i32>} : memref<196x64xf32, #tpu.memory_space<vmem>>, vector<4x64xf32>,
    %c0_98 = arith.constant 0 : index
    %c34 = arith.constant 34 : index
    %80 = vector.load %arg27[%c0_98, %c34] : memref<4x384xf32, #tpu.memory_space<vmem>>, vector<4x64xf32>
    %c120 = arith.constant 120 : index
    %c0_99 = arith.constant 0 : index
    %81 = vector.load %arg28[%c120, %c0_99] : memref<196x64xf32, #tpu.memory_space<vmem>>, vector<4x64xf32>
    tpu.vector_store %arg28[%c120, %c0_99], %80 {strides = array<i32>} : memref<196x64xf32, #tpu.memory_space<vmem>>, vector<4x64xf32>,
    %c0_100 = arith.constant 0 : index
    %c35 = arith.constant 35 : index
    %82 = vector.load %arg27[%c0_100, %c35] : memref<4x384xf32, #tpu.memory_space<vmem>>, vector<4x64xf32>
    %c124 = arith.constant 124 : index
    %c0_101 = arith.constant 0 : index
    %83 = vector.load %arg28[%c124, %c0_101] : memref<196x64xf32, #tpu.memory_space<vmem>>, vector<4x64xf32>
    tpu.vector_store %arg28[%c124, %c0_101], %82 {strides = array<i32>} : memref<196x64xf32, #tpu.memory_space<vmem>>, vector<4x64xf32>,
    %c0_102 = arith.constant 0 : index
    %c36_103 = arith.constant 36 : index
    %84 = vector.load %arg27[%c0_102, %c36_103] : memref<4x384xf32, #tpu.memory_space<vmem>>, vector<4x64xf32>
    %c128 = arith.constant 128 : index
    %c0_104 = arith.constant 0 : index
    %85 = vector.load %arg28[%c128, %c0_104] : memref<196x64xf32, #tpu.memory_space<vmem>>, vector<4x64xf32>
    tpu.vector_store %arg28[%c128, %c0_104], %84 {strides = array<i32>} : memref<196x64xf32, #tpu.memory_space<vmem>>, vector<4x64xf32>,
    %c0_105 = arith.constant 0 : index
    %c37 = arith.constant 37 : index
    %86 = vector.load %arg27[%c0_105, %c37] : memref<4x384xf32, #tpu.memory_space<vmem>>, vector<4x64xf32>
    %c132 = arith.constant 132 : index
    %c0_106 = arith.constant 0 : index
    %87 = vector.load %arg28[%c132, %c0_106] : memref<196x64xf32, #tpu.memory_space<vmem>>, vector<4x64xf32>
    tpu.vector_store %arg28[%c132, %c0_106], %86 {strides = array<i32>} : memref<196x64xf32, #tpu.memory_space<vmem>>, vector<4x64xf32>,
    %c0_107 = arith.constant 0 : index
    %c38 = arith.constant 38 : index
    %88 = vector.load %arg27[%c0_107, %c38] : memref<4x384xf32, #tpu.memory_space<vmem>>, vector<4x64xf32>
    %c136 = arith.constant 136 : index
    %c0_108 = arith.constant 0 : index
    %89 = vector.load %arg28[%c136, %c0_108] : memref<196x64xf32, #tpu.memory_space<vmem>>, vector<4x64xf32>
    tpu.vector_store %arg28[%c136, %c0_108], %88 {strides = array<i32>} : memref<196x64xf32, #tpu.memory_space<vmem>>, vector<4x64xf32>,
    %c0_109 = arith.constant 0 : index
    %c40_110 = arith.constant 40 : index
    %90 = vector.load %arg27[%c0_109, %c40_110] : memref<4x384xf32, #tpu.memory_space<vmem>>, vector<4x64xf32>
    %c140 = arith.constant 140 : index
    %c0_111 = arith.constant 0 : index
    %91 = vector.load %arg28[%c140, %c0_111] : memref<196x64xf32, #tpu.memory_space<vmem>>, vector<4x64xf32>
    tpu.vector_store %arg28[%c140, %c0_111], %90 {strides = array<i32>} : memref<196x64xf32, #tpu.memory_space<vmem>>, vector<4x64xf32>,
    %c0_112 = arith.constant 0 : index
    %c41 = arith.constant 41 : index
    %92 = vector.load %arg27[%c0_112, %c41] : memref<4x384xf32, #tpu.memory_space<vmem>>, vector<4x64xf32>
    %c144 = arith.constant 144 : index
    %c0_113 = arith.constant 0 : index
    %93 = vector.load %arg28[%c144, %c0_113] : memref<196x64xf32, #tpu.memory_space<vmem>>, vector<4x64xf32>
    tpu.vector_store %arg28[%c144, %c0_113], %92 {strides = array<i32>} : memref<196x64xf32, #tpu.memory_space<vmem>>, vector<4x64xf32>,
    %c0_114 = arith.constant 0 : index
    %c42 = arith.constant 42 : index
    %94 = vector.load %arg27[%c0_114, %c42] : memref<4x384xf32, #tpu.memory_space<vmem>>, vector<4x64xf32>
    %c148 = arith.constant 148 : index
    %c0_115 = arith.constant 0 : index
    %95 = vector.load %arg28[%c148, %c0_115] : memref<196x64xf32, #tpu.memory_space<vmem>>, vector<4x64xf32>
    tpu.vector_store %arg28[%c148, %c0_115], %94 {strides = array<i32>} : memref<196x64xf32, #tpu.memory_space<vmem>>, vector<4x64xf32>,
    %c0_116 = arith.constant 0 : index
    %c43 = arith.constant 43 : index
    %96 = vector.load %arg27[%c0_116, %c43] : memref<4x384xf32, #tpu.memory_space<vmem>>, vector<4x64xf32>
    %c152 = arith.constant 152 : index
    %c0_117 = arith.constant 0 : index
    %97 = vector.load %arg28[%c152, %c0_117] : memref<196x64xf32, #tpu.memory_space<vmem>>, vector<4x64xf32>
    tpu.vector_store %arg28[%c152, %c0_117], %96 {strides = array<i32>} : memref<196x64xf32, #tpu.memory_space<vmem>>, vector<4x64xf32>,
    %c0_118 = arith.constant 0 : index
    %c44_119 = arith.constant 44 : index
    %98 = vector.load %arg27[%c0_118, %c44_119] : memref<4x384xf32, #tpu.memory_space<vmem>>, vector<4x64xf32>
    %c156 = arith.constant 156 : index
    %c0_120 = arith.constant 0 : index
    %99 = vector.load %arg28[%c156, %c0_120] : memref<196x64xf32, #tpu.memory_space<vmem>>, vector<4x64xf32>
    tpu.vector_store %arg28[%c156, %c0_120], %98 {strides = array<i32>} : memref<196x64xf32, #tpu.memory_space<vmem>>, vector<4x64xf32>,
    %c0_121 = arith.constant 0 : index
    %c45 = arith.constant 45 : index
    %100 = vector.load %arg27[%c0_121, %c45] : memref<4x384xf32, #tpu.memory_space<vmem>>, vector<4x64xf32>
    %c160 = arith.constant 160 : index
    %c0_122 = arith.constant 0 : index
    %101 = vector.load %arg28[%c160, %c0_122] : memref<196x64xf32, #tpu.memory_space<vmem>>, vector<4x64xf32>
    tpu.vector_store %arg28[%c160, %c0_122], %100 {strides = array<i32>} : memref<196x64xf32, #tpu.memory_space<vmem>>, vector<4x64xf32>,
    %c0_123 = arith.constant 0 : index
    %c46 = arith.constant 46 : index
    %102 = vector.load %arg27[%c0_123, %c46] : memref<4x384xf32, #tpu.memory_space<vmem>>, vector<4x64xf32>
    %c164 = arith.constant 164 : index
    %c0_124 = arith.constant 0 : index
    %103 = vector.load %arg28[%c164, %c0_124] : memref<196x64xf32, #tpu.memory_space<vmem>>, vector<4x64xf32>
    tpu.vector_store %arg28[%c164, %c0_124], %102 {strides = array<i32>} : memref<196x64xf32, #tpu.memory_space<vmem>>, vector<4x64xf32>,
    %c0_125 = arith.constant 0 : index
    %c48_126 = arith.constant 48 : index
    %104 = vector.load %arg27[%c0_125, %c48_126] : memref<4x384xf32, #tpu.memory_space<vmem>>, vector<4x64xf32>
    %c168 = arith.constant 168 : index
    %c0_127 = arith.constant 0 : index
    %105 = vector.load %arg28[%c168, %c0_127] : memref<196x64xf32, #tpu.memory_space<vmem>>, vector<4x64xf32>
    tpu.vector_store %arg28[%c168, %c0_127], %104 {strides = array<i32>} : memref<196x64xf32, #tpu.memory_space<vmem>>, vector<4x64xf32>,
    %c0_128 = arith.constant 0 : index
    %c49 = arith.constant 49 : index
    %106 = vector.load %arg27[%c0_128, %c49] : memref<4x384xf32, #tpu.memory_space<vmem>>, vector<4x64xf32>
    %c172 = arith.constant 172 : index
    %c0_129 = arith.constant 0 : index
    %107 = vector.load %arg28[%c172, %c0_129] : memref<196x64xf32, #tpu.memory_space<vmem>>, vector<4x64xf32>
    tpu.vector_store %arg28[%c172, %c0_129], %106 {strides = array<i32>} : memref<196x64xf32, #tpu.memory_space<vmem>>, vector<4x64xf32>,
    %c0_130 = arith.constant 0 : index
    %c50 = arith.constant 50 : index
    %108 = vector.load %arg27[%c0_130, %c50] : memref<4x384xf32, #tpu.memory_space<vmem>>, vector<4x64xf32>
    %c176 = arith.constant 176 : index
    %c0_131 = arith.constant 0 : index
    %109 = vector.load %arg28[%c176, %c0_131] : memref<196x64xf32, #tpu.memory_space<vmem>>, vector<4x64xf32>
    tpu.vector_store %arg28[%c176, %c0_131], %108 {strides = array<i32>} : memref<196x64xf32, #tpu.memory_space<vmem>>, vector<4x64xf32>,
    %c0_132 = arith.constant 0 : index
    %c51 = arith.constant 51 : index
    %110 = vector.load %arg27[%c0_132, %c51] : memref<4x384xf32, #tpu.memory_space<vmem>>, vector<4x64xf32>
    %c180 = arith.constant 180 : index
    %c0_133 = arith.constant 0 : index
    %111 = vector.load %arg28[%c180, %c0_133] : memref<196x64xf32, #tpu.memory_space<vmem>>, vector<4x64xf32>
    tpu.vector_store %arg28[%c180, %c0_133], %110 {strides = array<i32>} : memref<196x64xf32, #tpu.memory_space<vmem>>, vector<4x64xf32>,
    %c0_134 = arith.constant 0 : index
    %c52_135 = arith.constant 52 : index
    %112 = vector.load %arg27[%c0_134, %c52_135] : memref<4x384xf32, #tpu.memory_space<vmem>>, vector<4x64xf32>
    %c184 = arith.constant 184 : index
    %c0_136 = arith.constant 0 : index
    %113 = vector.load %arg28[%c184, %c0_136] : memref<196x64xf32, #tpu.memory_space<vmem>>, vector<4x64xf32>
    tpu.vector_store %arg28[%c184, %c0_136], %112 {strides = array<i32>} : memref<196x64xf32, #tpu.memory_space<vmem>>, vector<4x64xf32>,
    %c0_137 = arith.constant 0 : index
    %c53 = arith.constant 53 : index
    %114 = vector.load %arg27[%c0_137, %c53] : memref<4x384xf32, #tpu.memory_space<vmem>>, vector<4x64xf32>
    %c188 = arith.constant 188 : index
    %c0_138 = arith.constant 0 : index
    %115 = vector.load %arg28[%c188, %c0_138] : memref<196x64xf32, #tpu.memory_space<vmem>>, vector<4x64xf32>
    tpu.vector_store %arg28[%c188, %c0_138], %114 {strides = array<i32>} : memref<196x64xf32, #tpu.memory_space<vmem>>, vector<4x64xf32>,
    %c0_139 = arith.constant 0 : index
    %c54 = arith.constant 54 : index
    %116 = vector.load %arg27[%c0_139, %c54] : memref<4x384xf32, #tpu.memory_space<vmem>>, vector<4x64xf32>
    %c192 = arith.constant 192 : index
    %c0_140 = arith.constant 0 : index
    %117 = vector.load %arg28[%c192, %c0_140] : memref<196x64xf32, #tpu.memory_space<vmem>>, vector<4x64xf32>
    tpu.vector_store %arg28[%c192, %c0_140], %116 {strides = array<i32>} : memref<196x64xf32, #tpu.memory_space<vmem>>, vector<4x64xf32>,
    %c0_141 = arith.constant 0 : index
    %c0_142 = arith.constant 0 : index
    %118 = vector.load %arg28[%c0_141, %c0_142] : memref<196x64xf32, #tpu.memory_space<vmem>>, vector<196x64xf32>
    %119 = arith.mulf %118, %16 : vector<196x64xf32>
    %cst_143 = arith.constant dense<0.000000e+00> : vector<4x64xf32>
    %120 = tpu.matmul %14, %119, %cst_143 {dimension_numbers = #tpu.dot_dimension_numbers<[1], [0], [0], [1], [0, 0, 1, 1], [], []>} : vector<4x196xf32>, vector<196x64xf32>, vector<4x64xf32> -> vector<4x64xf32>
    %121 = vector.broadcast %15 : vector<4x1xf32> to vector<4x64xf32>
    %122 = arith.addf %120, %121 : vector<4x64xf32>
    %cst_144 = arith.constant 0.000000e+00 : f32
    %123 = vector.broadcast %cst_144 : f32 to vector<4x64xf32>
    %124 = arith.maximumf %122, %123 : vector<4x64xf32>
    %c0_145 = arith.constant 0 : index
    %c0_146 = arith.constant 0 : index
    %125 = vector.load %arg18[%c0_145, %c0_146] : memref<64x16xf32, #tpu.memory_space<vmem>>, vector<64x16xf32>
    %cst_147 = arith.constant 0.000000e+00 : f32
    %126 = vector.broadcast %cst_147 : f32 to vector<4x384xf32>
    %c0_148 = arith.constant 0 : index
    %c0_149 = arith.constant 0 : index
    %127 = vector.load %arg27[%c0_148, %c0_149] : memref<4x384xf32, #tpu.memory_space<vmem>>, vector<4x384xf32>
    tpu.vector_store %arg27[%c0_148, %c0_149], %126 {strides = array<i32>} : memref<4x384xf32, #tpu.memory_space<vmem>>, vector<4x384xf32>,
    %c0_150 = arith.constant 0 : index
    %c0_151 = arith.constant 0 : index
    %128 = vector.load %arg27[%c0_150, %c0_151] : memref<4x384xf32, #tpu.memory_space<vmem>>, vector<4x64xf32>
    tpu.vector_store %arg27[%c0_150, %c0_151], %124 {strides = array<i32>} : memref<4x384xf32, #tpu.memory_space<vmem>>, vector<4x64xf32>,
    %c0_152 = arith.constant 0 : index
    %c0_153 = arith.constant 0 : index
    %129 = vector.load %arg27[%c0_152, %c0_153] : memref<4x384xf32, #tpu.memory_space<vmem>>, vector<4x64xf32>
    %c0_154 = arith.constant 0 : index
    %c1_155 = arith.constant 1 : index
    %130 = vector.load %arg27[%c0_154, %c1_155] : memref<4x384xf32, #tpu.memory_space<vmem>>, vector<4x64xf32>
    %131 = arith.maximumf %129, %130 : vector<4x64xf32>
    %c0_156 = arith.constant 0 : index
    %c8_157 = arith.constant 8 : index
    %132 = vector.load %arg27[%c0_156, %c8_157] : memref<4x384xf32, #tpu.memory_space<vmem>>, vector<4x64xf32>
    %c0_158 = arith.constant 0 : index
    %c9_159 = arith.constant 9 : index
    %133 = vector.load %arg27[%c0_158, %c9_159] : memref<4x384xf32, #tpu.memory_space<vmem>>, vector<4x64xf32>
    %134 = arith.maximumf %132, %133 : vector<4x64xf32>
    %135 = arith.maximumf %131, %134 : vector<4x64xf32>
    %cst_160 = arith.constant dense<0.000000e+00> : vector<4x16xf32>
    %136 = tpu.matmul %135, %125, %cst_160 {dimension_numbers = #tpu.dot_dimension_numbers<[1], [0], [0], [1], [0, 0, 1, 1], [], []>} : vector<4x64xf32>, vector<64x16xf32>, vector<4x16xf32> -> vector<4x16xf32>
    %c0_161 = arith.constant 0 : index
    %c0_162 = arith.constant 0 : index
    %137 = vector.load %arg4[%c0_161, %c0_162] : memref<4x100xf32, #tpu.memory_space<vmem>>, vector<4x100xf32>
    %c0_163 = arith.constant 0 : index
    %c0_164 = arith.constant 0 : index
    %138 = vector.load %arg5[%c0_163, %c0_164] : memref<4x1xf32, #tpu.memory_space<vmem>>, vector<4x1xf32>
    %c0_165 = arith.constant 0 : index
    %c0_166 = arith.constant 0 : index
    %139 = vector.load %arg15[%c0_165, %c0_166] : memref<100x16xf32, #tpu.memory_space<vmem>>, vector<100x16xf32>
    %cst_167 = arith.constant 0.000000e+00 : f32
    %140 = vector.broadcast %cst_167 : f32 to vector<4x384xf32>
    %c0_168 = arith.constant 0 : index
    %c0_169 = arith.constant 0 : index
    %141 = vector.load %arg27[%c0_168, %c0_169] : memref<4x384xf32, #tpu.memory_space<vmem>>, vector<4x384xf32>
    tpu.vector_store %arg27[%c0_168, %c0_169], %140 {strides = array<i32>} : memref<4x384xf32, #tpu.memory_space<vmem>>, vector<4x384xf32>,
    %c0_170 = arith.constant 0 : index
    %c10_171 = arith.constant 10 : index
    %142 = vector.load %arg27[%c0_170, %c10_171] : memref<4x384xf32, #tpu.memory_space<vmem>>, vector<4x16xf32>
    tpu.vector_store %arg27[%c0_170, %c10_171], %136 {strides = array<i32>} : memref<4x384xf32, #tpu.memory_space<vmem>>, vector<4x16xf32>,
    %c0_172 = arith.constant 0 : index
    %c0_173 = arith.constant 0 : index
    %143 = vector.load %arg27[%c0_172, %c0_173] : memref<4x384xf32, #tpu.memory_space<vmem>>, vector<4x16xf32>
    %c0_174 = arith.constant 0 : index
    %c0_175 = arith.constant 0 : index
    %144 = vector.load %arg28[%c0_174, %c0_175] : memref<196x64xf32, #tpu.memory_space<vmem>>, vector<4x16xf32>
    tpu.vector_store %arg28[%c0_174, %c0_175], %143 {strides = array<i32>} : memref<196x64xf32, #tpu.memory_space<vmem>>, vector<4x16xf32>,
    %c0_176 = arith.constant 0 : index
    %c1_177 = arith.constant 1 : index
    %145 = vector.load %arg27[%c0_176, %c1_177] : memref<4x384xf32, #tpu.memory_space<vmem>>, vector<4x16xf32>
    %c4_178 = arith.constant 4 : index
    %c0_179 = arith.constant 0 : index
    %146 = vector.load %arg28[%c4_178, %c0_179] : memref<196x64xf32, #tpu.memory_space<vmem>>, vector<4x16xf32>
    tpu.vector_store %arg28[%c4_178, %c0_179], %145 {strides = array<i32>} : memref<196x64xf32, #tpu.memory_space<vmem>>, vector<4x16xf32>,
    %c0_180 = arith.constant 0 : index
    %c2_181 = arith.constant 2 : index
    %147 = vector.load %arg27[%c0_180, %c2_181] : memref<4x384xf32, #tpu.memory_space<vmem>>, vector<4x16xf32>
    %c8_182 = arith.constant 8 : index
    %c0_183 = arith.constant 0 : index
    %148 = vector.load %arg28[%c8_182, %c0_183] : memref<196x64xf32, #tpu.memory_space<vmem>>, vector<4x16xf32>
    tpu.vector_store %arg28[%c8_182, %c0_183], %147 {strides = array<i32>} : memref<196x64xf32, #tpu.memory_space<vmem>>, vector<4x16xf32>,
    %c0_184 = arith.constant 0 : index
    %c3_185 = arith.constant 3 : index
    %149 = vector.load %arg27[%c0_184, %c3_185] : memref<4x384xf32, #tpu.memory_space<vmem>>, vector<4x16xf32>
    %c12_186 = arith.constant 12 : index
    %c0_187 = arith.constant 0 : index
    %150 = vector.load %arg28[%c12_186, %c0_187] : memref<196x64xf32, #tpu.memory_space<vmem>>, vector<4x16xf32>
    tpu.vector_store %arg28[%c12_186, %c0_187], %149 {strides = array<i32>} : memref<196x64xf32, #tpu.memory_space<vmem>>, vector<4x16xf32>,
    %c0_188 = arith.constant 0 : index
    %c4_189 = arith.constant 4 : index
    %151 = vector.load %arg27[%c0_188, %c4_189] : memref<4x384xf32, #tpu.memory_space<vmem>>, vector<4x16xf32>
    %c16_190 = arith.constant 16 : index
    %c0_191 = arith.constant 0 : index
    %152 = vector.load %arg28[%c16_190, %c0_191] : memref<196x64xf32, #tpu.memory_space<vmem>>, vector<4x16xf32>
    tpu.vector_store %arg28[%c16_190, %c0_191], %151 {strides = array<i32>} : memref<196x64xf32, #tpu.memory_space<vmem>>, vector<4x16xf32>,
    %c0_192 = arith.constant 0 : index
    %c4_193 = arith.constant 4 : index
    %153 = vector.load %arg27[%c0_192, %c4_193] : memref<4x384xf32, #tpu.memory_space<vmem>>, vector<4x16xf32>
    %c20_194 = arith.constant 20 : index
    %c0_195 = arith.constant 0 : index
    %154 = vector.load %arg28[%c20_194, %c0_195] : memref<196x64xf32, #tpu.memory_space<vmem>>, vector<4x16xf32>
    tpu.vector_store %arg28[%c20_194, %c0_195], %153 {strides = array<i32>} : memref<196x64xf32, #tpu.memory_space<vmem>>, vector<4x16xf32>,
    %c0_196 = arith.constant 0 : index
    %c5_197 = arith.constant 5 : index
    %155 = vector.load %arg27[%c0_196, %c5_197] : memref<4x384xf32, #tpu.memory_space<vmem>>, vector<4x16xf32>
    %c24_198 = arith.constant 24 : index
    %c0_199 = arith.constant 0 : index
    %156 = vector.load %arg28[%c24_198, %c0_199] : memref<196x64xf32, #tpu.memory_space<vmem>>, vector<4x16xf32>
    tpu.vector_store %arg28[%c24_198, %c0_199], %155 {strides = array<i32>} : memref<196x64xf32, #tpu.memory_space<vmem>>, vector<4x16xf32>,
    %c0_200 = arith.constant 0 : index
    %c6_201 = arith.constant 6 : index
    %157 = vector.load %arg27[%c0_200, %c6_201] : memref<4x384xf32, #tpu.memory_space<vmem>>, vector<4x16xf32>
    %c28_202 = arith.constant 28 : index
    %c0_203 = arith.constant 0 : index
    %158 = vector.load %arg28[%c28_202, %c0_203] : memref<196x64xf32, #tpu.memory_space<vmem>>, vector<4x16xf32>
    tpu.vector_store %arg28[%c28_202, %c0_203], %157 {strides = array<i32>} : memref<196x64xf32, #tpu.memory_space<vmem>>, vector<4x16xf32>,
    %c0_204 = arith.constant 0 : index
    %c7 = arith.constant 7 : index
    %159 = vector.load %arg27[%c0_204, %c7] : memref<4x384xf32, #tpu.memory_space<vmem>>, vector<4x16xf32>
    %c32_205 = arith.constant 32 : index
    %c0_206 = arith.constant 0 : index
    %160 = vector.load %arg28[%c32_205, %c0_206] : memref<196x64xf32, #tpu.memory_space<vmem>>, vector<4x16xf32>
    tpu.vector_store %arg28[%c32_205, %c0_206], %159 {strides = array<i32>} : memref<196x64xf32, #tpu.memory_space<vmem>>, vector<4x16xf32>,
    %c0_207 = arith.constant 0 : index
    %c8_208 = arith.constant 8 : index
    %161 = vector.load %arg27[%c0_207, %c8_208] : memref<4x384xf32, #tpu.memory_space<vmem>>, vector<4x16xf32>
    %c36_209 = arith.constant 36 : index
    %c0_210 = arith.constant 0 : index
    %162 = vector.load %arg28[%c36_209, %c0_210] : memref<196x64xf32, #tpu.memory_space<vmem>>, vector<4x16xf32>
    tpu.vector_store %arg28[%c36_209, %c0_210], %161 {strides = array<i32>} : memref<196x64xf32, #tpu.memory_space<vmem>>, vector<4x16xf32>,
    %c0_211 = arith.constant 0 : index
    %c8_212 = arith.constant 8 : index
    %163 = vector.load %arg27[%c0_211, %c8_212] : memref<4x384xf32, #tpu.memory_space<vmem>>, vector<4x16xf32>
    %c40_213 = arith.constant 40 : index
    %c0_214 = arith.constant 0 : index
    %164 = vector.load %arg28[%c40_213, %c0_214] : memref<196x64xf32, #tpu.memory_space<vmem>>, vector<4x16xf32>
    tpu.vector_store %arg28[%c40_213, %c0_214], %163 {strides = array<i32>} : memref<196x64xf32, #tpu.memory_space<vmem>>, vector<4x16xf32>,
    %c0_215 = arith.constant 0 : index
    %c9_216 = arith.constant 9 : index
    %165 = vector.load %arg27[%c0_215, %c9_216] : memref<4x384xf32, #tpu.memory_space<vmem>>, vector<4x16xf32>
    %c44_217 = arith.constant 44 : index
    %c0_218 = arith.constant 0 : index
    %166 = vector.load %arg28[%c44_217, %c0_218] : memref<196x64xf32, #tpu.memory_space<vmem>>, vector<4x16xf32>
    tpu.vector_store %arg28[%c44_217, %c0_218], %165 {strides = array<i32>} : memref<196x64xf32, #tpu.memory_space<vmem>>, vector<4x16xf32>,
    %c0_219 = arith.constant 0 : index
    %c10_220 = arith.constant 10 : index
    %167 = vector.load %arg27[%c0_219, %c10_220] : memref<4x384xf32, #tpu.memory_space<vmem>>, vector<4x16xf32>
    %c48_221 = arith.constant 48 : index
    %c0_222 = arith.constant 0 : index
    %168 = vector.load %arg28[%c48_221, %c0_222] : memref<196x64xf32, #tpu.memory_space<vmem>>, vector<4x16xf32>
    tpu.vector_store %arg28[%c48_221, %c0_222], %167 {strides = array<i32>} : memref<196x64xf32, #tpu.memory_space<vmem>>, vector<4x16xf32>,
    %c0_223 = arith.constant 0 : index
    %c11_224 = arith.constant 11 : index
    %169 = vector.load %arg27[%c0_223, %c11_224] : memref<4x384xf32, #tpu.memory_space<vmem>>, vector<4x16xf32>
    %c52_225 = arith.constant 52 : index
    %c0_226 = arith.constant 0 : index
    %170 = vector.load %arg28[%c52_225, %c0_226] : memref<196x64xf32, #tpu.memory_space<vmem>>, vector<4x16xf32>
    tpu.vector_store %arg28[%c52_225, %c0_226], %169 {strides = array<i32>} : memref<196x64xf32, #tpu.memory_space<vmem>>, vector<4x16xf32>,
    %c0_227 = arith.constant 0 : index
    %c12_228 = arith.constant 12 : index
    %171 = vector.load %arg27[%c0_227, %c12_228] : memref<4x384xf32, #tpu.memory_space<vmem>>, vector<4x16xf32>
    %c56_229 = arith.constant 56 : index
    %c0_230 = arith.constant 0 : index
    %172 = vector.load %arg28[%c56_229, %c0_230] : memref<196x64xf32, #tpu.memory_space<vmem>>, vector<4x16xf32>
    tpu.vector_store %arg28[%c56_229, %c0_230], %171 {strides = array<i32>} : memref<196x64xf32, #tpu.memory_space<vmem>>, vector<4x16xf32>,
    %c0_231 = arith.constant 0 : index
    %c12_232 = arith.constant 12 : index
    %173 = vector.load %arg27[%c0_231, %c12_232] : memref<4x384xf32, #tpu.memory_space<vmem>>, vector<4x16xf32>
    %c60_233 = arith.constant 60 : index
    %c0_234 = arith.constant 0 : index
    %174 = vector.load %arg28[%c60_233, %c0_234] : memref<196x64xf32, #tpu.memory_space<vmem>>, vector<4x16xf32>
    tpu.vector_store %arg28[%c60_233, %c0_234], %173 {strides = array<i32>} : memref<196x64xf32, #tpu.memory_space<vmem>>, vector<4x16xf32>,
    %c0_235 = arith.constant 0 : index
    %c13_236 = arith.constant 13 : index
    %175 = vector.load %arg27[%c0_235, %c13_236] : memref<4x384xf32, #tpu.memory_space<vmem>>, vector<4x16xf32>
    %c64_237 = arith.constant 64 : index
    %c0_238 = arith.constant 0 : index
    %176 = vector.load %arg28[%c64_237, %c0_238] : memref<196x64xf32, #tpu.memory_space<vmem>>, vector<4x16xf32>
    tpu.vector_store %arg28[%c64_237, %c0_238], %175 {strides = array<i32>} : memref<196x64xf32, #tpu.memory_space<vmem>>, vector<4x16xf32>,
    %c0_239 = arith.constant 0 : index
    %c14_240 = arith.constant 14 : index
    %177 = vector.load %arg27[%c0_239, %c14_240] : memref<4x384xf32, #tpu.memory_space<vmem>>, vector<4x16xf32>
    %c68_241 = arith.constant 68 : index
    %c0_242 = arith.constant 0 : index
    %178 = vector.load %arg28[%c68_241, %c0_242] : memref<196x64xf32, #tpu.memory_space<vmem>>, vector<4x16xf32>
    tpu.vector_store %arg28[%c68_241, %c0_242], %177 {strides = array<i32>} : memref<196x64xf32, #tpu.memory_space<vmem>>, vector<4x16xf32>,
    %c0_243 = arith.constant 0 : index
    %c15 = arith.constant 15 : index
    %179 = vector.load %arg27[%c0_243, %c15] : memref<4x384xf32, #tpu.memory_space<vmem>>, vector<4x16xf32>
    %c72_244 = arith.constant 72 : index
    %c0_245 = arith.constant 0 : index
    %180 = vector.load %arg28[%c72_244, %c0_245] : memref<196x64xf32, #tpu.memory_space<vmem>>, vector<4x16xf32>
    tpu.vector_store %arg28[%c72_244, %c0_245], %179 {strides = array<i32>} : memref<196x64xf32, #tpu.memory_space<vmem>>, vector<4x16xf32>,
    %c0_246 = arith.constant 0 : index
    %c16_247 = arith.constant 16 : index
    %181 = vector.load %arg27[%c0_246, %c16_247] : memref<4x384xf32, #tpu.memory_space<vmem>>, vector<4x16xf32>
    %c76_248 = arith.constant 76 : index
    %c0_249 = arith.constant 0 : index
    %182 = vector.load %arg28[%c76_248, %c0_249] : memref<196x64xf32, #tpu.memory_space<vmem>>, vector<4x16xf32>
    tpu.vector_store %arg28[%c76_248, %c0_249], %181 {strides = array<i32>} : memref<196x64xf32, #tpu.memory_space<vmem>>, vector<4x16xf32>,
    %c0_250 = arith.constant 0 : index
    %c16_251 = arith.constant 16 : index
    %183 = vector.load %arg27[%c0_250, %c16_251] : memref<4x384xf32, #tpu.memory_space<vmem>>, vector<4x16xf32>
    %c80_252 = arith.constant 80 : index
    %c0_253 = arith.constant 0 : index
    %184 = vector.load %arg28[%c80_252, %c0_253] : memref<196x64xf32, #tpu.memory_space<vmem>>, vector<4x16xf32>
    tpu.vector_store %arg28[%c80_252, %c0_253], %183 {strides = array<i32>} : memref<196x64xf32, #tpu.memory_space<vmem>>, vector<4x16xf32>,
    %c0_254 = arith.constant 0 : index
    %c17_255 = arith.constant 17 : index
    %185 = vector.load %arg27[%c0_254, %c17_255] : memref<4x384xf32, #tpu.memory_space<vmem>>, vector<4x16xf32>
    %c84_256 = arith.constant 84 : index
    %c0_257 = arith.constant 0 : index
    %186 = vector.load %arg28[%c84_256, %c0_257] : memref<196x64xf32, #tpu.memory_space<vmem>>, vector<4x16xf32>
    tpu.vector_store %arg28[%c84_256, %c0_257], %185 {strides = array<i32>} : memref<196x64xf32, #tpu.memory_space<vmem>>, vector<4x16xf32>,
    %c0_258 = arith.constant 0 : index
    %c18_259 = arith.constant 18 : index
    %187 = vector.load %arg27[%c0_258, %c18_259] : memref<4x384xf32, #tpu.memory_space<vmem>>, vector<4x16xf32>
    %c88_260 = arith.constant 88 : index
    %c0_261 = arith.constant 0 : index
    %188 = vector.load %arg28[%c88_260, %c0_261] : memref<196x64xf32, #tpu.memory_space<vmem>>, vector<4x16xf32>
    tpu.vector_store %arg28[%c88_260, %c0_261], %187 {strides = array<i32>} : memref<196x64xf32, #tpu.memory_space<vmem>>, vector<4x16xf32>,
    %c0_262 = arith.constant 0 : index
    %c19_263 = arith.constant 19 : index
    %189 = vector.load %arg27[%c0_262, %c19_263] : memref<4x384xf32, #tpu.memory_space<vmem>>, vector<4x16xf32>
    %c92_264 = arith.constant 92 : index
    %c0_265 = arith.constant 0 : index
    %190 = vector.load %arg28[%c92_264, %c0_265] : memref<196x64xf32, #tpu.memory_space<vmem>>, vector<4x16xf32>
    tpu.vector_store %arg28[%c92_264, %c0_265], %189 {strides = array<i32>} : memref<196x64xf32, #tpu.memory_space<vmem>>, vector<4x16xf32>,
    %c0_266 = arith.constant 0 : index
    %c20_267 = arith.constant 20 : index
    %191 = vector.load %arg27[%c0_266, %c20_267] : memref<4x384xf32, #tpu.memory_space<vmem>>, vector<4x16xf32>
    %c96_268 = arith.constant 96 : index
    %c0_269 = arith.constant 0 : index
    %192 = vector.load %arg28[%c96_268, %c0_269] : memref<196x64xf32, #tpu.memory_space<vmem>>, vector<4x16xf32>
    tpu.vector_store %arg28[%c96_268, %c0_269], %191 {strides = array<i32>} : memref<196x64xf32, #tpu.memory_space<vmem>>, vector<4x16xf32>,
    %c0_270 = arith.constant 0 : index
    %c0_271 = arith.constant 0 : index
    %193 = vector.load %arg28[%c0_270, %c0_271] : memref<196x64xf32, #tpu.memory_space<vmem>>, vector<100x16xf32>
    %194 = arith.mulf %193, %139 : vector<100x16xf32>
    %cst_272 = arith.constant dense<0.000000e+00> : vector<4x16xf32>
    %195 = tpu.matmul %137, %194, %cst_272 {dimension_numbers = #tpu.dot_dimension_numbers<[1], [0], [0], [1], [0, 0, 1, 1], [], []>} : vector<4x100xf32>, vector<100x16xf32>, vector<4x16xf32> -> vector<4x16xf32>
    %196 = vector.broadcast %138 : vector<4x1xf32> to vector<4x16xf32>
    %197 = arith.addf %195, %196 : vector<4x16xf32>
    %cst_273 = arith.constant 0.000000e+00 : f32
    %198 = vector.broadcast %cst_273 : f32 to vector<4x16xf32>
    %199 = arith.maximumf %197, %198 : vector<4x16xf32>
    %c0_274 = arith.constant 0 : index
    %c0_275 = arith.constant 0 : index
    %200 = vector.load %arg19[%c0_274, %c0_275] : memref<16x4xf32, #tpu.memory_space<vmem>>, vector<16x4xf32>
    %cst_276 = arith.constant 0.000000e+00 : f32
    %201 = vector.broadcast %cst_276 : f32 to vector<4x384xf32>
    %c0_277 = arith.constant 0 : index
    %c0_278 = arith.constant 0 : index
    %202 = vector.load %arg27[%c0_277, %c0_278] : memref<4x384xf32, #tpu.memory_space<vmem>>, vector<4x384xf32>
    tpu.vector_store %arg27[%c0_277, %c0_278], %201 {strides = array<i32>} : memref<4x384xf32, #tpu.memory_space<vmem>>, vector<4x384xf32>,
    %c0_279 = arith.constant 0 : index
    %c0_280 = arith.constant 0 : index
    %203 = vector.load %arg27[%c0_279, %c0_280] : memref<4x384xf32, #tpu.memory_space<vmem>>, vector<4x16xf32>
    tpu.vector_store %arg27[%c0_279, %c0_280], %199 {strides = array<i32>} : memref<4x384xf32, #tpu.memory_space<vmem>>, vector<4x16xf32>,
    %c0_281 = arith.constant 0 : index
    %c0_282 = arith.constant 0 : index
    %204 = vector.load %arg27[%c0_281, %c0_282] : memref<4x384xf32, #tpu.memory_space<vmem>>, vector<4x16xf32>
    %c0_283 = arith.constant 0 : index
    %c1_284 = arith.constant 1 : index
    %205 = vector.load %arg27[%c0_283, %c1_284] : memref<4x384xf32, #tpu.memory_space<vmem>>, vector<4x16xf32>
    %206 = arith.maximumf %204, %205 : vector<4x16xf32>
    %c0_285 = arith.constant 0 : index
    %c4_286 = arith.constant 4 : index
    %207 = vector.load %arg27[%c0_285, %c4_286] : memref<4x384xf32, #tpu.memory_space<vmem>>, vector<4x16xf32>
    %c0_287 = arith.constant 0 : index
    %c5_288 = arith.constant 5 : index
    %208 = vector.load %arg27[%c0_287, %c5_288] : memref<4x384xf32, #tpu.memory_space<vmem>>, vector<4x16xf32>
    %209 = arith.maximumf %207, %208 : vector<4x16xf32>
    %210 = arith.maximumf %206, %209 : vector<4x16xf32>
    %cst_289 = arith.constant dense<0.000000e+00> : vector<4x4xf32>
    %211 = tpu.matmul %210, %200, %cst_289 {dimension_numbers = #tpu.dot_dimension_numbers<[1], [0], [0], [1], [0, 0, 1, 1], [], []>} : vector<4x16xf32>, vector<16x4xf32>, vector<4x4xf32> -> vector<4x4xf32>
    %c0_290 = arith.constant 0 : index
    %c0_291 = arith.constant 0 : index
    %212 = vector.load %arg6[%c0_290, %c0_291] : memref<4x36xf32, #tpu.memory_space<vmem>>, vector<4x36xf32>
    %c0_292 = arith.constant 0 : index
    %c0_293 = arith.constant 0 : index
    %213 = vector.load %arg7[%c0_292, %c0_293] : memref<4x1xf32, #tpu.memory_space<vmem>>, vector<4x1xf32>
    %c0_294 = arith.constant 0 : index
    %c0_295 = arith.constant 0 : index
    %214 = vector.load %arg16[%c0_294, %c0_295] : memref<36x4xf32, #tpu.memory_space<vmem>>, vector<36x4xf32>
    %cst_296 = arith.constant 0.000000e+00 : f32
    %215 = vector.broadcast %cst_296 : f32 to vector<4x384xf32>
    %c0_297 = arith.constant 0 : index
    %c0_298 = arith.constant 0 : index
    %216 = vector.load %arg27[%c0_297, %c0_298] : memref<4x384xf32, #tpu.memory_space<vmem>>, vector<4x384xf32>
    tpu.vector_store %arg27[%c0_297, %c0_298], %215 {strides = array<i32>} : memref<4x384xf32, #tpu.memory_space<vmem>>, vector<4x384xf32>,
    %c0_299 = arith.constant 0 : index
    %c3_300 = arith.constant 3 : index
    %217 = vector.load %arg27[%c0_299, %c3_300] : memref<4x384xf32, #tpu.memory_space<vmem>>, vector<4x4xf32>
    tpu.vector_store %arg27[%c0_299, %c3_300], %211 {strides = array<i32>} : memref<4x384xf32, #tpu.memory_space<vmem>>, vector<4x4xf32>,
    %c0_301 = arith.constant 0 : index
    %c0_302 = arith.constant 0 : index
    %218 = vector.load %arg27[%c0_301, %c0_302] : memref<4x384xf32, #tpu.memory_space<vmem>>, vector<4x4xf32>
    %c0_303 = arith.constant 0 : index
    %c0_304 = arith.constant 0 : index
    %219 = vector.load %arg28[%c0_303, %c0_304] : memref<196x64xf32, #tpu.memory_space<vmem>>, vector<4x4xf32>
    tpu.vector_store %arg28[%c0_303, %c0_304], %218 {strides = array<i32>} : memref<196x64xf32, #tpu.memory_space<vmem>>, vector<4x4xf32>,
    %c0_305 = arith.constant 0 : index
    %c1_306 = arith.constant 1 : index
    %220 = vector.load %arg27[%c0_305, %c1_306] : memref<4x384xf32, #tpu.memory_space<vmem>>, vector<4x4xf32>
    %c4_307 = arith.constant 4 : index
    %c0_308 = arith.constant 0 : index
    %221 = vector.load %arg28[%c4_307, %c0_308] : memref<196x64xf32, #tpu.memory_space<vmem>>, vector<4x4xf32>
    tpu.vector_store %arg28[%c4_307, %c0_308], %220 {strides = array<i32>} : memref<196x64xf32, #tpu.memory_space<vmem>>, vector<4x4xf32>,
    %c0_309 = arith.constant 0 : index
    %c2_310 = arith.constant 2 : index
    %222 = vector.load %arg27[%c0_309, %c2_310] : memref<4x384xf32, #tpu.memory_space<vmem>>, vector<4x4xf32>
    %c8_311 = arith.constant 8 : index
    %c0_312 = arith.constant 0 : index
    %223 = vector.load %arg28[%c8_311, %c0_312] : memref<196x64xf32, #tpu.memory_space<vmem>>, vector<4x4xf32>
    tpu.vector_store %arg28[%c8_311, %c0_312], %222 {strides = array<i32>} : memref<196x64xf32, #tpu.memory_space<vmem>>, vector<4x4xf32>,
    %c0_313 = arith.constant 0 : index
    %c2_314 = arith.constant 2 : index
    %224 = vector.load %arg27[%c0_313, %c2_314] : memref<4x384xf32, #tpu.memory_space<vmem>>, vector<4x4xf32>
    %c12_315 = arith.constant 12 : index
    %c0_316 = arith.constant 0 : index
    %225 = vector.load %arg28[%c12_315, %c0_316] : memref<196x64xf32, #tpu.memory_space<vmem>>, vector<4x4xf32>
    tpu.vector_store %arg28[%c12_315, %c0_316], %224 {strides = array<i32>} : memref<196x64xf32, #tpu.memory_space<vmem>>, vector<4x4xf32>,
    %c0_317 = arith.constant 0 : index
    %c3_318 = arith.constant 3 : index
    %226 = vector.load %arg27[%c0_317, %c3_318] : memref<4x384xf32, #tpu.memory_space<vmem>>, vector<4x4xf32>
    %c16_319 = arith.constant 16 : index
    %c0_320 = arith.constant 0 : index
    %227 = vector.load %arg28[%c16_319, %c0_320] : memref<196x64xf32, #tpu.memory_space<vmem>>, vector<4x4xf32>
    tpu.vector_store %arg28[%c16_319, %c0_320], %226 {strides = array<i32>} : memref<196x64xf32, #tpu.memory_space<vmem>>, vector<4x4xf32>,
    %c0_321 = arith.constant 0 : index
    %c4_322 = arith.constant 4 : index
    %228 = vector.load %arg27[%c0_321, %c4_322] : memref<4x384xf32, #tpu.memory_space<vmem>>, vector<4x4xf32>
    %c20_323 = arith.constant 20 : index
    %c0_324 = arith.constant 0 : index
    %229 = vector.load %arg28[%c20_323, %c0_324] : memref<196x64xf32, #tpu.memory_space<vmem>>, vector<4x4xf32>
    tpu.vector_store %arg28[%c20_323, %c0_324], %228 {strides = array<i32>} : memref<196x64xf32, #tpu.memory_space<vmem>>, vector<4x4xf32>,
    %c0_325 = arith.constant 0 : index
    %c4_326 = arith.constant 4 : index
    %230 = vector.load %arg27[%c0_325, %c4_326] : memref<4x384xf32, #tpu.memory_space<vmem>>, vector<4x4xf32>
    %c24_327 = arith.constant 24 : index
    %c0_328 = arith.constant 0 : index
    %231 = vector.load %arg28[%c24_327, %c0_328] : memref<196x64xf32, #tpu.memory_space<vmem>>, vector<4x4xf32>
    tpu.vector_store %arg28[%c24_327, %c0_328], %230 {strides = array<i32>} : memref<196x64xf32, #tpu.memory_space<vmem>>, vector<4x4xf32>,
    %c0_329 = arith.constant 0 : index
    %c5_330 = arith.constant 5 : index
    %232 = vector.load %arg27[%c0_329, %c5_330] : memref<4x384xf32, #tpu.memory_space<vmem>>, vector<4x4xf32>
    %c28_331 = arith.constant 28 : index
    %c0_332 = arith.constant 0 : index
    %233 = vector.load %arg28[%c28_331, %c0_332] : memref<196x64xf32, #tpu.memory_space<vmem>>, vector<4x4xf32>
    tpu.vector_store %arg28[%c28_331, %c0_332], %232 {strides = array<i32>} : memref<196x64xf32, #tpu.memory_space<vmem>>, vector<4x4xf32>,
    %c0_333 = arith.constant 0 : index
    %c6_334 = arith.constant 6 : index
    %234 = vector.load %arg27[%c0_333, %c6_334] : memref<4x384xf32, #tpu.memory_space<vmem>>, vector<4x4xf32>
    %c32_335 = arith.constant 32 : index
    %c0_336 = arith.constant 0 : index
    %235 = vector.load %arg28[%c32_335, %c0_336] : memref<196x64xf32, #tpu.memory_space<vmem>>, vector<4x4xf32>
    tpu.vector_store %arg28[%c32_335, %c0_336], %234 {strides = array<i32>} : memref<196x64xf32, #tpu.memory_space<vmem>>, vector<4x4xf32>,
    %c0_337 = arith.constant 0 : index
    %c0_338 = arith.constant 0 : index
    %236 = vector.load %arg28[%c0_337, %c0_338] : memref<196x64xf32, #tpu.memory_space<vmem>>, vector<36x4xf32>
    %237 = arith.mulf %236, %214 : vector<36x4xf32>
    %cst_339 = arith.constant dense<0.000000e+00> : vector<4x4xf32>
    %238 = tpu.matmul %212, %237, %cst_339 {dimension_numbers = #tpu.dot_dimension_numbers<[1], [0], [0], [1], [0, 0, 1, 1], [], []>} : vector<4x36xf32>, vector<36x4xf32>, vector<4x4xf32> -> vector<4x4xf32>
    %239 = vector.broadcast %213 : vector<4x1xf32> to vector<4x4xf32>
    %240 = arith.addf %238, %239 : vector<4x4xf32>
    %cst_340 = arith.constant 0.000000e+00 : f32
    %241 = vector.broadcast %cst_340 : f32 to vector<4x4xf32>
    %242 = arith.maximumf %240, %241 : vector<4x4xf32>
    %c0_341 = arith.constant 0 : index
    %c0_342 = arith.constant 0 : index
    %243 = vector.load %arg8[%c0_341, %c0_342] : memref<4x196xf32, #tpu.memory_space<vmem>>, vector<4x196xf32>
    %c0_343 = arith.constant 0 : index
    %c0_344 = arith.constant 0 : index
    %244 = vector.load %arg9[%c0_343, %c0_344] : memref<4x1xf32, #tpu.memory_space<vmem>>, vector<4x1xf32>
    %c0_345 = arith.constant 0 : index
    %c0_346 = arith.constant 0 : index
    %245 = vector.load %arg14[%c0_345, %c0_346] : memref<196x64xf32, #tpu.memory_space<vmem>>, vector<196x64xf32>
    %cst_347 = arith.constant 0.000000e+00 : f32
    %246 = vector.broadcast %cst_347 : f32 to vector<4x384xf32>
    %c0_348 = arith.constant 0 : index
    %c0_349 = arith.constant 0 : index
    %247 = vector.load %arg27[%c0_348, %c0_349] : memref<4x384xf32, #tpu.memory_space<vmem>>, vector<4x384xf32>
    tpu.vector_store %arg27[%c0_348, %c0_349], %246 {strides = array<i32>} : memref<4x384xf32, #tpu.memory_space<vmem>>, vector<4x384xf32>,
    %c0_350 = arith.constant 0 : index
    %c27_351 = arith.constant 27 : index
    %248 = vector.load %arg27[%c0_350, %c27_351] : memref<4x384xf32, #tpu.memory_space<vmem>>, vector<4x64xf32>
    tpu.vector_store %arg27[%c0_350, %c27_351], %124 {strides = array<i32>} : memref<4x384xf32, #tpu.memory_space<vmem>>, vector<4x64xf32>,
    %c0_352 = arith.constant 0 : index
    %c0_353 = arith.constant 0 : index
    %249 = vector.load %arg27[%c0_352, %c0_353] : memref<4x384xf32, #tpu.memory_space<vmem>>, vector<4x64xf32>
    %c0_354 = arith.constant 0 : index
    %c0_355 = arith.constant 0 : index
    %250 = vector.load %arg28[%c0_354, %c0_355] : memref<196x64xf32, #tpu.memory_space<vmem>>, vector<4x64xf32>
    tpu.vector_store %arg28[%c0_354, %c0_355], %249 {strides = array<i32>} : memref<196x64xf32, #tpu.memory_space<vmem>>, vector<4x64xf32>,
    %c0_356 = arith.constant 0 : index
    %c1_357 = arith.constant 1 : index
    %251 = vector.load %arg27[%c0_356, %c1_357] : memref<4x384xf32, #tpu.memory_space<vmem>>, vector<4x64xf32>
    %c4_358 = arith.constant 4 : index
    %c0_359 = arith.constant 0 : index
    %252 = vector.load %arg28[%c4_358, %c0_359] : memref<196x64xf32, #tpu.memory_space<vmem>>, vector<4x64xf32>
    tpu.vector_store %arg28[%c4_358, %c0_359], %251 {strides = array<i32>} : memref<196x64xf32, #tpu.memory_space<vmem>>, vector<4x64xf32>,
    %c0_360 = arith.constant 0 : index
    %c2_361 = arith.constant 2 : index
    %253 = vector.load %arg27[%c0_360, %c2_361] : memref<4x384xf32, #tpu.memory_space<vmem>>, vector<4x64xf32>
    %c8_362 = arith.constant 8 : index
    %c0_363 = arith.constant 0 : index
    %254 = vector.load %arg28[%c8_362, %c0_363] : memref<196x64xf32, #tpu.memory_space<vmem>>, vector<4x64xf32>
    tpu.vector_store %arg28[%c8_362, %c0_363], %253 {strides = array<i32>} : memref<196x64xf32, #tpu.memory_space<vmem>>, vector<4x64xf32>,
    %c0_364 = arith.constant 0 : index
    %c3_365 = arith.constant 3 : index
    %255 = vector.load %arg27[%c0_364, %c3_365] : memref<4x384xf32, #tpu.memory_space<vmem>>, vector<4x64xf32>
    %c12_366 = arith.constant 12 : index
    %c0_367 = arith.constant 0 : index
    %256 = vector.load %arg28[%c12_366, %c0_367] : memref<196x64xf32, #tpu.memory_space<vmem>>, vector<4x64xf32>
    tpu.vector_store %arg28[%c12_366, %c0_367], %255 {strides = array<i32>} : memref<196x64xf32, #tpu.memory_space<vmem>>, vector<4x64xf32>,
    %c0_368 = arith.constant 0 : index
    %c4_369 = arith.constant 4 : index
    %257 = vector.load %arg27[%c0_368, %c4_369] : memref<4x384xf32, #tpu.memory_space<vmem>>, vector<4x64xf32>
    %c16_370 = arith.constant 16 : index
    %c0_371 = arith.constant 0 : index
    %258 = vector.load %arg28[%c16_370, %c0_371] : memref<196x64xf32, #tpu.memory_space<vmem>>, vector<4x64xf32>
    tpu.vector_store %arg28[%c16_370, %c0_371], %257 {strides = array<i32>} : memref<196x64xf32, #tpu.memory_space<vmem>>, vector<4x64xf32>,
    %c0_372 = arith.constant 0 : index
    %c5_373 = arith.constant 5 : index
    %259 = vector.load %arg27[%c0_372, %c5_373] : memref<4x384xf32, #tpu.memory_space<vmem>>, vector<4x64xf32>
    %c20_374 = arith.constant 20 : index
    %c0_375 = arith.constant 0 : index
    %260 = vector.load %arg28[%c20_374, %c0_375] : memref<196x64xf32, #tpu.memory_space<vmem>>, vector<4x64xf32>
    tpu.vector_store %arg28[%c20_374, %c0_375], %259 {strides = array<i32>} : memref<196x64xf32, #tpu.memory_space<vmem>>, vector<4x64xf32>,
    %c0_376 = arith.constant 0 : index
    %c6_377 = arith.constant 6 : index
    %261 = vector.load %arg27[%c0_376, %c6_377] : memref<4x384xf32, #tpu.memory_space<vmem>>, vector<4x64xf32>
    %c24_378 = arith.constant 24 : index
    %c0_379 = arith.constant 0 : index
    %262 = vector.load %arg28[%c24_378, %c0_379] : memref<196x64xf32, #tpu.memory_space<vmem>>, vector<4x64xf32>
    tpu.vector_store %arg28[%c24_378, %c0_379], %261 {strides = array<i32>} : memref<196x64xf32, #tpu.memory_space<vmem>>, vector<4x64xf32>,
    %c0_380 = arith.constant 0 : index
    %c8_381 = arith.constant 8 : index
    %263 = vector.load %arg27[%c0_380, %c8_381] : memref<4x384xf32, #tpu.memory_space<vmem>>, vector<4x64xf32>
    %c28_382 = arith.constant 28 : index
    %c0_383 = arith.constant 0 : index
    %264 = vector.load %arg28[%c28_382, %c0_383] : memref<196x64xf32, #tpu.memory_space<vmem>>, vector<4x64xf32>
    tpu.vector_store %arg28[%c28_382, %c0_383], %263 {strides = array<i32>} : memref<196x64xf32, #tpu.memory_space<vmem>>, vector<4x64xf32>,
    %c0_384 = arith.constant 0 : index
    %c9_385 = arith.constant 9 : index
    %265 = vector.load %arg27[%c0_384, %c9_385] : memref<4x384xf32, #tpu.memory_space<vmem>>, vector<4x64xf32>
    %c32_386 = arith.constant 32 : index
    %c0_387 = arith.constant 0 : index
    %266 = vector.load %arg28[%c32_386, %c0_387] : memref<196x64xf32, #tpu.memory_space<vmem>>, vector<4x64xf32>
    tpu.vector_store %arg28[%c32_386, %c0_387], %265 {strides = array<i32>} : memref<196x64xf32, #tpu.memory_space<vmem>>, vector<4x64xf32>,
    %c0_388 = arith.constant 0 : index
    %c10_389 = arith.constant 10 : index
    %267 = vector.load %arg27[%c0_388, %c10_389] : memref<4x384xf32, #tpu.memory_space<vmem>>, vector<4x64xf32>
    %c36_390 = arith.constant 36 : index
    %c0_391 = arith.constant 0 : index
    %268 = vector.load %arg28[%c36_390, %c0_391] : memref<196x64xf32, #tpu.memory_space<vmem>>, vector<4x64xf32>
    tpu.vector_store %arg28[%c36_390, %c0_391], %267 {strides = array<i32>} : memref<196x64xf32, #tpu.memory_space<vmem>>, vector<4x64xf32>,
    %c0_392 = arith.constant 0 : index
    %c11_393 = arith.constant 11 : index
    %269 = vector.load %arg27[%c0_392, %c11_393] : memref<4x384xf32, #tpu.memory_space<vmem>>, vector<4x64xf32>
    %c40_394 = arith.constant 40 : index
    %c0_395 = arith.constant 0 : index
    %270 = vector.load %arg28[%c40_394, %c0_395] : memref<196x64xf32, #tpu.memory_space<vmem>>, vector<4x64xf32>
    tpu.vector_store %arg28[%c40_394, %c0_395], %269 {strides = array<i32>} : memref<196x64xf32, #tpu.memory_space<vmem>>, vector<4x64xf32>,
    %c0_396 = arith.constant 0 : index
    %c12_397 = arith.constant 12 : index
    %271 = vector.load %arg27[%c0_396, %c12_397] : memref<4x384xf32, #tpu.memory_space<vmem>>, vector<4x64xf32>
    %c44_398 = arith.constant 44 : index
    %c0_399 = arith.constant 0 : index
    %272 = vector.load %arg28[%c44_398, %c0_399] : memref<196x64xf32, #tpu.memory_space<vmem>>, vector<4x64xf32>
    tpu.vector_store %arg28[%c44_398, %c0_399], %271 {strides = array<i32>} : memref<196x64xf32, #tpu.memory_space<vmem>>, vector<4x64xf32>,
    %c0_400 = arith.constant 0 : index
    %c13_401 = arith.constant 13 : index
    %273 = vector.load %arg27[%c0_400, %c13_401] : memref<4x384xf32, #tpu.memory_space<vmem>>, vector<4x64xf32>
    %c48_402 = arith.constant 48 : index
    %c0_403 = arith.constant 0 : index
    %274 = vector.load %arg28[%c48_402, %c0_403] : memref<196x64xf32, #tpu.memory_space<vmem>>, vector<4x64xf32>
    tpu.vector_store %arg28[%c48_402, %c0_403], %273 {strides = array<i32>} : memref<196x64xf32, #tpu.memory_space<vmem>>, vector<4x64xf32>,
    %c0_404 = arith.constant 0 : index
    %c14_405 = arith.constant 14 : index
    %275 = vector.load %arg27[%c0_404, %c14_405] : memref<4x384xf32, #tpu.memory_space<vmem>>, vector<4x64xf32>
    %c52_406 = arith.constant 52 : index
    %c0_407 = arith.constant 0 : index
    %276 = vector.load %arg28[%c52_406, %c0_407] : memref<196x64xf32, #tpu.memory_space<vmem>>, vector<4x64xf32>
    tpu.vector_store %arg28[%c52_406, %c0_407], %275 {strides = array<i32>} : memref<196x64xf32, #tpu.memory_space<vmem>>, vector<4x64xf32>,
    %c0_408 = arith.constant 0 : index
    %c16_409 = arith.constant 16 : index
    %277 = vector.load %arg27[%c0_408, %c16_409] : memref<4x384xf32, #tpu.memory_space<vmem>>, vector<4x64xf32>
    %c56_410 = arith.constant 56 : index
    %c0_411 = arith.constant 0 : index
    %278 = vector.load %arg28[%c56_410, %c0_411] : memref<196x64xf32, #tpu.memory_space<vmem>>, vector<4x64xf32>
    tpu.vector_store %arg28[%c56_410, %c0_411], %277 {strides = array<i32>} : memref<196x64xf32, #tpu.memory_space<vmem>>, vector<4x64xf32>,
    %c0_412 = arith.constant 0 : index
    %c17_413 = arith.constant 17 : index
    %279 = vector.load %arg27[%c0_412, %c17_413] : memref<4x384xf32, #tpu.memory_space<vmem>>, vector<4x64xf32>
    %c60_414 = arith.constant 60 : index
    %c0_415 = arith.constant 0 : index
    %280 = vector.load %arg28[%c60_414, %c0_415] : memref<196x64xf32, #tpu.memory_space<vmem>>, vector<4x64xf32>
    tpu.vector_store %arg28[%c60_414, %c0_415], %279 {strides = array<i32>} : memref<196x64xf32, #tpu.memory_space<vmem>>, vector<4x64xf32>,
    %c0_416 = arith.constant 0 : index
    %c18_417 = arith.constant 18 : index
    %281 = vector.load %arg27[%c0_416, %c18_417] : memref<4x384xf32, #tpu.memory_space<vmem>>, vector<4x64xf32>
    %c64_418 = arith.constant 64 : index
    %c0_419 = arith.constant 0 : index
    %282 = vector.load %arg28[%c64_418, %c0_419] : memref<196x64xf32, #tpu.memory_space<vmem>>, vector<4x64xf32>
    tpu.vector_store %arg28[%c64_418, %c0_419], %281 {strides = array<i32>} : memref<196x64xf32, #tpu.memory_space<vmem>>, vector<4x64xf32>,
    %c0_420 = arith.constant 0 : index
    %c19_421 = arith.constant 19 : index
    %283 = vector.load %arg27[%c0_420, %c19_421] : memref<4x384xf32, #tpu.memory_space<vmem>>, vector<4x64xf32>
    %c68_422 = arith.constant 68 : index
    %c0_423 = arith.constant 0 : index
    %284 = vector.load %arg28[%c68_422, %c0_423] : memref<196x64xf32, #tpu.memory_space<vmem>>, vector<4x64xf32>
    tpu.vector_store %arg28[%c68_422, %c0_423], %283 {strides = array<i32>} : memref<196x64xf32, #tpu.memory_space<vmem>>, vector<4x64xf32>,
    %c0_424 = arith.constant 0 : index
    %c20_425 = arith.constant 20 : index
    %285 = vector.load %arg27[%c0_424, %c20_425] : memref<4x384xf32, #tpu.memory_space<vmem>>, vector<4x64xf32>
    %c72_426 = arith.constant 72 : index
    %c0_427 = arith.constant 0 : index
    %286 = vector.load %arg28[%c72_426, %c0_427] : memref<196x64xf32, #tpu.memory_space<vmem>>, vector<4x64xf32>
    tpu.vector_store %arg28[%c72_426, %c0_427], %285 {strides = array<i32>} : memref<196x64xf32, #tpu.memory_space<vmem>>, vector<4x64xf32>,
    %c0_428 = arith.constant 0 : index
    %c21_429 = arith.constant 21 : index
    %287 = vector.load %arg27[%c0_428, %c21_429] : memref<4x384xf32, #tpu.memory_space<vmem>>, vector<4x64xf32>
    %c76_430 = arith.constant 76 : index
    %c0_431 = arith.constant 0 : index
    %288 = vector.load %arg28[%c76_430, %c0_431] : memref<196x64xf32, #tpu.memory_space<vmem>>, vector<4x64xf32>
    tpu.vector_store %arg28[%c76_430, %c0_431], %287 {strides = array<i32>} : memref<196x64xf32, #tpu.memory_space<vmem>>, vector<4x64xf32>,
    %c0_432 = arith.constant 0 : index
    %c22_433 = arith.constant 22 : index
    %289 = vector.load %arg27[%c0_432, %c22_433] : memref<4x384xf32, #tpu.memory_space<vmem>>, vector<4x64xf32>
    %c80_434 = arith.constant 80 : index
    %c0_435 = arith.constant 0 : index
    %290 = vector.load %arg28[%c80_434, %c0_435] : memref<196x64xf32, #tpu.memory_space<vmem>>, vector<4x64xf32>
    tpu.vector_store %arg28[%c80_434, %c0_435], %289 {strides = array<i32>} : memref<196x64xf32, #tpu.memory_space<vmem>>, vector<4x64xf32>,
    %c0_436 = arith.constant 0 : index
    %c24_437 = arith.constant 24 : index
    %291 = vector.load %arg27[%c0_436, %c24_437] : memref<4x384xf32, #tpu.memory_space<vmem>>, vector<4x64xf32>
    %c84_438 = arith.constant 84 : index
    %c0_439 = arith.constant 0 : index
    %292 = vector.load %arg28[%c84_438, %c0_439] : memref<196x64xf32, #tpu.memory_space<vmem>>, vector<4x64xf32>
    tpu.vector_store %arg28[%c84_438, %c0_439], %291 {strides = array<i32>} : memref<196x64xf32, #tpu.memory_space<vmem>>, vector<4x64xf32>,
    %c0_440 = arith.constant 0 : index
    %c25_441 = arith.constant 25 : index
    %293 = vector.load %arg27[%c0_440, %c25_441] : memref<4x384xf32, #tpu.memory_space<vmem>>, vector<4x64xf32>
    %c88_442 = arith.constant 88 : index
    %c0_443 = arith.constant 0 : index
    %294 = vector.load %arg28[%c88_442, %c0_443] : memref<196x64xf32, #tpu.memory_space<vmem>>, vector<4x64xf32>
    tpu.vector_store %arg28[%c88_442, %c0_443], %293 {strides = array<i32>} : memref<196x64xf32, #tpu.memory_space<vmem>>, vector<4x64xf32>,
    %c0_444 = arith.constant 0 : index
    %c26_445 = arith.constant 26 : index
    %295 = vector.load %arg27[%c0_444, %c26_445] : memref<4x384xf32, #tpu.memory_space<vmem>>, vector<4x64xf32>
    %c92_446 = arith.constant 92 : index
    %c0_447 = arith.constant 0 : index
    %296 = vector.load %arg28[%c92_446, %c0_447] : memref<196x64xf32, #tpu.memory_space<vmem>>, vector<4x64xf32>
    tpu.vector_store %arg28[%c92_446, %c0_447], %295 {strides = array<i32>} : memref<196x64xf32, #tpu.memory_space<vmem>>, vector<4x64xf32>,
    %c0_448 = arith.constant 0 : index
    %c27_449 = arith.constant 27 : index
    %297 = vector.load %arg27[%c0_448, %c27_449] : memref<4x384xf32, #tpu.memory_space<vmem>>, vector<4x64xf32>
    %c96_450 = arith.constant 96 : index
    %c0_451 = arith.constant 0 : index
    %298 = vector.load %arg28[%c96_450, %c0_451] : memref<196x64xf32, #tpu.memory_space<vmem>>, vector<4x64xf32>
    tpu.vector_store %arg28[%c96_450, %c0_451], %297 {strides = array<i32>} : memref<196x64xf32, #tpu.memory_space<vmem>>, vector<4x64xf32>,
    %c0_452 = arith.constant 0 : index
    %c28_453 = arith.constant 28 : index
    %299 = vector.load %arg27[%c0_452, %c28_453] : memref<4x384xf32, #tpu.memory_space<vmem>>, vector<4x64xf32>
    %c100_454 = arith.constant 100 : index
    %c0_455 = arith.constant 0 : index
    %300 = vector.load %arg28[%c100_454, %c0_455] : memref<196x64xf32, #tpu.memory_space<vmem>>, vector<4x64xf32>
    tpu.vector_store %arg28[%c100_454, %c0_455], %299 {strides = array<i32>} : memref<196x64xf32, #tpu.memory_space<vmem>>, vector<4x64xf32>,
    %c0_456 = arith.constant 0 : index
    %c29_457 = arith.constant 29 : index
    %301 = vector.load %arg27[%c0_456, %c29_457] : memref<4x384xf32, #tpu.memory_space<vmem>>, vector<4x64xf32>
    %c104_458 = arith.constant 104 : index
    %c0_459 = arith.constant 0 : index
    %302 = vector.load %arg28[%c104_458, %c0_459] : memref<196x64xf32, #tpu.memory_space<vmem>>, vector<4x64xf32>
    tpu.vector_store %arg28[%c104_458, %c0_459], %301 {strides = array<i32>} : memref<196x64xf32, #tpu.memory_space<vmem>>, vector<4x64xf32>,
    %c0_460 = arith.constant 0 : index
    %c30_461 = arith.constant 30 : index
    %303 = vector.load %arg27[%c0_460, %c30_461] : memref<4x384xf32, #tpu.memory_space<vmem>>, vector<4x64xf32>
    %c108_462 = arith.constant 108 : index
    %c0_463 = arith.constant 0 : index
    %304 = vector.load %arg28[%c108_462, %c0_463] : memref<196x64xf32, #tpu.memory_space<vmem>>, vector<4x64xf32>
    tpu.vector_store %arg28[%c108_462, %c0_463], %303 {strides = array<i32>} : memref<196x64xf32, #tpu.memory_space<vmem>>, vector<4x64xf32>,
    %c0_464 = arith.constant 0 : index
    %c32_465 = arith.constant 32 : index
    %305 = vector.load %arg27[%c0_464, %c32_465] : memref<4x384xf32, #tpu.memory_space<vmem>>, vector<4x64xf32>
    %c112_466 = arith.constant 112 : index
    %c0_467 = arith.constant 0 : index
    %306 = vector.load %arg28[%c112_466, %c0_467] : memref<196x64xf32, #tpu.memory_space<vmem>>, vector<4x64xf32>
    tpu.vector_store %arg28[%c112_466, %c0_467], %305 {strides = array<i32>} : memref<196x64xf32, #tpu.memory_space<vmem>>, vector<4x64xf32>,
    %c0_468 = arith.constant 0 : index
    %c33_469 = arith.constant 33 : index
    %307 = vector.load %arg27[%c0_468, %c33_469] : memref<4x384xf32, #tpu.memory_space<vmem>>, vector<4x64xf32>
    %c116_470 = arith.constant 116 : index
    %c0_471 = arith.constant 0 : index
    %308 = vector.load %arg28[%c116_470, %c0_471] : memref<196x64xf32, #tpu.memory_space<vmem>>, vector<4x64xf32>
    tpu.vector_store %arg28[%c116_470, %c0_471], %307 {strides = array<i32>} : memref<196x64xf32, #tpu.memory_space<vmem>>, vector<4x64xf32>,
    %c0_472 = arith.constant 0 : index
    %c34_473 = arith.constant 34 : index
    %309 = vector.load %arg27[%c0_472, %c34_473] : memref<4x384xf32, #tpu.memory_space<vmem>>, vector<4x64xf32>
    %c120_474 = arith.constant 120 : index
    %c0_475 = arith.constant 0 : index
    %310 = vector.load %arg28[%c120_474, %c0_475] : memref<196x64xf32, #tpu.memory_space<vmem>>, vector<4x64xf32>
    tpu.vector_store %arg28[%c120_474, %c0_475], %309 {strides = array<i32>} : memref<196x64xf32, #tpu.memory_space<vmem>>, vector<4x64xf32>,
    %c0_476 = arith.constant 0 : index
    %c35_477 = arith.constant 35 : index
    %311 = vector.load %arg27[%c0_476, %c35_477] : memref<4x384xf32, #tpu.memory_space<vmem>>, vector<4x64xf32>
    %c124_478 = arith.constant 124 : index
    %c0_479 = arith.constant 0 : index
    %312 = vector.load %arg28[%c124_478, %c0_479] : memref<196x64xf32, #tpu.memory_space<vmem>>, vector<4x64xf32>
    tpu.vector_store %arg28[%c124_478, %c0_479], %311 {strides = array<i32>} : memref<196x64xf32, #tpu.memory_space<vmem>>, vector<4x64xf32>,
    %c0_480 = arith.constant 0 : index
    %c36_481 = arith.constant 36 : index
    %313 = vector.load %arg27[%c0_480, %c36_481] : memref<4x384xf32, #tpu.memory_space<vmem>>, vector<4x64xf32>
    %c128_482 = arith.constant 128 : index
    %c0_483 = arith.constant 0 : index
    %314 = vector.load %arg28[%c128_482, %c0_483] : memref<196x64xf32, #tpu.memory_space<vmem>>, vector<4x64xf32>
    tpu.vector_store %arg28[%c128_482, %c0_483], %313 {strides = array<i32>} : memref<196x64xf32, #tpu.memory_space<vmem>>, vector<4x64xf32>,
    %c0_484 = arith.constant 0 : index
    %c37_485 = arith.constant 37 : index
    %315 = vector.load %arg27[%c0_484, %c37_485] : memref<4x384xf32, #tpu.memory_space<vmem>>, vector<4x64xf32>
    %c132_486 = arith.constant 132 : index
    %c0_487 = arith.constant 0 : index
    %316 = vector.load %arg28[%c132_486, %c0_487] : memref<196x64xf32, #tpu.memory_space<vmem>>, vector<4x64xf32>
    tpu.vector_store %arg28[%c132_486, %c0_487], %315 {strides = array<i32>} : memref<196x64xf32, #tpu.memory_space<vmem>>, vector<4x64xf32>,
    %c0_488 = arith.constant 0 : index
    %c38_489 = arith.constant 38 : index
    %317 = vector.load %arg27[%c0_488, %c38_489] : memref<4x384xf32, #tpu.memory_space<vmem>>, vector<4x64xf32>
    %c136_490 = arith.constant 136 : index
    %c0_491 = arith.constant 0 : index
    %318 = vector.load %arg28[%c136_490, %c0_491] : memref<196x64xf32, #tpu.memory_space<vmem>>, vector<4x64xf32>
    tpu.vector_store %arg28[%c136_490, %c0_491], %317 {strides = array<i32>} : memref<196x64xf32, #tpu.memory_space<vmem>>, vector<4x64xf32>,
    %c0_492 = arith.constant 0 : index
    %c40_493 = arith.constant 40 : index
    %319 = vector.load %arg27[%c0_492, %c40_493] : memref<4x384xf32, #tpu.memory_space<vmem>>, vector<4x64xf32>
    %c140_494 = arith.constant 140 : index
    %c0_495 = arith.constant 0 : index
    %320 = vector.load %arg28[%c140_494, %c0_495] : memref<196x64xf32, #tpu.memory_space<vmem>>, vector<4x64xf32>
    tpu.vector_store %arg28[%c140_494, %c0_495], %319 {strides = array<i32>} : memref<196x64xf32, #tpu.memory_space<vmem>>, vector<4x64xf32>,
    %c0_496 = arith.constant 0 : index
    %c41_497 = arith.constant 41 : index
    %321 = vector.load %arg27[%c0_496, %c41_497] : memref<4x384xf32, #tpu.memory_space<vmem>>, vector<4x64xf32>
    %c144_498 = arith.constant 144 : index
    %c0_499 = arith.constant 0 : index
    %322 = vector.load %arg28[%c144_498, %c0_499] : memref<196x64xf32, #tpu.memory_space<vmem>>, vector<4x64xf32>
    tpu.vector_store %arg28[%c144_498, %c0_499], %321 {strides = array<i32>} : memref<196x64xf32, #tpu.memory_space<vmem>>, vector<4x64xf32>,
    %c0_500 = arith.constant 0 : index
    %c42_501 = arith.constant 42 : index
    %323 = vector.load %arg27[%c0_500, %c42_501] : memref<4x384xf32, #tpu.memory_space<vmem>>, vector<4x64xf32>
    %c148_502 = arith.constant 148 : index
    %c0_503 = arith.constant 0 : index
    %324 = vector.load %arg28[%c148_502, %c0_503] : memref<196x64xf32, #tpu.memory_space<vmem>>, vector<4x64xf32>
    tpu.vector_store %arg28[%c148_502, %c0_503], %323 {strides = array<i32>} : memref<196x64xf32, #tpu.memory_space<vmem>>, vector<4x64xf32>,
    %c0_504 = arith.constant 0 : index
    %c43_505 = arith.constant 43 : index
    %325 = vector.load %arg27[%c0_504, %c43_505] : memref<4x384xf32, #tpu.memory_space<vmem>>, vector<4x64xf32>
    %c152_506 = arith.constant 152 : index
    %c0_507 = arith.constant 0 : index
    %326 = vector.load %arg28[%c152_506, %c0_507] : memref<196x64xf32, #tpu.memory_space<vmem>>, vector<4x64xf32>
    tpu.vector_store %arg28[%c152_506, %c0_507], %325 {strides = array<i32>} : memref<196x64xf32, #tpu.memory_space<vmem>>, vector<4x64xf32>,
    %c0_508 = arith.constant 0 : index
    %c44_509 = arith.constant 44 : index
    %327 = vector.load %arg27[%c0_508, %c44_509] : memref<4x384xf32, #tpu.memory_space<vmem>>, vector<4x64xf32>
    %c156_510 = arith.constant 156 : index
    %c0_511 = arith.constant 0 : index
    %328 = vector.load %arg28[%c156_510, %c0_511] : memref<196x64xf32, #tpu.memory_space<vmem>>, vector<4x64xf32>
    tpu.vector_store %arg28[%c156_510, %c0_511], %327 {strides = array<i32>} : memref<196x64xf32, #tpu.memory_space<vmem>>, vector<4x64xf32>,
    %c0_512 = arith.constant 0 : index
    %c45_513 = arith.constant 45 : index
    %329 = vector.load %arg27[%c0_512, %c45_513] : memref<4x384xf32, #tpu.memory_space<vmem>>, vector<4x64xf32>
    %c160_514 = arith.constant 160 : index
    %c0_515 = arith.constant 0 : index
    %330 = vector.load %arg28[%c160_514, %c0_515] : memref<196x64xf32, #tpu.memory_space<vmem>>, vector<4x64xf32>
    tpu.vector_store %arg28[%c160_514, %c0_515], %329 {strides = array<i32>} : memref<196x64xf32, #tpu.memory_space<vmem>>, vector<4x64xf32>,
    %c0_516 = arith.constant 0 : index
    %c46_517 = arith.constant 46 : index
    %331 = vector.load %arg27[%c0_516, %c46_517] : memref<4x384xf32, #tpu.memory_space<vmem>>, vector<4x64xf32>
    %c164_518 = arith.constant 164 : index
    %c0_519 = arith.constant 0 : index
    %332 = vector.load %arg28[%c164_518, %c0_519] : memref<196x64xf32, #tpu.memory_space<vmem>>, vector<4x64xf32>
    tpu.vector_store %arg28[%c164_518, %c0_519], %331 {strides = array<i32>} : memref<196x64xf32, #tpu.memory_space<vmem>>, vector<4x64xf32>,
    %c0_520 = arith.constant 0 : index
    %c48_521 = arith.constant 48 : index
    %333 = vector.load %arg27[%c0_520, %c48_521] : memref<4x384xf32, #tpu.memory_space<vmem>>, vector<4x64xf32>
    %c168_522 = arith.constant 168 : index
    %c0_523 = arith.constant 0 : index
    %334 = vector.load %arg28[%c168_522, %c0_523] : memref<196x64xf32, #tpu.memory_space<vmem>>, vector<4x64xf32>
    tpu.vector_store %arg28[%c168_522, %c0_523], %333 {strides = array<i32>} : memref<196x64xf32, #tpu.memory_space<vmem>>, vector<4x64xf32>,
    %c0_524 = arith.constant 0 : index
    %c49_525 = arith.constant 49 : index
    %335 = vector.load %arg27[%c0_524, %c49_525] : memref<4x384xf32, #tpu.memory_space<vmem>>, vector<4x64xf32>
    %c172_526 = arith.constant 172 : index
    %c0_527 = arith.constant 0 : index
    %336 = vector.load %arg28[%c172_526, %c0_527] : memref<196x64xf32, #tpu.memory_space<vmem>>, vector<4x64xf32>
    tpu.vector_store %arg28[%c172_526, %c0_527], %335 {strides = array<i32>} : memref<196x64xf32, #tpu.memory_space<vmem>>, vector<4x64xf32>,
    %c0_528 = arith.constant 0 : index
    %c50_529 = arith.constant 50 : index
    %337 = vector.load %arg27[%c0_528, %c50_529] : memref<4x384xf32, #tpu.memory_space<vmem>>, vector<4x64xf32>
    %c176_530 = arith.constant 176 : index
    %c0_531 = arith.constant 0 : index
    %338 = vector.load %arg28[%c176_530, %c0_531] : memref<196x64xf32, #tpu.memory_space<vmem>>, vector<4x64xf32>
    tpu.vector_store %arg28[%c176_530, %c0_531], %337 {strides = array<i32>} : memref<196x64xf32, #tpu.memory_space<vmem>>, vector<4x64xf32>,
    %c0_532 = arith.constant 0 : index
    %c51_533 = arith.constant 51 : index
    %339 = vector.load %arg27[%c0_532, %c51_533] : memref<4x384xf32, #tpu.memory_space<vmem>>, vector<4x64xf32>
    %c180_534 = arith.constant 180 : index
    %c0_535 = arith.constant 0 : index
    %340 = vector.load %arg28[%c180_534, %c0_535] : memref<196x64xf32, #tpu.memory_space<vmem>>, vector<4x64xf32>
    tpu.vector_store %arg28[%c180_534, %c0_535], %339 {strides = array<i32>} : memref<196x64xf32, #tpu.memory_space<vmem>>, vector<4x64xf32>,
    %c0_536 = arith.constant 0 : index
    %c52_537 = arith.constant 52 : index
    %341 = vector.load %arg27[%c0_536, %c52_537] : memref<4x384xf32, #tpu.memory_space<vmem>>, vector<4x64xf32>
    %c184_538 = arith.constant 184 : index
    %c0_539 = arith.constant 0 : index
    %342 = vector.load %arg28[%c184_538, %c0_539] : memref<196x64xf32, #tpu.memory_space<vmem>>, vector<4x64xf32>
    tpu.vector_store %arg28[%c184_538, %c0_539], %341 {strides = array<i32>} : memref<196x64xf32, #tpu.memory_space<vmem>>, vector<4x64xf32>,
    %c0_540 = arith.constant 0 : index
    %c53_541 = arith.constant 53 : index
    %343 = vector.load %arg27[%c0_540, %c53_541] : memref<4x384xf32, #tpu.memory_space<vmem>>, vector<4x64xf32>
    %c188_542 = arith.constant 188 : index
    %c0_543 = arith.constant 0 : index
    %344 = vector.load %arg28[%c188_542, %c0_543] : memref<196x64xf32, #tpu.memory_space<vmem>>, vector<4x64xf32>
    tpu.vector_store %arg28[%c188_542, %c0_543], %343 {strides = array<i32>} : memref<196x64xf32, #tpu.memory_space<vmem>>, vector<4x64xf32>,
    %c0_544 = arith.constant 0 : index
    %c54_545 = arith.constant 54 : index
    %345 = vector.load %arg27[%c0_544, %c54_545] : memref<4x384xf32, #tpu.memory_space<vmem>>, vector<4x64xf32>
    %c192_546 = arith.constant 192 : index
    %c0_547 = arith.constant 0 : index
    %346 = vector.load %arg28[%c192_546, %c0_547] : memref<196x64xf32, #tpu.memory_space<vmem>>, vector<4x64xf32>
    tpu.vector_store %arg28[%c192_546, %c0_547], %345 {strides = array<i32>} : memref<196x64xf32, #tpu.memory_space<vmem>>, vector<4x64xf32>,
    %c0_548 = arith.constant 0 : index
    %c0_549 = arith.constant 0 : index
    %347 = vector.load %arg28[%c0_548, %c0_549] : memref<196x64xf32, #tpu.memory_space<vmem>>, vector<196x64xf32>
    %348 = arith.mulf %347, %245 : vector<196x64xf32>
    %cst_550 = arith.constant dense<0.000000e+00> : vector<4x64xf32>
    %349 = tpu.matmul %243, %348, %cst_550 {dimension_numbers = #tpu.dot_dimension_numbers<[1], [0], [0], [1], [0, 0, 1, 1], [], []>} : vector<4x196xf32>, vector<196x64xf32>, vector<4x64xf32> -> vector<4x64xf32>
    %350 = vector.broadcast %244 : vector<4x1xf32> to vector<4x64xf32>
    %351 = arith.addf %349, %350 : vector<4x64xf32>
    %cst_551 = arith.constant 0.000000e+00 : f32
    %352 = vector.broadcast %cst_551 : f32 to vector<4x64xf32>
    %353 = arith.maximumf %351, %352 : vector<4x64xf32>
    %c0_552 = arith.constant 0 : index
    %c0_553 = arith.constant 0 : index
    %354 = vector.load %arg10[%c0_552, %c0_553] : memref<4x100xf32, #tpu.memory_space<vmem>>, vector<4x100xf32>
    %c0_554 = arith.constant 0 : index
    %c0_555 = arith.constant 0 : index
    %355 = vector.load %arg11[%c0_554, %c0_555] : memref<4x1xf32, #tpu.memory_space<vmem>>, vector<4x1xf32>
    %c0_556 = arith.constant 0 : index
    %c0_557 = arith.constant 0 : index
    %356 = vector.load %arg15[%c0_556, %c0_557] : memref<100x16xf32, #tpu.memory_space<vmem>>, vector<100x16xf32>
    %cst_558 = arith.constant 0.000000e+00 : f32
    %357 = vector.broadcast %cst_558 : f32 to vector<4x384xf32>
    %c0_559 = arith.constant 0 : index
    %c0_560 = arith.constant 0 : index
    %358 = vector.load %arg27[%c0_559, %c0_560] : memref<4x384xf32, #tpu.memory_space<vmem>>, vector<4x384xf32>
    tpu.vector_store %arg27[%c0_559, %c0_560], %357 {strides = array<i32>} : memref<4x384xf32, #tpu.memory_space<vmem>>, vector<4x384xf32>,
    %c0_561 = arith.constant 0 : index
    %c10_562 = arith.constant 10 : index
    %359 = vector.load %arg27[%c0_561, %c10_562] : memref<4x384xf32, #tpu.memory_space<vmem>>, vector<4x16xf32>
    tpu.vector_store %arg27[%c0_561, %c10_562], %199 {strides = array<i32>} : memref<4x384xf32, #tpu.memory_space<vmem>>, vector<4x16xf32>,
    %c0_563 = arith.constant 0 : index
    %c0_564 = arith.constant 0 : index
    %360 = vector.load %arg27[%c0_563, %c0_564] : memref<4x384xf32, #tpu.memory_space<vmem>>, vector<4x16xf32>
    %c0_565 = arith.constant 0 : index
    %c0_566 = arith.constant 0 : index
    %361 = vector.load %arg28[%c0_565, %c0_566] : memref<196x64xf32, #tpu.memory_space<vmem>>, vector<4x16xf32>
    tpu.vector_store %arg28[%c0_565, %c0_566], %360 {strides = array<i32>} : memref<196x64xf32, #tpu.memory_space<vmem>>, vector<4x16xf32>,
    %c0_567 = arith.constant 0 : index
    %c1_568 = arith.constant 1 : index
    %362 = vector.load %arg27[%c0_567, %c1_568] : memref<4x384xf32, #tpu.memory_space<vmem>>, vector<4x16xf32>
    %c4_569 = arith.constant 4 : index
    %c0_570 = arith.constant 0 : index
    %363 = vector.load %arg28[%c4_569, %c0_570] : memref<196x64xf32, #tpu.memory_space<vmem>>, vector<4x16xf32>
    tpu.vector_store %arg28[%c4_569, %c0_570], %362 {strides = array<i32>} : memref<196x64xf32, #tpu.memory_space<vmem>>, vector<4x16xf32>,
    %c0_571 = arith.constant 0 : index
    %c2_572 = arith.constant 2 : index
    %364 = vector.load %arg27[%c0_571, %c2_572] : memref<4x384xf32, #tpu.memory_space<vmem>>, vector<4x16xf32>
    %c8_573 = arith.constant 8 : index
    %c0_574 = arith.constant 0 : index
    %365 = vector.load %arg28[%c8_573, %c0_574] : memref<196x64xf32, #tpu.memory_space<vmem>>, vector<4x16xf32>
    tpu.vector_store %arg28[%c8_573, %c0_574], %364 {strides = array<i32>} : memref<196x64xf32, #tpu.memory_space<vmem>>, vector<4x16xf32>,
    %c0_575 = arith.constant 0 : index
    %c3_576 = arith.constant 3 : index
    %366 = vector.load %arg27[%c0_575, %c3_576] : memref<4x384xf32, #tpu.memory_space<vmem>>, vector<4x16xf32>
    %c12_577 = arith.constant 12 : index
    %c0_578 = arith.constant 0 : index
    %367 = vector.load %arg28[%c12_577, %c0_578] : memref<196x64xf32, #tpu.memory_space<vmem>>, vector<4x16xf32>
    tpu.vector_store %arg28[%c12_577, %c0_578], %366 {strides = array<i32>} : memref<196x64xf32, #tpu.memory_space<vmem>>, vector<4x16xf32>,
    %c0_579 = arith.constant 0 : index
    %c4_580 = arith.constant 4 : index
    %368 = vector.load %arg27[%c0_579, %c4_580] : memref<4x384xf32, #tpu.memory_space<vmem>>, vector<4x16xf32>
    %c16_581 = arith.constant 16 : index
    %c0_582 = arith.constant 0 : index
    %369 = vector.load %arg28[%c16_581, %c0_582] : memref<196x64xf32, #tpu.memory_space<vmem>>, vector<4x16xf32>
    tpu.vector_store %arg28[%c16_581, %c0_582], %368 {strides = array<i32>} : memref<196x64xf32, #tpu.memory_space<vmem>>, vector<4x16xf32>,
    %c0_583 = arith.constant 0 : index
    %c4_584 = arith.constant 4 : index
    %370 = vector.load %arg27[%c0_583, %c4_584] : memref<4x384xf32, #tpu.memory_space<vmem>>, vector<4x16xf32>
    %c20_585 = arith.constant 20 : index
    %c0_586 = arith.constant 0 : index
    %371 = vector.load %arg28[%c20_585, %c0_586] : memref<196x64xf32, #tpu.memory_space<vmem>>, vector<4x16xf32>
    tpu.vector_store %arg28[%c20_585, %c0_586], %370 {strides = array<i32>} : memref<196x64xf32, #tpu.memory_space<vmem>>, vector<4x16xf32>,
    %c0_587 = arith.constant 0 : index
    %c5_588 = arith.constant 5 : index
    %372 = vector.load %arg27[%c0_587, %c5_588] : memref<4x384xf32, #tpu.memory_space<vmem>>, vector<4x16xf32>
    %c24_589 = arith.constant 24 : index
    %c0_590 = arith.constant 0 : index
    %373 = vector.load %arg28[%c24_589, %c0_590] : memref<196x64xf32, #tpu.memory_space<vmem>>, vector<4x16xf32>
    tpu.vector_store %arg28[%c24_589, %c0_590], %372 {strides = array<i32>} : memref<196x64xf32, #tpu.memory_space<vmem>>, vector<4x16xf32>,
    %c0_591 = arith.constant 0 : index
    %c6_592 = arith.constant 6 : index
    %374 = vector.load %arg27[%c0_591, %c6_592] : memref<4x384xf32, #tpu.memory_space<vmem>>, vector<4x16xf32>
    %c28_593 = arith.constant 28 : index
    %c0_594 = arith.constant 0 : index
    %375 = vector.load %arg28[%c28_593, %c0_594] : memref<196x64xf32, #tpu.memory_space<vmem>>, vector<4x16xf32>
    tpu.vector_store %arg28[%c28_593, %c0_594], %374 {strides = array<i32>} : memref<196x64xf32, #tpu.memory_space<vmem>>, vector<4x16xf32>,
    %c0_595 = arith.constant 0 : index
    %c7_596 = arith.constant 7 : index
    %376 = vector.load %arg27[%c0_595, %c7_596] : memref<4x384xf32, #tpu.memory_space<vmem>>, vector<4x16xf32>
    %c32_597 = arith.constant 32 : index
    %c0_598 = arith.constant 0 : index
    %377 = vector.load %arg28[%c32_597, %c0_598] : memref<196x64xf32, #tpu.memory_space<vmem>>, vector<4x16xf32>
    tpu.vector_store %arg28[%c32_597, %c0_598], %376 {strides = array<i32>} : memref<196x64xf32, #tpu.memory_space<vmem>>, vector<4x16xf32>,
    %c0_599 = arith.constant 0 : index
    %c8_600 = arith.constant 8 : index
    %378 = vector.load %arg27[%c0_599, %c8_600] : memref<4x384xf32, #tpu.memory_space<vmem>>, vector<4x16xf32>
    %c36_601 = arith.constant 36 : index
    %c0_602 = arith.constant 0 : index
    %379 = vector.load %arg28[%c36_601, %c0_602] : memref<196x64xf32, #tpu.memory_space<vmem>>, vector<4x16xf32>
    tpu.vector_store %arg28[%c36_601, %c0_602], %378 {strides = array<i32>} : memref<196x64xf32, #tpu.memory_space<vmem>>, vector<4x16xf32>,
    %c0_603 = arith.constant 0 : index
    %c8_604 = arith.constant 8 : index
    %380 = vector.load %arg27[%c0_603, %c8_604] : memref<4x384xf32, #tpu.memory_space<vmem>>, vector<4x16xf32>
    %c40_605 = arith.constant 40 : index
    %c0_606 = arith.constant 0 : index
    %381 = vector.load %arg28[%c40_605, %c0_606] : memref<196x64xf32, #tpu.memory_space<vmem>>, vector<4x16xf32>
    tpu.vector_store %arg28[%c40_605, %c0_606], %380 {strides = array<i32>} : memref<196x64xf32, #tpu.memory_space<vmem>>, vector<4x16xf32>,
    %c0_607 = arith.constant 0 : index
    %c9_608 = arith.constant 9 : index
    %382 = vector.load %arg27[%c0_607, %c9_608] : memref<4x384xf32, #tpu.memory_space<vmem>>, vector<4x16xf32>
    %c44_609 = arith.constant 44 : index
    %c0_610 = arith.constant 0 : index
    %383 = vector.load %arg28[%c44_609, %c0_610] : memref<196x64xf32, #tpu.memory_space<vmem>>, vector<4x16xf32>
    tpu.vector_store %arg28[%c44_609, %c0_610], %382 {strides = array<i32>} : memref<196x64xf32, #tpu.memory_space<vmem>>, vector<4x16xf32>,
    %c0_611 = arith.constant 0 : index
    %c10_612 = arith.constant 10 : index
    %384 = vector.load %arg27[%c0_611, %c10_612] : memref<4x384xf32, #tpu.memory_space<vmem>>, vector<4x16xf32>
    %c48_613 = arith.constant 48 : index
    %c0_614 = arith.constant 0 : index
    %385 = vector.load %arg28[%c48_613, %c0_614] : memref<196x64xf32, #tpu.memory_space<vmem>>, vector<4x16xf32>
    tpu.vector_store %arg28[%c48_613, %c0_614], %384 {strides = array<i32>} : memref<196x64xf32, #tpu.memory_space<vmem>>, vector<4x16xf32>,
    %c0_615 = arith.constant 0 : index
    %c11_616 = arith.constant 11 : index
    %386 = vector.load %arg27[%c0_615, %c11_616] : memref<4x384xf32, #tpu.memory_space<vmem>>, vector<4x16xf32>
    %c52_617 = arith.constant 52 : index
    %c0_618 = arith.constant 0 : index
    %387 = vector.load %arg28[%c52_617, %c0_618] : memref<196x64xf32, #tpu.memory_space<vmem>>, vector<4x16xf32>
    tpu.vector_store %arg28[%c52_617, %c0_618], %386 {strides = array<i32>} : memref<196x64xf32, #tpu.memory_space<vmem>>, vector<4x16xf32>,
    %c0_619 = arith.constant 0 : index
    %c12_620 = arith.constant 12 : index
    %388 = vector.load %arg27[%c0_619, %c12_620] : memref<4x384xf32, #tpu.memory_space<vmem>>, vector<4x16xf32>
    %c56_621 = arith.constant 56 : index
    %c0_622 = arith.constant 0 : index
    %389 = vector.load %arg28[%c56_621, %c0_622] : memref<196x64xf32, #tpu.memory_space<vmem>>, vector<4x16xf32>
    tpu.vector_store %arg28[%c56_621, %c0_622], %388 {strides = array<i32>} : memref<196x64xf32, #tpu.memory_space<vmem>>, vector<4x16xf32>,
    %c0_623 = arith.constant 0 : index
    %c12_624 = arith.constant 12 : index
    %390 = vector.load %arg27[%c0_623, %c12_624] : memref<4x384xf32, #tpu.memory_space<vmem>>, vector<4x16xf32>
    %c60_625 = arith.constant 60 : index
    %c0_626 = arith.constant 0 : index
    %391 = vector.load %arg28[%c60_625, %c0_626] : memref<196x64xf32, #tpu.memory_space<vmem>>, vector<4x16xf32>
    tpu.vector_store %arg28[%c60_625, %c0_626], %390 {strides = array<i32>} : memref<196x64xf32, #tpu.memory_space<vmem>>, vector<4x16xf32>,
    %c0_627 = arith.constant 0 : index
    %c13_628 = arith.constant 13 : index
    %392 = vector.load %arg27[%c0_627, %c13_628] : memref<4x384xf32, #tpu.memory_space<vmem>>, vector<4x16xf32>
    %c64_629 = arith.constant 64 : index
    %c0_630 = arith.constant 0 : index
    %393 = vector.load %arg28[%c64_629, %c0_630] : memref<196x64xf32, #tpu.memory_space<vmem>>, vector<4x16xf32>
    tpu.vector_store %arg28[%c64_629, %c0_630], %392 {strides = array<i32>} : memref<196x64xf32, #tpu.memory_space<vmem>>, vector<4x16xf32>,
    %c0_631 = arith.constant 0 : index
    %c14_632 = arith.constant 14 : index
    %394 = vector.load %arg27[%c0_631, %c14_632] : memref<4x384xf32, #tpu.memory_space<vmem>>, vector<4x16xf32>
    %c68_633 = arith.constant 68 : index
    %c0_634 = arith.constant 0 : index
    %395 = vector.load %arg28[%c68_633, %c0_634] : memref<196x64xf32, #tpu.memory_space<vmem>>, vector<4x16xf32>
    tpu.vector_store %arg28[%c68_633, %c0_634], %394 {strides = array<i32>} : memref<196x64xf32, #tpu.memory_space<vmem>>, vector<4x16xf32>,
    %c0_635 = arith.constant 0 : index
    %c15_636 = arith.constant 15 : index
    %396 = vector.load %arg27[%c0_635, %c15_636] : memref<4x384xf32, #tpu.memory_space<vmem>>, vector<4x16xf32>
    %c72_637 = arith.constant 72 : index
    %c0_638 = arith.constant 0 : index
    %397 = vector.load %arg28[%c72_637, %c0_638] : memref<196x64xf32, #tpu.memory_space<vmem>>, vector<4x16xf32>
    tpu.vector_store %arg28[%c72_637, %c0_638], %396 {strides = array<i32>} : memref<196x64xf32, #tpu.memory_space<vmem>>, vector<4x16xf32>,
    %c0_639 = arith.constant 0 : index
    %c16_640 = arith.constant 16 : index
    %398 = vector.load %arg27[%c0_639, %c16_640] : memref<4x384xf32, #tpu.memory_space<vmem>>, vector<4x16xf32>
    %c76_641 = arith.constant 76 : index
    %c0_642 = arith.constant 0 : index
    %399 = vector.load %arg28[%c76_641, %c0_642] : memref<196x64xf32, #tpu.memory_space<vmem>>, vector<4x16xf32>
    tpu.vector_store %arg28[%c76_641, %c0_642], %398 {strides = array<i32>} : memref<196x64xf32, #tpu.memory_space<vmem>>, vector<4x16xf32>,
    %c0_643 = arith.constant 0 : index
    %c16_644 = arith.constant 16 : index
    %400 = vector.load %arg27[%c0_643, %c16_644] : memref<4x384xf32, #tpu.memory_space<vmem>>, vector<4x16xf32>
    %c80_645 = arith.constant 80 : index
    %c0_646 = arith.constant 0 : index
    %401 = vector.load %arg28[%c80_645, %c0_646] : memref<196x64xf32, #tpu.memory_space<vmem>>, vector<4x16xf32>
    tpu.vector_store %arg28[%c80_645, %c0_646], %400 {strides = array<i32>} : memref<196x64xf32, #tpu.memory_space<vmem>>, vector<4x16xf32>,
    %c0_647 = arith.constant 0 : index
    %c17_648 = arith.constant 17 : index
    %402 = vector.load %arg27[%c0_647, %c17_648] : memref<4x384xf32, #tpu.memory_space<vmem>>, vector<4x16xf32>
    %c84_649 = arith.constant 84 : index
    %c0_650 = arith.constant 0 : index
    %403 = vector.load %arg28[%c84_649, %c0_650] : memref<196x64xf32, #tpu.memory_space<vmem>>, vector<4x16xf32>
    tpu.vector_store %arg28[%c84_649, %c0_650], %402 {strides = array<i32>} : memref<196x64xf32, #tpu.memory_space<vmem>>, vector<4x16xf32>,
    %c0_651 = arith.constant 0 : index
    %c18_652 = arith.constant 18 : index
    %404 = vector.load %arg27[%c0_651, %c18_652] : memref<4x384xf32, #tpu.memory_space<vmem>>, vector<4x16xf32>
    %c88_653 = arith.constant 88 : index
    %c0_654 = arith.constant 0 : index
    %405 = vector.load %arg28[%c88_653, %c0_654] : memref<196x64xf32, #tpu.memory_space<vmem>>, vector<4x16xf32>
    tpu.vector_store %arg28[%c88_653, %c0_654], %404 {strides = array<i32>} : memref<196x64xf32, #tpu.memory_space<vmem>>, vector<4x16xf32>,
    %c0_655 = arith.constant 0 : index
    %c19_656 = arith.constant 19 : index
    %406 = vector.load %arg27[%c0_655, %c19_656] : memref<4x384xf32, #tpu.memory_space<vmem>>, vector<4x16xf32>
    %c92_657 = arith.constant 92 : index
    %c0_658 = arith.constant 0 : index
    %407 = vector.load %arg28[%c92_657, %c0_658] : memref<196x64xf32, #tpu.memory_space<vmem>>, vector<4x16xf32>
    tpu.vector_store %arg28[%c92_657, %c0_658], %406 {strides = array<i32>} : memref<196x64xf32, #tpu.memory_space<vmem>>, vector<4x16xf32>,
    %c0_659 = arith.constant 0 : index
    %c20_660 = arith.constant 20 : index
    %408 = vector.load %arg27[%c0_659, %c20_660] : memref<4x384xf32, #tpu.memory_space<vmem>>, vector<4x16xf32>
    %c96_661 = arith.constant 96 : index
    %c0_662 = arith.constant 0 : index
    %409 = vector.load %arg28[%c96_661, %c0_662] : memref<196x64xf32, #tpu.memory_space<vmem>>, vector<4x16xf32>
    tpu.vector_store %arg28[%c96_661, %c0_662], %408 {strides = array<i32>} : memref<196x64xf32, #tpu.memory_space<vmem>>, vector<4x16xf32>,
    %c0_663 = arith.constant 0 : index
    %c0_664 = arith.constant 0 : index
    %410 = vector.load %arg28[%c0_663, %c0_664] : memref<196x64xf32, #tpu.memory_space<vmem>>, vector<100x16xf32>
    %411 = arith.mulf %410, %356 : vector<100x16xf32>
    %cst_665 = arith.constant dense<0.000000e+00> : vector<4x16xf32>
    %412 = tpu.matmul %354, %411, %cst_665 {dimension_numbers = #tpu.dot_dimension_numbers<[1], [0], [0], [1], [0, 0, 1, 1], [], []>} : vector<4x100xf32>, vector<100x16xf32>, vector<4x16xf32> -> vector<4x16xf32>
    %413 = vector.broadcast %355 : vector<4x1xf32> to vector<4x16xf32>
    %414 = arith.addf %412, %413 : vector<4x16xf32>
    %cst_666 = arith.constant 0.000000e+00 : f32
    %415 = vector.broadcast %cst_666 : f32 to vector<4x16xf32>
    %416 = arith.maximumf %414, %415 : vector<4x16xf32>
    %c0_667 = arith.constant 0 : index
    %c0_668 = arith.constant 0 : index
    %417 = vector.load %arg12[%c0_667, %c0_668] : memref<4x36xf32, #tpu.memory_space<vmem>>, vector<4x36xf32>
    %c0_669 = arith.constant 0 : index
    %c0_670 = arith.constant 0 : index
    %418 = vector.load %arg13[%c0_669, %c0_670] : memref<4x1xf32, #tpu.memory_space<vmem>>, vector<4x1xf32>
    %c0_671 = arith.constant 0 : index
    %c0_672 = arith.constant 0 : index
    %419 = vector.load %arg16[%c0_671, %c0_672] : memref<36x4xf32, #tpu.memory_space<vmem>>, vector<36x4xf32>
    %cst_673 = arith.constant 0.000000e+00 : f32
    %420 = vector.broadcast %cst_673 : f32 to vector<4x384xf32>
    %c0_674 = arith.constant 0 : index
    %c0_675 = arith.constant 0 : index
    %421 = vector.load %arg27[%c0_674, %c0_675] : memref<4x384xf32, #tpu.memory_space<vmem>>, vector<4x384xf32>
    tpu.vector_store %arg27[%c0_674, %c0_675], %420 {strides = array<i32>} : memref<4x384xf32, #tpu.memory_space<vmem>>, vector<4x384xf32>,
    %c0_676 = arith.constant 0 : index
    %c3_677 = arith.constant 3 : index
    %422 = vector.load %arg27[%c0_676, %c3_677] : memref<4x384xf32, #tpu.memory_space<vmem>>, vector<4x4xf32>
    tpu.vector_store %arg27[%c0_676, %c3_677], %242 {strides = array<i32>} : memref<4x384xf32, #tpu.memory_space<vmem>>, vector<4x4xf32>,
    %c0_678 = arith.constant 0 : index
    %c0_679 = arith.constant 0 : index
    %423 = vector.load %arg27[%c0_678, %c0_679] : memref<4x384xf32, #tpu.memory_space<vmem>>, vector<4x4xf32>
    %c0_680 = arith.constant 0 : index
    %c0_681 = arith.constant 0 : index
    %424 = vector.load %arg28[%c0_680, %c0_681] : memref<196x64xf32, #tpu.memory_space<vmem>>, vector<4x4xf32>
    tpu.vector_store %arg28[%c0_680, %c0_681], %423 {strides = array<i32>} : memref<196x64xf32, #tpu.memory_space<vmem>>, vector<4x4xf32>,
    %c0_682 = arith.constant 0 : index
    %c1_683 = arith.constant 1 : index
    %425 = vector.load %arg27[%c0_682, %c1_683] : memref<4x384xf32, #tpu.memory_space<vmem>>, vector<4x4xf32>
    %c4_684 = arith.constant 4 : index
    %c0_685 = arith.constant 0 : index
    %426 = vector.load %arg28[%c4_684, %c0_685] : memref<196x64xf32, #tpu.memory_space<vmem>>, vector<4x4xf32>
    tpu.vector_store %arg28[%c4_684, %c0_685], %425 {strides = array<i32>} : memref<196x64xf32, #tpu.memory_space<vmem>>, vector<4x4xf32>,
    %c0_686 = arith.constant 0 : index
    %c2_687 = arith.constant 2 : index
    %427 = vector.load %arg27[%c0_686, %c2_687] : memref<4x384xf32, #tpu.memory_space<vmem>>, vector<4x4xf32>
    %c8_688 = arith.constant 8 : index
    %c0_689 = arith.constant 0 : index
    %428 = vector.load %arg28[%c8_688, %c0_689] : memref<196x64xf32, #tpu.memory_space<vmem>>, vector<4x4xf32>
    tpu.vector_store %arg28[%c8_688, %c0_689], %427 {strides = array<i32>} : memref<196x64xf32, #tpu.memory_space<vmem>>, vector<4x4xf32>,
    %c0_690 = arith.constant 0 : index
    %c2_691 = arith.constant 2 : index
    %429 = vector.load %arg27[%c0_690, %c2_691] : memref<4x384xf32, #tpu.memory_space<vmem>>, vector<4x4xf32>
    %c12_692 = arith.constant 12 : index
    %c0_693 = arith.constant 0 : index
    %430 = vector.load %arg28[%c12_692, %c0_693] : memref<196x64xf32, #tpu.memory_space<vmem>>, vector<4x4xf32>
    tpu.vector_store %arg28[%c12_692, %c0_693], %429 {strides = array<i32>} : memref<196x64xf32, #tpu.memory_space<vmem>>, vector<4x4xf32>,
    %c0_694 = arith.constant 0 : index
    %c3_695 = arith.constant 3 : index
    %431 = vector.load %arg27[%c0_694, %c3_695] : memref<4x384xf32, #tpu.memory_space<vmem>>, vector<4x4xf32>
    %c16_696 = arith.constant 16 : index
    %c0_697 = arith.constant 0 : index
    %432 = vector.load %arg28[%c16_696, %c0_697] : memref<196x64xf32, #tpu.memory_space<vmem>>, vector<4x4xf32>
    tpu.vector_store %arg28[%c16_696, %c0_697], %431 {strides = array<i32>} : memref<196x64xf32, #tpu.memory_space<vmem>>, vector<4x4xf32>,
    %c0_698 = arith.constant 0 : index
    %c4_699 = arith.constant 4 : index
    %433 = vector.load %arg27[%c0_698, %c4_699] : memref<4x384xf32, #tpu.memory_space<vmem>>, vector<4x4xf32>
    %c20_700 = arith.constant 20 : index
    %c0_701 = arith.constant 0 : index
    %434 = vector.load %arg28[%c20_700, %c0_701] : memref<196x64xf32, #tpu.memory_space<vmem>>, vector<4x4xf32>
    tpu.vector_store %arg28[%c20_700, %c0_701], %433 {strides = array<i32>} : memref<196x64xf32, #tpu.memory_space<vmem>>, vector<4x4xf32>,
    %c0_702 = arith.constant 0 : index
    %c4_703 = arith.constant 4 : index
    %435 = vector.load %arg27[%c0_702, %c4_703] : memref<4x384xf32, #tpu.memory_space<vmem>>, vector<4x4xf32>
    %c24_704 = arith.constant 24 : index
    %c0_705 = arith.constant 0 : index
    %436 = vector.load %arg28[%c24_704, %c0_705] : memref<196x64xf32, #tpu.memory_space<vmem>>, vector<4x4xf32>
    tpu.vector_store %arg28[%c24_704, %c0_705], %435 {strides = array<i32>} : memref<196x64xf32, #tpu.memory_space<vmem>>, vector<4x4xf32>,
    %c0_706 = arith.constant 0 : index
    %c5_707 = arith.constant 5 : index
    %437 = vector.load %arg27[%c0_706, %c5_707] : memref<4x384xf32, #tpu.memory_space<vmem>>, vector<4x4xf32>
    %c28_708 = arith.constant 28 : index
    %c0_709 = arith.constant 0 : index
    %438 = vector.load %arg28[%c28_708, %c0_709] : memref<196x64xf32, #tpu.memory_space<vmem>>, vector<4x4xf32>
    tpu.vector_store %arg28[%c28_708, %c0_709], %437 {strides = array<i32>} : memref<196x64xf32, #tpu.memory_space<vmem>>, vector<4x4xf32>,
    %c0_710 = arith.constant 0 : index
    %c6_711 = arith.constant 6 : index
    %439 = vector.load %arg27[%c0_710, %c6_711] : memref<4x384xf32, #tpu.memory_space<vmem>>, vector<4x4xf32>
    %c32_712 = arith.constant 32 : index
    %c0_713 = arith.constant 0 : index
    %440 = vector.load %arg28[%c32_712, %c0_713] : memref<196x64xf32, #tpu.memory_space<vmem>>, vector<4x4xf32>
    tpu.vector_store %arg28[%c32_712, %c0_713], %439 {strides = array<i32>} : memref<196x64xf32, #tpu.memory_space<vmem>>, vector<4x4xf32>,
    %c0_714 = arith.constant 0 : index
    %c0_715 = arith.constant 0 : index
    %441 = vector.load %arg28[%c0_714, %c0_715] : memref<196x64xf32, #tpu.memory_space<vmem>>, vector<36x4xf32>
    %442 = arith.mulf %441, %419 : vector<36x4xf32>
    %cst_716 = arith.constant dense<0.000000e+00> : vector<4x4xf32>
    %443 = tpu.matmul %417, %442, %cst_716 {dimension_numbers = #tpu.dot_dimension_numbers<[1], [0], [0], [1], [0, 0, 1, 1], [], []>} : vector<4x36xf32>, vector<36x4xf32>, vector<4x4xf32> -> vector<4x4xf32>
    %444 = vector.broadcast %418 : vector<4x1xf32> to vector<4x4xf32>
    %445 = arith.addf %443, %444 : vector<4x4xf32>
    %cst_717 = arith.constant 0.000000e+00 : f32
    %446 = vector.broadcast %cst_717 : f32 to vector<4x4xf32>
    %447 = arith.maximumf %445, %446 : vector<4x4xf32>
    %c0_718 = arith.constant 0 : index
    %c0_719 = arith.constant 0 : index
    %448 = vector.load %arg20[%c0_718, %c0_719] : memref<4x8xf32, #tpu.memory_space<vmem>>, vector<4x8xf32>
    %c0_720 = arith.constant 0 : index
    %c0_721 = arith.constant 0 : index
    %449 = vector.load %arg21[%c0_720, %c0_721] : memref<8x16xf32, #tpu.memory_space<vmem>>, vector<8x16xf32>
    %cst_722 = arith.constant dense<0.000000e+00> : vector<4x8xf32>
    %450 = tpu.matmul %447, %448, %cst_722 {dimension_numbers = #tpu.dot_dimension_numbers<[1], [0], [0], [1], [0, 0, 1, 1], [], []>} : vector<4x4xf32>, vector<4x8xf32>, vector<4x8xf32> -> vector<4x8xf32>
    %cst_723 = arith.constant dense<0.000000e+00> : vector<4x16xf32>
    %451 = tpu.matmul %450, %449, %cst_723 {dimension_numbers = #tpu.dot_dimension_numbers<[1], [0], [0], [1], [0, 0, 1, 1], [], []>} : vector<4x8xf32>, vector<8x16xf32>, vector<4x16xf32> -> vector<4x16xf32>
    %452 = arith.addf %416, %451 : vector<4x16xf32>
    %c0_724 = arith.constant 0 : index
    %c0_725 = arith.constant 0 : index
    %453 = vector.load %arg22[%c0_724, %c0_725] : memref<16x32xf32, #tpu.memory_space<vmem>>, vector<16x32xf32>
    %c0_726 = arith.constant 0 : index
    %c0_727 = arith.constant 0 : index
    %454 = vector.load %arg23[%c0_726, %c0_727] : memref<32x64xf32, #tpu.memory_space<vmem>>, vector<32x64xf32>
    %cst_728 = arith.constant dense<0.000000e+00> : vector<4x32xf32>
    %455 = tpu.matmul %452, %453, %cst_728 {dimension_numbers = #tpu.dot_dimension_numbers<[1], [0], [0], [1], [0, 0, 1, 1], [], []>} : vector<4x16xf32>, vector<16x32xf32>, vector<4x32xf32> -> vector<4x32xf32>
    %cst_729 = arith.constant dense<0.000000e+00> : vector<4x64xf32>
    %456 = tpu.matmul %455, %454, %cst_729 {dimension_numbers = #tpu.dot_dimension_numbers<[1], [0], [0], [1], [0, 0, 1, 1], [], []>} : vector<4x32xf32>, vector<32x64xf32>, vector<4x64xf32> -> vector<4x64xf32>
    %457 = arith.addf %353, %456 : vector<4x64xf32>
    %c0_730 = arith.constant 0 : index
    %c0_731 = arith.constant 0 : index
    %458 = vector.load %arg24[%c0_730, %c0_731] : memref<64x128xf32, #tpu.memory_space<vmem>>, vector<64x128xf32>
    %c0_732 = arith.constant 0 : index
    %c0_733 = arith.constant 0 : index
    %459 = vector.load %arg25[%c0_732, %c0_733] : memref<128x256xf32, #tpu.memory_space<vmem>>, vector<128x256xf32>
    %cst_734 = arith.constant dense<0.000000e+00> : vector<4x128xf32>
    %460 = tpu.matmul %457, %458, %cst_734 {dimension_numbers = #tpu.dot_dimension_numbers<[1], [0], [0], [1], [0, 0, 1, 1], [], []>} : vector<4x64xf32>, vector<64x128xf32>, vector<4x128xf32> -> vector<4x128xf32>
    %cst_735 = arith.constant dense<0.000000e+00> : vector<4x256xf32>
    %461 = tpu.matmul %460, %459, %cst_735 {dimension_numbers = #tpu.dot_dimension_numbers<[1], [0], [0], [1], [0, 0, 1, 1], [], []>} : vector<4x128xf32>, vector<128x256xf32>, vector<4x256xf32> -> vector<4x256xf32>
    %cst_736 = arith.constant dense<0.000000e+00> : vector<4xf32>
    %462 = vector.multi_reduction <add>, %1, %cst_736 [1] : vector<4x256xf32> to vector<4xf32>
    %463 = vector.shape_cast %462 : vector<4xf32> to vector<4x1xf32>
    %cst_737 = arith.constant 2.560000e+02 : f32
    %464 = vector.broadcast %cst_737 : f32 to vector<4x1xf32>
    %465 = arith.divf %463, %464 : vector<4x1xf32>
    %466 = arith.mulf %1, %461 : vector<4x256xf32>
    %467 = vector.broadcast %465 : vector<4x1xf32> to vector<4x256xf32>
    %468 = arith.addf %466, %467 : vector<4x256xf32>
    %c0_738 = arith.constant 0 : index
    %c0_739 = arith.constant 0 : index
    %c0_740 = arith.constant 0 : index
    %469 = vector.load %arg26[%c0_738, %c0_739, %c0_740] : memref<1x4x256xf32, #tpu.memory_space<vmem>>, vector<1x4x256xf32>
    %470 = vector.shape_cast %469 : vector<1x4x256xf32> to vector<4x256xf32>
    %471 = vector.shape_cast %468 : vector<4x256xf32> to vector<1x4x256xf32>
    tpu.vector_store %arg26[%c0_738, %c0_739, %c0_740], %471 {strides = array<i32>} : memref<1x4x256xf32, #tpu.memory_space<vmem>>, vector<1x4x256xf32>,
    return
  }
  func.func @transform_0(%arg0: i32) -> (i32, i32, i32) {
    %c0_i32 = arith.constant 0 : i32
    %c0_i32_0 = arith.constant 0 : i32
    %c0_i32_1 = arith.constant 0 : i32
    return %arg0, %c0_i32, %c0_i32_0 : i32, i32, i32
  }
  func.func @transform_1(%arg0: i32) -> (i32, i32) {
    %c0_i32 = arith.constant 0 : i32
    %c0_i32_0 = arith.constant 0 : i32
    %c0_i32_1 = arith.constant 0 : i32
    return %c0_i32, %c0_i32_0 : i32, i32
  }
  func.func @transform_2(%arg0: i32) -> (i32, i32) {
    %c0_i32 = arith.constant 0 : i32
    %c0_i32_0 = arith.constant 0 : i32
    %c0_i32_1 = arith.constant 0 : i32
    return %c0_i32, %c0_i32_0 : i32, i32
  }
  func.func @transform_3(%arg0: i32) -> (i32, i32) {
    %c0_i32 = arith.constant 0 : i32
    %c0_i32_0 = arith.constant 0 : i32
    %c0_i32_1 = arith.constant 0 : i32
    return %c0_i32, %c0_i32_0 : i32, i32
  }
  func.func @transform_4(%arg0: i32) -> (i32, i32) {
    %c0_i32 = arith.constant 0 : i32
    %c0_i32_0 = arith.constant 0 : i32
    %c0_i32_1 = arith.constant 0 : i32
    return %c0_i32, %c0_i32_0 : i32, i32
  }
  func.func @transform_5(%arg0: i32) -> (i32, i32) {
    %c0_i32 = arith.constant 0 : i32
    %c0_i32_0 = arith.constant 0 : i32
    %c0_i32_1 = arith.constant 0 : i32
    return %c0_i32, %c0_i32_0 : i32, i32
  }
  func.func @transform_6(%arg0: i32) -> (i32, i32) {
    %c0_i32 = arith.constant 0 : i32
    %c0_i32_0 = arith.constant 0 : i32
    %c0_i32_1 = arith.constant 0 : i32
    return %c0_i32, %c0_i32_0 : i32, i32
  }
  func.func @transform_7(%arg0: i32) -> (i32, i32) {
    %c0_i32 = arith.constant 0 : i32
    %c0_i32_0 = arith.constant 0 : i32
    %c0_i32_1 = arith.constant 0 : i32
    return %c0_i32, %c0_i32_0 : i32, i32
  }
  func.func @transform_8(%arg0: i32) -> (i32, i32) {
    %c0_i32 = arith.constant 0 : i32
    %c0_i32_0 = arith.constant 0 : i32
    %c0_i32_1 = arith.constant 0 : i32
    return %c0_i32, %c0_i32_0 : i32, i32
  }
  func.func @transform_9(%arg0: i32) -> (i32, i32) {
    %c0_i32 = arith.constant 0 : i32
    %c0_i32_0 = arith.constant 0 : i32
    %c0_i32_1 = arith.constant 0 : i32
    return %c0_i32, %c0_i32_0 : i32, i32
  }
  func.func @transform_10(%arg0: i32) -> (i32, i32) {
    %c0_i32 = arith.constant 0 : i32
    %c0_i32_0 = arith.constant 0 : i32
    %c0_i32_1 = arith.constant 0 : i32
    return %c0_i32, %c0_i32_0 : i32, i32
  }
  func.func @transform_11(%arg0: i32) -> (i32, i32) {
    %c0_i32 = arith.constant 0 : i32
    %c0_i32_0 = arith.constant 0 : i32
    %c0_i32_1 = arith.constant 0 : i32
    return %c0_i32, %c0_i32_0 : i32, i32
  }
  func.func @transform_12(%arg0: i32) -> (i32, i32) {
    %c0_i32 = arith.constant 0 : i32
    %c0_i32_0 = arith.constant 0 : i32
    %c0_i32_1 = arith.constant 0 : i32
    return %c0_i32, %c0_i32_0 : i32, i32
  }
  func.func @transform_13(%arg0: i32) -> (i32, i32) {
    %c0_i32 = arith.constant 0 : i32
    %c0_i32_0 = arith.constant 0 : i32
    %c0_i32_1 = arith.constant 0 : i32
    return %c0_i32, %c0_i32_0 : i32, i32
  }
  func.func @transform_14(%arg0: i32) -> (i32, i32) {
    %c0_i32 = arith.constant 0 : i32
    %c0_i32_0 = arith.constant 0 : i32
    %c0_i32_1 = arith.constant 0 : i32
    return %c0_i32, %c0_i32_0 : i32, i32
  }
  func.func @transform_15(%arg0: i32) -> (i32, i32) {
    %c0_i32 = arith.constant 0 : i32
    %c0_i32_0 = arith.constant 0 : i32
    %c0_i32_1 = arith.constant 0 : i32
    return %c0_i32, %c0_i32_0 : i32, i32
  }
  func.func @transform_16(%arg0: i32) -> (i32, i32) {
    %c0_i32 = arith.constant 0 : i32
    %c0_i32_0 = arith.constant 0 : i32
    %c0_i32_1 = arith.constant 0 : i32
    return %c0_i32, %c0_i32_0 : i32, i32
  }
  func.func @transform_17(%arg0: i32) -> (i32, i32) {
    %c0_i32 = arith.constant 0 : i32
    %c0_i32_0 = arith.constant 0 : i32
    %c0_i32_1 = arith.constant 0 : i32
    return %c0_i32, %c0_i32_0 : i32, i32
  }
  func.func @transform_18(%arg0: i32) -> (i32, i32) {
    %c0_i32 = arith.constant 0 : i32
    %c0_i32_0 = arith.constant 0 : i32
    %c0_i32_1 = arith.constant 0 : i32
    return %c0_i32, %c0_i32_0 : i32, i32
  }
  func.func @transform_19(%arg0: i32) -> (i32, i32) {
    %c0_i32 = arith.constant 0 : i32
    %c0_i32_0 = arith.constant 0 : i32
    %c0_i32_1 = arith.constant 0 : i32
    return %c0_i32, %c0_i32_0 : i32, i32
  }
  func.func @transform_20(%arg0: i32) -> (i32, i32) {
    %c0_i32 = arith.constant 0 : i32
    %c0_i32_0 = arith.constant 0 : i32
    %c0_i32_1 = arith.constant 0 : i32
    return %c0_i32, %c0_i32_0 : i32, i32
  }
  func.func @transform_21(%arg0: i32) -> (i32, i32) {
    %c0_i32 = arith.constant 0 : i32
    %c0_i32_0 = arith.constant 0 : i32
    %c0_i32_1 = arith.constant 0 : i32
    return %c0_i32, %c0_i32_0 : i32, i32
  }
  func.func @transform_22(%arg0: i32) -> (i32, i32) {
    %c0_i32 = arith.constant 0 : i32
    %c0_i32_0 = arith.constant 0 : i32
    %c0_i32_1 = arith.constant 0 : i32
    return %c0_i32, %c0_i32_0 : i32, i32
  }
  func.func @transform_23(%arg0: i32) -> (i32, i32) {
    %c0_i32 = arith.constant 0 : i32
    %c0_i32_0 = arith.constant 0 : i32
    %c0_i32_1 = arith.constant 0 : i32
    return %c0_i32, %c0_i32_0 : i32, i32
  }
  func.func @transform_24(%arg0: i32) -> (i32, i32) {
    %c0_i32 = arith.constant 0 : i32
    %c0_i32_0 = arith.constant 0 : i32
    %c0_i32_1 = arith.constant 0 : i32
    return %c0_i32, %c0_i32_0 : i32, i32
  }
  func.func @transform_25(%arg0: i32) -> (i32, i32, i32) {
    %c0_i32 = arith.constant 0 : i32
    %c0_i32_0 = arith.constant 0 : i32
    %c0_i32_1 = arith.constant 0 : i32
    return %arg0, %c0_i32, %c0_i32_0 : i32, i32, i32
  }
}

</mosaic_0001>

<bundles_post_ra>
// kernel: tpu_custom_call.1
= control target key start
LH: loop header
LB: loop body
LE: loop exit
PB: predicated region body
PF: predicated region fallthrough
CT: control target
= control target key end

     0   :  { %s5726_s0 = inlined_call_operand.vmem [shape: f32[2,4,256], index: 0, kind: input, shape index: {}]   ;;  %s5727_s1 = inlined_call_operand.vmem [shape: f32[4,196], index: 1, kind: input, shape index: {}]   ;;  %s5728_s2 = inlined_call_operand.vmem [shape: f32[4,1], index: 2, kind: input, shape index: {}]   ;;  %s5729_s3 = inlined_call_operand.vmem [shape: f32[4,100], index: 3, kind: input, shape index: {}]   ;;  %s5730_s4 = inlined_call_operand.vmem [shape: f32[4,1], index: 4, kind: input, shape index: {}]   ;;  %s5731_s5 = inlined_call_operand.vmem [shape: f32[4,36], index: 5, kind: input, shape index: {}]   ;;  %s5732_s6 = inlined_call_operand.vmem [shape: f32[4,1], index: 6, kind: input, shape index: {}]   ;;  %s5733_s7 = inlined_call_operand.vmem [shape: f32[4,196], index: 7, kind: input, shape index: {}]   ;;  %s5734_s8 = inlined_call_operand.vmem [shape: f32[4,1], index: 8, kind: input, shape index: {}]   ;;  %s5735_s9 = inlined_call_operand.vmem [shape: f32[4,100], index: 9, kind: input, shape index: {}]   ;;  %s5736_s10 = inlined_call_operand.vmem [shape: f32[4,1], index: 10, kind: input, shape index: {}]   ;;  %s5737_s11 = inlined_call_operand.vmem [shape: f32[4,36], index: 11, kind: input, shape index: {}]   ;;  %s5738_s12 = inlined_call_operand.vmem [shape: f32[4,1], index: 12, kind: input, shape index: {}]   ;;  %s5739_s13 = inlined_call_operand.vmem [shape: f32[196,64], index: 13, kind: input, shape index: {}]   ;;  %s5740_s14 = inlined_call_operand.vmem [shape: f32[100,16], index: 14, kind: input, shape index: {}]   ;;  %s5741_s15 = inlined_call_operand.vmem [shape: f32[36,4], index: 15, kind: input, shape index: {}]   ;;  %s5742_s16 = inlined_call_operand.vmem [shape: f32[256,64], index: 16, kind: input, shape index: {}]   ;;  %s5743_s17 = inlined_call_operand.vmem [shape: f32[64,16], index: 17, kind: input, shape index: {}]   ;;  %s5744_s18 = inlined_call_operand.vmem [shape: f32[16,4], index: 18, kind: input, shape index: {}]   ;;  %s5745_s19 = inlined_call_operand.vmem [shape: f32[4,8], index: 19, kind: input, shape index: {}]   ;;  %s5746_s20 = inlined_call_operand.vmem [shape: f32[8,16], index: 20, kind: input, shape index: {}]   ;;  %s5747_s21 = inlined_call_operand.vmem [shape: f32[16,32], index: 21, kind: input, shape index: {}]   ;;  %s5748_s22 = inlined_call_operand.vmem [shape: f32[32,64], index: 22, kind: input, shape index: {}]   ;;  %s5749_s23 = inlined_call_operand.vmem [shape: f32[64,128], index: 23, kind: input, shape index: {}]   ;;  %s5750_s24 = inlined_call_operand.vmem [shape: f32[128,256], index: 24, kind: input, shape index: {}]   ;;  %s5751_s25 = inlined_call_operand.hbm [shape: f32[2,4,256], index: 25, kind: output, shape index: {}]  }
   0x1   :  { %5839 = sst [smem:[#allocation17_spill]] %s5726_s0 }
   0x2   :  { %5840 = sst [smem:[#allocation18_spill]] %s5727_s1 }
   0x3   :  { %5841 = sst [smem:[#allocation19_spill]] %s5728_s2 }
   0x4   :  { %5842 = sst [smem:[#allocation20_spill]] %s5729_s3 }
   0x5   :  { %5843 = sst [smem:[#allocation21_spill]] %s5730_s4 }
   0x6   :  { %5844 = sst [smem:[#allocation22_spill]] %s5731_s5 }
   0x7   :  { %5845 = sst [smem:[#allocation23_spill]] %s5732_s6 }
   0x8   :  { %5846 = sst [smem:[#allocation24_spill]] %s5733_s7 }
   0x9   :  { %5847 = sst [smem:[#allocation25_spill]] %s5734_s8 }
   0xa   :  { %5848 = sst [smem:[#allocation26_spill]] %s5735_s9 }
   0xb   :  { %5849 = sst [smem:[#allocation27_spill]] %s5736_s10 }
   0xc   :  { %5850 = sst [smem:[#allocation28_spill]] %s5742_s16 }
   0xd   :  { %5851 = sst [smem:[#allocation29_spill]] %s5743_s17 }
   0xe   :  { %5852 = sst [smem:[#allocation30_spill]] %s5744_s18 }
   0xf   :  { %5853 = sst [smem:[#allocation31_spill]] %s5745_s19 }
  0x10   :  { %5854 = sst [smem:[#allocation32_spill]] %s5746_s20 }
  0x11   :  { %5855 = sst [smem:[#allocation33_spill]] %s5747_s21 }
  0x12   :  { %5856 = sst [smem:[#allocation34_spill]] %s5748_s22 }
  0x13   :  { %5857 = sst [smem:[#allocation35_spill]] %s5749_s23 }
  0x14   :  { %5858 = sst [smem:[#allocation36_spill]] %s5750_s24 }
  0x15   :  { %5859 = sst [smem:[#allocation37_spill]] %s5751_s25 }
  0x16   :  { %30 = vsyncpa [#allocation5], 0 }
  0x17   :  { %32 = vsyncpa [#allocation5 + $0x1], 0  ;;  %s4344_s29 = smov 0   ;;  %s4346_s2 = smov 0  }
  0x18   :  { %s4348_s6 = smov 0   ;;  %s4350_s30 = smov 0  }
  0x19 LB: > { %5860 = sst [smem:[#allocation7_spill]] %s4141_s29  ;;  %s4365_s7 = sadd.s32 4294967295, %s4153_s30   ;;  %s4153_s30 = sphi %s4350_s30, %s5954_s30   ;;  %s4149_s6 = sphi %s4348_s6, %s5957_s6   ;;  %s4145_s2 = sphi %s4346_s2, %s5956_s2   ;;  %s4141_s29 = sphi %s4344_s29, %s5955_s29  }
  0x1a   : > { %5861 = sst [smem:[#allocation8_spill]] %s4145_s2  ;;  %s3470_s3 = sadd.s32 4294967294, %s4153_s30  }
  0x1b   : > { %5862 = sst [smem:[#allocation9_spill]] %s4149_s6  ;;  %s4369_s26 = sadd.s32 1, %s4153_s30  }
  0x1c   : > { %5863 = sst [smem:[#allocation10_spill]] %s4153_s30  ;;  %s575_s1 = sadd.s32 1, %s4149_s6 }
  0x1d   : > { %5864 = sst [smem:[#allocation11_spill]] %s4365_s7  ;;  %s572_s8 = ssub.s32 %s4153_s30, %s4369_s26 }
  0x1e   : > { %5865 = sst [smem:[#allocation12_spill]] %s4369_s26  ;;  %p585_p0 = scmp.ne.s32.totalorder %s4149_s6, %s4145_s2 }
  0x1f   : > { %p573_p1 = scmp.eq.s32.totalorder %s572_s8, 0  ;;  %p586_p2 = scmp.eq.s32.totalorder %s4365_s7, 1 }
  0x20   : > { %p591_p3 = scmp.ne.s32.totalorder %s4145_s2, %s4141_s29  ;;  %p592_p4 = scmp.eq.s32.totalorder %s3470_s3, 1 }
  0x21   : > { %s4380_s27 = scalar_select %p573_p1, %s4149_s6, %s575_s1  }
  0x22   : > { %p4382_p5 = por %p586_p2, %p585_p0  ;;  %p4386_p6 = por %p592_p4, %p591_p3 }
  0x23   : > { %5866 = sst [smem:[#allocation13_spill]] %s4380_s27  ;;  %p3473_p7 = scmp.ge.s32.totalorder %s4153_s30, 1 }
  0x24   : > { %s5867_s4 = scalar_select %p4382_p5, 1, 0 }
  0x25   : > { %s5869_s28 = scalar_select %p4386_p6, 1, 0 }
  0x26   : > { %5868 = sst [smem:[#allocation14_spill]] %s5867_s4  ;;  %p690_p8 = scmp.lt.s32.totalorder %s4153_s30, 3 }
  0x27   : > { %5870 = sst [smem:[#allocation15_spill]] %s5869_s28 }
  0x28   : > { %p691_p9 = pnand %p3473_p7, %p690_p8 }
  0x2a   : > { %694 = sbr.rel (%p691_p9) target bundleno = 4780 (0x12ac), region = 120 }
  0x31   : > { %p758_p10 = scmp.lt.s32.totalorder %s4365_s7, 1  ;;  %v4155_v0 = vmov 0.0   ;;  %s5871_s1 = sld [smem:[#allocation17_spill]]  ;;  %vm810_vm0 = vcmask 1043456   ;;  %vm812_vm1 = vcmask 1039360   ;;  %vm828_vm2 = vcmask 916480  }
  0x32   : > { %797 = vst [vmem:[#allocation2 + $0x8] sm:$0xf] %v4155_v0  ;;  %932 = vst [vmem:[#allocation2] sm:$0xff] %v4155_v0  ;;  %s5756_s27 = smov 127   ;;  %s5873_s16 = sld [smem:[#allocation28_spill]]  ;;  %vm938_vm3 = vcmask 740568  }
  0x33   : > { %s759_s9 = scalar_select %p758_p10, %s4365_s7, 1  ;;  %vm941_vm4 = vcmask 519168   ;;  %vm1288_vm5 = vcmask 556032   ;;  %vm4207_vm6 = vmmov 0   ;;  %vm1387_vm7 = vcmask 523264  }
  0x34   : > { %s5874_s3 = smov 127   ;;  %s5779_s29 = smov 112   ;;  %vm1482_vm8 = vcmask 207952   ;;  %vm1485_vm9 = vcmask 125952   ;;  %vm1662_vm10 = vcmask 818176   ;;  %vm1756_vm11 = vcmask 130048  }
  0x35   : > { %s3502_s5 = sshll.u32 %s759_s9, 3  ;;  %s5760_s30 = smov 27   ;;  %vm1843_vm12 = vcmask 52248   ;;  %vm1846_vm13 = vcmask 27648   ;;  %vm1911_vm14 = vcmask 293888   ;;  %vm2880_vm15 = vcmask 31744  }
  0x36   : > { %s5771_s6 = smov 125   ;;  %s5763_s26 = smov 122  }
  0x37   : > { %s4399_s8 = scalar_lea.vmem %s5871_s1, %s3502_s5  ;;  %s5773_s1 = smov 124  }
  0x38   : > { %5872 = sst [smem:[#allocation16_spill]] %s4399_s8  ;;  %v4402_v1 = vld [vmem:[%s4399_s8] sm:$0xff]  ;;  %v781_v4 = vld [vmem:[%s5873_s16 + $0x88] sm:$0xff]  ;;  %v782_v8 = vld [vmem:[%s5873_s16 + $0x90] sm:$0xff]  ;;  %s5769_s28 = smov 123  }
  0x39   : > { %804 = vrot.lane.b32.xlu0 %v4402_v1, %s5756_s27  ;;  %v4406_v2 = vld [vmem:[#allocation2 + $0x8] sm:$0xf]  ;;  %v780_v3 = vld [vmem:[%s5873_s16 + $0x80] sm:$0xff]  ;;  %v783_v10 = vld [vmem:[%s5873_s16 + $0x98] sm:$0xff]  ;;  %s5822_s27 = smov 126   ;;  %s5761_s9 = smov 119  }
  0x3a   : > { %933 = vst [vmem:[#allocation2 + $0x8] sm:$0xf] %v4155_v0  ;;  %v3769_v5 = vpack.c.bf16 %v781_v4, %v780_v3  ;;  %v764_v6 = vld [vmem:[%s5873_s16] sm:$0xff]  ;;  %v765_v7 = vld [vmem:[%s5873_s16 + $0x8] sm:$0xff]  ;;  %v766_v11 = vld [vmem:[%s5873_s16 + $0x10] sm:$0xff]  ;;  %v3773_v13 = vpack.c.bf16 %v783_v10, %v782_v8  ;;  %s5826_s5 = smov 120  }
  0x3b   : > { %1374 = vst [vmem:[#allocation2 + $0x8] sm:$0xf] %v4155_v0  ;;  %v3771_v9 = vpack.c.bf16 %v765_v7, %v764_v6  ;;  %v767_v12 = vld [vmem:[%s5873_s16 + $0x18] sm:$0xff]  ;;  %v784_v14 = vld [vmem:[%s5873_s16 + $0xa0] sm:$0xff]  ;;  %v785_v15 = vld [vmem:[%s5873_s16 + $0xa8] sm:$0xff]  ;;  %s5765_s0 = smov 117  }
  0x3c   : > { %1477 = vst [vmem:[#allocation2 + $0x8] sm:$0xf] %v4155_v0  ;;  %3770 = vmatprep.subr.bf16.mxu0 %v3769_v5  ;;  %v3775_v16 = vpack.c.bf16 %v767_v12, %v766_v11  ;;  %v3777_v17 = vpack.c.bf16 %v785_v15, %v784_v14  ;;  %v768_v18 = vld [vmem:[%s5873_s16 + $0x20] sm:$0xff]  ;;  %v769_v19 = vld [vmem:[%s5873_s16 + $0x28] sm:$0xff]  ;;  %v786_v20 = vld [vmem:[%s5873_s16 + $0xb0] sm:$0xff]  ;;  %s5877_s17 = sld [smem:[#allocation29_spill]] }
  0x3d   : > { %806 = vrot.lane.b32.xlu0 %v4406_v2, %s5874_s3  ;;  %1743 = vst [vmem:[#allocation2 + $0x8] sm:$0xf] %v4155_v0  ;;  %3772 = vmatpush3.bf16.msra.mxu0 %v3771_v9  ;;  %v787_v21 = vld [vmem:[%s5873_s16 + $0xb8] sm:$0xff]  ;;  %v3779_v22 = vpack.c.bf16 %v769_v19, %v768_v18  ;;  %v770_v24 = vld [vmem:[%s5873_s16 + $0x30] sm:$0xff]  ;;  %v788_v26 = vld [vmem:[%s5873_s16 + $0xc0] sm:$0xff]  ;;  %s5888_s25 = smov 112  }
  0x3e   : > { %1838 = vst [vmem:[#allocation2 + $0x8] sm:$0xf] %v4155_v0  ;;  %3774 = vmatprep.subr.bf16.mxu0 %v3773_v13  ;;  %v3781_v23 = vpack.c.bf16 %v787_v21, %v786_v20  ;;  %v771_v25 = vld [vmem:[%s5873_s16 + $0x38] sm:$0xff]  ;;  %v789_v27 = vld [vmem:[%s5873_s16 + $0xc8] sm:$0xff]  ;;  %v772_v30 = vld [vmem:[%s5873_s16 + $0x40] sm:$0xff]  ;;  %s5890_s4 = smov 111  }
  0x3f   : > { %2017 = vst [vmem:[#allocation2 + $0x8] sm:$0xf] %v4155_v0  ;;  %v3783_v28 = vpack.c.bf16 %v771_v25, %v770_v24  ;;  %v3785_v29 = vpack.c.bf16 %v789_v27, %v788_v26  ;;  %v773_v31 = vld [vmem:[%s5873_s16 + $0x48] sm:$0xff]  ;;  %v790_v33 = vld [vmem:[%s5873_s16 + $0xd0] sm:$0xff]  ;;  %v791_v34 = vld [vmem:[%s5873_s16 + $0xd8] sm:$0xff]  ;;  %s5891_s7 = smov 108  }
  0x40   : > { %2462 = vst [vmem:[#allocation2 + $0x8] sm:$0xf] %v4155_v0  ;;  %v3787_v32 = vpack.c.bf16 %v773_v31, %v772_v30  ;;  %v3789_v35 = vpack.c.bf16 %v791_v34, %v790_v33  ;;  %v774_v36 = vld [vmem:[%s5873_s16 + $0x50] sm:$0xff]  ;;  %v775_v37 = vld [vmem:[%s5873_s16 + $0x58] sm:$0xff]  ;;  %v792_v40 = vld [vmem:[%s5873_s16 + $0xe0] sm:$0xff]  ;;  %s5892_s2 = smov 109  }
  0x41   : > { %2730 = vst [vmem:[#allocation2 + $0x8] sm:$0xf] %v4155_v0  ;;  %3776 = vmatpush3.bf16.msra.mxu0 %v3775_v16  ;;  %v3791_v38 = vpack.c.bf16 %v775_v37, %v774_v36  ;;  %v793_v41 = vld [vmem:[%s5873_s16 + $0xe8] sm:$0xff]  ;;  %v776_v43 = vld [vmem:[%s5873_s16 + $0x60] sm:$0xff]  ;;  %v794_v46 = vld [vmem:[%s5873_s16 + $0xf0] sm:$0xff]  ;;  %s5893_s23 = sld [smem:[#allocation21_spill]] }
  0x42   : > { %3778 = vmatprep.subr.bf16.mxu0 %v3777_v17  ;;  %v3793_v42 = vpack.c.bf16 %v793_v41, %v792_v40  ;;  %v777_v44 = vld [vmem:[%s5873_s16 + $0x68] sm:$0xff]  ;;  %v795_v47 = vld [vmem:[%s5873_s16 + $0xf8] sm:$0xff]  ;;  %v778_v48 = vld [vmem:[%s5873_s16 + $0x70] sm:$0xff]  ;;  %s5894_s20 = sld [smem:[#allocation20_spill]]  ;;  %s5895_s18 = sld [smem:[#allocation30_spill]] }
  0x43   : > { %v3795_v45 = vpack.c.bf16 %v777_v44, %v776_v43  ;;  %v3797_v49 = vpack.c.bf16 %v795_v47, %v794_v46  ;;  %v779_v50 = vld [vmem:[%s5873_s16 + $0x78] sm:$0xff]  ;;  %s5886_s16 = smov 115   ;;  %s5838_s8 = smov 3  }
  0x44   : > { %v3799_v52 = vpack.c.bf16 %v779_v50, %v778_v48  ;;  %s5897_s22 = sld [smem:[#allocation23_spill]]  ;;  %s5898_s24 = smov 27  }
  0x45   : > { %3780 = vmatpush3.bf16.msra.mxu0 %v3779_v22  ;;  %s5904_s21 = smov 103   ;;  %s5908_s10 = smov 99  }
  0x46   : > { %3782 = vmatprep.subr.bf16.mxu0 %v3781_v23  ;;  %s5909_s19 = smov 100  }
  0x49   : > { %3784 = vmatpush3.bf16.msra.mxu0 %v3783_v28 }
  0x4a   : > { %3786 = vmatprep.subr.bf16.mxu0 %v3785_v29 }
  0x4d   : > { %3788 = vmatpush3.bf16.msra.mxu0 %v3787_v32 }
  0x4e   : > { %3790 = vmatprep.subr.bf16.mxu0 %v3789_v35 }
  0x51   : > { %3792 = vmatpush3.bf16.msra.mxu0 %v3791_v38 }
  0x52   : > { %3794 = vmatprep.subr.bf16.mxu0 %v3793_v42 }
  0x55   : > { %3796 = vmatpush3.bf16.msra.mxu0 %v3795_v45 }
  0x56   : > { %3798 = vmatprep.subr.bf16.mxu0 %v3797_v49 }
  0x59   : > { %3800 = vmatpush3.bf16.msra.mxu0 %v3799_v52 }
  0xab   : > { %v805_v39 = vpop.permute.xlu0 %804 }
  0xac   : > { %v808_v53 = vrot.slane %v805_v39, 4 }
  0xaf   : > { %v807_v51 = vpop.permute.xlu0 %806 }
  0xb0   : > { %v809_v54 = vrot.slane %v807_v51, 4  ;;  %v818_v58 = vmax.f32 %v4406_v2, %v807_v51 }
  0xb2   : > { %v811_v55 = vsel %vm810_vm0, %v808_v53, %v809_v54 }
  0xb3   : > { %v813_v56 = vsel %vm812_vm1, %v805_v39, %v811_v55  ;;  %vm2957_vm1 = vcmask 64512  }
  0xb4   : > { %v817_v57 = vmax.f32 %v4402_v1, %v813_v56 }
  0xb6   : > { %821 = vrot.lane.b32.xlu1 %v817_v57, %s5779_s29 }
  0xba   : > { %823 = vrot.lane.b32.xlu1 %v818_v58, %s5779_s29 }
 0x128   : > { %v822_v59 = vpop.permute.xlu1 %821 }
 0x129   : > { %v825_v61 = vrot.slane %v822_v59, 4 }
 0x12c   : > { %v824_v60 = vpop.permute.xlu1 %823 }
 0x12d   : > { %v826_v62 = vrot.slane %v824_v60, 4 }
 0x12f   : > { %v827_v63 = vsel %vm810_vm0, %v825_v61, %v826_v62  ;;  %v4206_v61 = vmov 0  }
 0x130   : > { %v829_v3 = vsel %vm828_vm2, %v822_v59, %v827_v63  ;;  %4086 = vset.pattern.permute.xlu1 %v4206_v61  ;;  %4087 = vset.pattern.permute.xlu0 %v4206_v61  ;;  %vm3111_vm2 = vcmask 261120  }
 0x131   : > { %v831_v4 = vmax.f32 %v817_v57, %v829_v3  ;;  %v4168_v57 = vmov 0.0|0.0  }
 0x132   : > { %3801 = vmatprep.subr.bf16.mxu1 %v4168_v57  ;;  %3837 = vmatprep.subr.bf16.mxu0 %v4168_v57 }
 0x133   : > { %v833_v5 = vcombine.high %v831_v4, %v831_v4 }
 0x135   : > { %899 = vmatprep.mubr.f32.mxu0 %v833_v5 }
 0x136   : > { %900 = vmatmul.mubr.f32.vlgmr.msra.gmra.mrb[0].mxu0 %v831_v4 }
 0x137   : > { %3628 = vmatprep.mubr.msk.f32.mxu0 %vm4207_vm6, %v4155_v0 }
 0x209   : > { %v3536_v1 = vpop.f32.mrb[0].mxu0 }
 0x20a   : > { %v3537_v6 = vpop.f32.mrb[1].mxu0 }
 0x20b   : > { %v3538_v7 = vadd.f32 %v3537_v6, %v3536_v1  ;;  %v907_v6 = vld [vmem:[%s5739_s13] sm:$0xff] }
 0x20d   : > { %935 = vrot.lane.b32.xlu0 %v3538_v7, %s5760_s30  ;;  %s5767_s30 = smov 118   ;;  %v908_v7 = vld [vmem:[%s5739_s13 + $0x8] sm:$0xff] }
 0x27f   : > { %v936_v2 = vpop.permute.xlu0 %935 }
 0x280   : > { %939 = vst.msk [vmem:[#allocation2] sm:$0xf] %vm938_vm3, %v936_v2 }
 0x287   : > { %v949_v8 = vld [vmem:[#allocation2] sm:$0xf] }
 0x288   : > { %v943_v9 = vld [vmem:[#allocation2] sm:$0xf]  ;;  %951 = vrot.lane.b32.xlu0 %v949_v8, %s5822_s27 }
 0x289   : > { %945 = vrot.lane.b32.xlu1 %v943_v9, %s5874_s3  ;;  %v961_v10 = vld [vmem:[#allocation2] sm:$0xf] }
 0x28a   : > { %v955_v11 = vld [vmem:[#allocation2] sm:$0xf] }
 0x28b   : > { %v973_v12 = vld [vmem:[#allocation2] sm:$0xf] }
 0x28c   : > { %963 = vrot.lane.b32.xlu0 %v961_v10, %s5773_s1  ;;  %v967_v13 = vld [vmem:[#allocation2] sm:$0xf]  ;;  %s5789_s1 = smov 109  }
 0x28d   : > { %957 = vrot.lane.b32.xlu1 %v955_v11, %s5771_s6  ;;  %v985_v14 = vld [vmem:[#allocation2] sm:$0xf]  ;;  %s5787_s6 = smov 108  }
 0x28e   : > { %v979_v15 = vld [vmem:[#allocation2] sm:$0xf] }
 0x28f   : > { %v997_v16 = vld [vmem:[#allocation2] sm:$0xf] }
 0x290   : > { %975 = vrot.lane.b32.xlu0 %v973_v12, %s5763_s26  ;;  %v991_v17 = vld [vmem:[#allocation2] sm:$0xf]  ;;  %s5777_s26 = smov 116  }
 0x291   : > { %969 = vrot.lane.b32.xlu1 %v967_v13, %s5769_s28  ;;  %v1009_v18 = vld [vmem:[#allocation2] sm:$0xf]  ;;  %s5785_s28 = smov 111  }
 0x292   : > { %v1003_v19 = vld [vmem:[#allocation2] sm:$0xf] }
 0x293   : > { %v1021_v20 = vld [vmem:[#allocation2] sm:$0xf] }
 0x294   : > { %987 = vrot.lane.b32.xlu0 %v985_v14, %s5761_s9  ;;  %v1015_v21 = vld [vmem:[#allocation2] sm:$0xf]  ;;  %s5775_s9 = smov 115  }
 0x295   : > { %981 = vrot.lane.b32.xlu1 %v979_v15, %s5826_s5  ;;  %v1033_v22 = vld [vmem:[#allocation2] sm:$0xf] }
 0x296   : > { %v1027_v23 = vld [vmem:[#allocation2] sm:$0xf] }
 0x297   : > { %v1045_v24 = vld [vmem:[#allocation2] sm:$0xf] }
 0x298   : > { %v1039_v25 = vld [vmem:[#allocation2] sm:$0xf]  ;;  %999 = vrot.lane.b32.xlu0 %v997_v16, %s5765_s0  ;;  %s5781_s0 = smov 114  }
 0x299   : > { %v1057_v26 = vld [vmem:[#allocation2] sm:$0xf]  ;;  %993 = vrot.lane.b32.xlu1 %v991_v17, %s5767_s30  ;;  %s5783_s30 = smov 110   ;;  %v909_v17 = vld [vmem:[%s5739_s13 + $0x10] sm:$0xff] }
 0x29a   : > { %v1051_v27 = vld [vmem:[#allocation2] sm:$0xf] }
 0x29b   : > { %v1069_v28 = vld [vmem:[#allocation2] sm:$0xf] }
 0x29c   : > { %v1063_v29 = vld [vmem:[#allocation2] sm:$0xf]  ;;  %1011 = vrot.lane.b32.xlu0 %v1009_v18, %s5775_s9  ;;  %s5791_s9 = smov 106   ;;  %v910_v18 = vld [vmem:[%s5739_s13 + $0x18] sm:$0xff] }
 0x29d   : > { %v1081_v30 = vld [vmem:[#allocation2] sm:$0xf]  ;;  %1005 = vrot.lane.b32.xlu1 %v1003_v19, %s5777_s26  ;;  %s5815_s26 = smov 107  }
 0x29e   : > { %v1075_v31 = vld [vmem:[#allocation2] sm:$0xf] }
 0x29f   : > { %v1093_v32 = vld [vmem:[#allocation2] sm:$0xf] }
 0x2a0   : > { %v1087_v33 = vld [vmem:[#allocation2] sm:$0xf]  ;;  %1023 = vrot.lane.b32.xlu0 %v1021_v20, %s5779_s29  ;;  %s5792_s29 = smov 103  }
 0x2a1   : > { %v4530_v34 = vld [vmem:[#allocation2] sm:$0xf]  ;;  %1017 = vrot.lane.b32.xlu1 %v1015_v21, %s5781_s0  ;;  %s5793_s0 = smov 104  }
 0x2a2   : > { %v4532_v35 = vld [vmem:[#allocation2] sm:$0xf] }
 0x2a3   : > { %v4534_v36 = vld [vmem:[#allocation2] sm:$0xf] }
 0x2a4   : > { %v4536_v37 = vld [vmem:[#allocation2] sm:$0xf]  ;;  %1035 = vrot.lane.b32.xlu0 %v1033_v22, %s5783_s30  ;;  %s5794_s30 = smov 101  }
 0x2a5   : > { %v4538_v38 = vld [vmem:[#allocation2] sm:$0xf]  ;;  %1029 = vrot.lane.b32.xlu1 %v1027_v23, %s5785_s28  ;;  %s5814_s28 = smov 102  }
 0x2a6   : > { %v4540_v39 = vld [vmem:[#allocation2] sm:$0xf] }
 0x2a7   : > { %v4542_v40 = vld [vmem:[#allocation2] sm:$0xf] }
 0x2a8   : > { %v4544_v41 = vld [vmem:[#allocation2] sm:$0xf]  ;;  %1047 = vrot.lane.b32.xlu0 %v1045_v24, %s5787_s6  ;;  %s5795_s6 = smov 99  }
 0x2a9   : > { %v4546_v42 = vld [vmem:[#allocation2] sm:$0xf]  ;;  %1041 = vrot.lane.b32.xlu1 %v1039_v25, %s5789_s1  ;;  %s5796_s1 = smov 100  }
 0x2aa   : > { %v4548_v43 = vld [vmem:[#allocation2] sm:$0xf] }
 0x2ab   : > { %v4550_v44 = vld [vmem:[#allocation2] sm:$0xf] }
 0x2ac   : > { %v4552_v45 = vld [vmem:[#allocation2] sm:$0xf]  ;;  %1059 = vrot.lane.b32.xlu0 %v1057_v26, %s5791_s9  ;;  %s5797_s9 = smov 96  }
 0x2ad   : > { %v4554_v46 = vld [vmem:[#allocation2] sm:$0xf]  ;;  %1053 = vrot.lane.b32.xlu1 %v1051_v27, %s5815_s26  ;;  %s5875_s26 = sld [smem:[#allocation18_spill]] }
 0x2ae   : > { %v4556_v47 = vld [vmem:[#allocation2] sm:$0xf] }
 0x2af   : > { %v4558_v48 = vld [vmem:[#allocation2] sm:$0xf] }
 0x2b0   : > { %v4560_v49 = vld [vmem:[#allocation2] sm:$0xf]  ;;  %1071 = vrot.lane.b32.xlu0 %v1069_v28, %s5792_s29  ;;  %s5798_s29 = smov 98   ;;  %v912_v28 = vld [vmem:[%s5739_s13 + $0x28] sm:$0xff] }
 0x2b1   : > { %v4562_v50 = vld [vmem:[#allocation2] sm:$0xf]  ;;  %1065 = vrot.lane.b32.xlu1 %v1063_v29, %s5793_s0  ;;  %s5799_s0 = smov 94  }
 0x2b2   : > { %v4564_v51 = vld [vmem:[#allocation2] sm:$0xf] }
 0x2b3   : > { %v4566_v52 = vld [vmem:[#allocation2] sm:$0xf] }
 0x2b4   : > { %v4568_v53 = vld [vmem:[#allocation2] sm:$0xf]  ;;  %1083 = vrot.lane.b32.xlu0 %v1081_v30, %s5794_s30  ;;  %s5800_s30 = smov 95  }
 0x2b5   : > { %v4570_v54 = vld [vmem:[#allocation2] sm:$0xf]  ;;  %1077 = vrot.lane.b32.xlu1 %v1075_v31, %s5814_s28  ;;  %s5879_s28 = smov 125  }
 0x2b6   : > { %v4572_v55 = vld [vmem:[#allocation2] sm:$0xf] }
 0x2b7   : > { %v940_v56 = vld [vmem:[#allocation2] sm:$0xf] }
 0x2b8   : > { %942 = vst.msk [vmem:[#allocation3] sm:$0xf] %vm941_vm4, %v940_v56  ;;  %1373 = vst [vmem:[#allocation2] sm:$0xff] %v4155_v0  ;;  %1095 = vrot.lane.b32.xlu0 %v1093_v32, %s5795_s6  ;;  %s5801_s6 = smov 92   ;;  %v4643_v58 = vld [vmem:[%s5875_s26] sm:$0xff]  ;;  %s5878_s26 = smov 124  }
 0x2b9   : > { %1089 = vrot.lane.b32.xlu1 %v1087_v33, %s5796_s1  ;;  %s5802_s1 = smov 93   ;;  %v1287_v59 = vcombine.high %v4643_v58, %v4643_v58  ;;  %v911_v27 = vld [vmem:[%s5739_s13 + $0x20] sm:$0xff] }
 0x2bb   : > { %3478 = vmatprep.mubr.msk.f32.mxu1 %vm1288_vm5, %v1287_v59 }
 0x2bc   : > { %1107 = vrot.lane.b32.xlu0 %v4530_v34, %s5797_s9  ;;  %s5803_s9 = smov 90  }
 0x2bd   : > { %1101 = vrot.lane.b32.xlu1 %v4532_v35, %s5798_s29  ;;  %s5804_s29 = smov 91  }
 0x2c0   : > { %1119 = vrot.lane.b32.xlu0 %v4534_v36, %s5799_s0  ;;  %s5805_s0 = smov 87  }
 0x2c1   : > { %1113 = vrot.lane.b32.xlu1 %v4536_v37, %s5800_s30  ;;  %s5806_s30 = smov 88  }
 0x2c4   : > { %1131 = vrot.lane.b32.xlu0 %v4538_v38, %s5801_s6  ;;  %s5807_s6 = smov 85   ;;  %v913_v38 = vld [vmem:[%s5739_s13 + $0x30] sm:$0xff] }
 0x2c5   : > { %1125 = vrot.lane.b32.xlu1 %v4540_v39, %s5802_s1  ;;  %s5808_s1 = smov 86   ;;  %v914_v39 = vld [vmem:[%s5739_s13 + $0x38] sm:$0xff] }
 0x2c8   : > { %1143 = vrot.lane.b32.xlu0 %v4542_v40, %s5803_s9  ;;  %s5809_s9 = smov 83  }
 0x2c9   : > { %1137 = vrot.lane.b32.xlu1 %v4544_v41, %s5804_s29  ;;  %s5810_s29 = smov 84  }
 0x2cc   : > { %1155 = vrot.lane.b32.xlu0 %v4546_v42, %s5805_s0  ;;  %s5811_s0 = smov 80  }
 0x2cd   : > { %1149 = vrot.lane.b32.xlu1 %v4548_v43, %s5806_s30  ;;  %s5812_s30 = smov 82  }
 0x2d0   : > { %1167 = vrot.lane.b32.xlu0 %v4550_v44, %s5807_s6  ;;  %s5813_s6 = smov 78  }
 0x2d1   : > { %1161 = vrot.lane.b32.xlu1 %v4552_v45, %s5808_s1  ;;  %s5817_s1 = smov 79  }
 0x2d4   : > { %1179 = vrot.lane.b32.xlu0 %v4554_v46, %s5809_s9  ;;  %s5816_s9 = smov 76  }
 0x2d5   : > { %1173 = vrot.lane.b32.xlu1 %v4556_v47, %s5810_s29  ;;  %s5818_s29 = smov 77  }
 0x2d8   : > { %1191 = vrot.lane.b32.xlu0 %v4558_v48, %s5811_s0  ;;  %s5820_s0 = smov 74  }
 0x2d9   : > { %1185 = vrot.lane.b32.xlu1 %v4560_v49, %s5812_s30  ;;  %s5819_s30 = smov 75   ;;  %v915_v49 = vld [vmem:[%s5739_s13 + $0x40] sm:$0xff] }
 0x2dc   : > { %1203 = vrot.lane.b32.xlu0 %v4562_v50, %s5813_s6  ;;  %v916_v50 = vld [vmem:[%s5739_s13 + $0x48] sm:$0xff]  ;;  %s5821_s6 = smov 10  }
 0x2dd   : > { %1197 = vrot.lane.b32.xlu1 %v4564_v51, %s5817_s1  ;;  %s5883_s1 = smov 119  }
 0x2e0   : > { %1215 = vrot.lane.b32.xlu0 %v4566_v52, %s5816_s9  ;;  %s5880_s9 = smov 123  }
 0x2e1   : > { %1209 = vrot.lane.b32.xlu1 %v4568_v53, %s5818_s29  ;;  %s5876_s29 = sld [smem:[#allocation19_spill]] }
 0x2e4   : > { %1227 = vrot.lane.b32.xlu0 %v4570_v54, %s5820_s0  ;;  %s5881_s0 = smov 122  }
 0x2e5   : > { %1221 = vrot.lane.b32.xlu1 %v4572_v55, %s5819_s30  ;;  %s5824_s30 = smov 121  }
 0x2e7   : > { %v906_v60 = vld [vmem:[%s5876_s29] sm:$0xf]  ;;  %s5882_s29 = smov 118  }
 0x2e9   : > { %1283 = vperm.xlu1 %4086, %v906_v60  }
 0x2fa   : > { %v952_v62 = vpop.permute.xlu0 %951 }
 0x2fb   : > { %v946_v63 = vpop.permute.xlu1 %945  ;;  %954 = vst.msk [vmem:[#allocation3 + $0x8] sm:$0xf] %vm941_vm4, %v952_v62  ;;  %v917_v62 = vld [vmem:[%s5739_s13 + $0x50] sm:$0xff] }
 0x2fc   : > { %948 = vst.msk [vmem:[#allocation3 + $0x4] sm:$0xf] %vm941_vm4, %v946_v63  ;;  %v918_v63 = vld [vmem:[%s5739_s13 + $0x58] sm:$0xff] }
 0x2fe   : > { %v964_v3 = vpop.permute.xlu0 %963 }
 0x2ff   : > { %v958_v4 = vpop.permute.xlu1 %957  ;;  %966 = vst.msk [vmem:[#allocation3 + $0x10] sm:$0xf] %vm941_vm4, %v964_v3 }
 0x300   : > { %960 = vst.msk [vmem:[#allocation3 + $0xc] sm:$0xf] %vm941_vm4, %v958_v4 }
 0x302   : > { %v976_v5 = vpop.permute.xlu0 %975 }
 0x303   : > { %v970_v1 = vpop.permute.xlu1 %969  ;;  %978 = vst.msk [vmem:[#allocation3 + $0x18] sm:$0xf] %vm941_vm4, %v976_v5  ;;  %v1231_v2 = vld [vmem:[#allocation3] sm:$0xff] }
 0x304   : > { %972 = vst.msk [vmem:[#allocation3 + $0x14] sm:$0xf] %vm941_vm4, %v970_v1  ;;  %v1256_v11 = vmul.f32 %v1231_v2, %v907_v6 }
 0x306   : > { %v988_v8 = vpop.permute.xlu0 %987 }
 0x307   : > { %v982_v9 = vpop.permute.xlu1 %981  ;;  %v1232_v10 = vld [vmem:[#allocation3 + $0x8] sm:$0xff]  ;;  %990 = vst.msk [vmem:[#allocation3 + $0x20] sm:$0xf] %vm941_vm4, %v988_v8 }
 0x308   : > { %984 = vst.msk [vmem:[#allocation3 + $0x1c] sm:$0xf] %vm941_vm4, %v982_v9  ;;  %v1257_v12 = vmul.f32 %v1232_v10, %v908_v7  ;;  %v919_v10 = vld [vmem:[%s5739_s13 + $0x60] sm:$0xff] }
 0x30a   : > { %v3802_v13 = vpack.c.bf16 %v1257_v12, %v1256_v11  ;;  %v1000_v14 = vpop.permute.xlu0 %999  ;;  %v920_v11 = vld [vmem:[%s5739_s13 + $0x68] sm:$0xff] }
 0x30b   : > { %v994_v15 = vpop.permute.xlu1 %993  ;;  %1002 = vst.msk [vmem:[#allocation3 + $0x28] sm:$0xf] %vm941_vm4, %v1000_v14  ;;  %v1233_v16 = vld [vmem:[#allocation3 + $0x10] sm:$0xff] }
 0x30c   : > { %996 = vst.msk [vmem:[#allocation3 + $0x24] sm:$0xf] %vm941_vm4, %v994_v15  ;;  %3803 = vmatpush1.bf16.msra.mxu1 %v3802_v13  ;;  %v1258_v22 = vmul.f32 %v1233_v16, %v909_v17 }
 0x30d   : > { %3804 = vmatprep.subr.bf16.mxu1 %v4168_v57 }
 0x30e   : > { %v1012_v20 = vpop.permute.xlu0 %1011 }
 0x30f   : > { %v1234_v19 = vld [vmem:[#allocation3 + $0x18] sm:$0xff]  ;;  %v1006_v21 = vpop.permute.xlu1 %1005  ;;  %1014 = vst.msk [vmem:[#allocation3 + $0x30] sm:$0xf] %vm941_vm4, %v1012_v20 }
 0x310   : > { %1008 = vst.msk [vmem:[#allocation3 + $0x2c] sm:$0xf] %vm941_vm4, %v1006_v21  ;;  %v1259_v23 = vmul.f32 %v1234_v19, %v910_v18  ;;  %v921_v21 = vld [vmem:[%s5739_s13 + $0x70] sm:$0xff] }
 0x312   : > { %v3805_v24 = vpack.c.bf16 %v1259_v23, %v1258_v22  ;;  %v1024_v25 = vpop.permute.xlu0 %1023  ;;  %v922_v22 = vld [vmem:[%s5739_s13 + $0x78] sm:$0xff] }
 0x313   : > { %v1018_v26 = vpop.permute.xlu1 %1017  ;;  %1026 = vst.msk [vmem:[#allocation3 + $0x38] sm:$0xf] %vm941_vm4, %v1024_v25  ;;  %v1235_v29 = vld [vmem:[#allocation3 + $0x20] sm:$0xff] }
 0x314   : > { %1020 = vst.msk [vmem:[#allocation3 + $0x34] sm:$0xf] %vm941_vm4, %v1018_v26  ;;  %3806 = vmatpush1.bf16.msra.mxu1 %v3805_v24  ;;  %v1260_v33 = vmul.f32 %v1235_v29, %v911_v27 }
 0x315   : > { %3807 = vmatprep.subr.bf16.mxu1 %v4168_v57 }
 0x316   : > { %v1036_v30 = vpop.permute.xlu0 %1035 }
 0x317   : > { %v1030_v31 = vpop.permute.xlu1 %1029  ;;  %v1236_v32 = vld [vmem:[#allocation3 + $0x28] sm:$0xff]  ;;  %1038 = vst.msk [vmem:[#allocation3 + $0x40] sm:$0xf] %vm941_vm4, %v1036_v30 }
 0x318   : > { %1032 = vst.msk [vmem:[#allocation3 + $0x3c] sm:$0xf] %vm941_vm4, %v1030_v31  ;;  %v1261_v34 = vmul.f32 %v1236_v32, %v912_v28  ;;  %v923_v32 = vld [vmem:[%s5739_s13 + $0x80] sm:$0xff] }
 0x31a   : > { %v3808_v35 = vpack.c.bf16 %v1261_v34, %v1260_v33  ;;  %v1048_v36 = vpop.permute.xlu0 %1047  ;;  %v924_v33 = vld [vmem:[%s5739_s13 + $0x88] sm:$0xff] }
 0x31b   : > { %v1042_v37 = vpop.permute.xlu1 %1041  ;;  %1050 = vst.msk [vmem:[#allocation3 + $0x48] sm:$0xf] %vm941_vm4, %v1048_v36  ;;  %v1237_v40 = vld [vmem:[#allocation3 + $0x30] sm:$0xff] }
 0x31c   : > { %1044 = vst.msk [vmem:[#allocation3 + $0x44] sm:$0xf] %vm941_vm4, %v1042_v37  ;;  %3809 = vmatpush1.bf16.msra.mxu1 %v3808_v35  ;;  %v1262_v44 = vmul.f32 %v1237_v40, %v913_v38 }
 0x31d   : > { %3810 = vmatprep.subr.bf16.mxu1 %v4168_v57 }
 0x31e   : > { %v1060_v41 = vpop.permute.xlu0 %1059 }
 0x31f   : > { %v1054_v42 = vpop.permute.xlu1 %1053  ;;  %v1238_v43 = vld [vmem:[#allocation3 + $0x38] sm:$0xff]  ;;  %1062 = vst.msk [vmem:[#allocation3 + $0x50] sm:$0xf] %vm941_vm4, %v1060_v41 }
 0x320   : > { %1056 = vst.msk [vmem:[#allocation3 + $0x4c] sm:$0xf] %vm941_vm4, %v1054_v42  ;;  %v1263_v45 = vmul.f32 %v1238_v43, %v914_v39  ;;  %v925_v43 = vld [vmem:[%s5739_s13 + $0x90] sm:$0xff] }
 0x322   : > { %v3811_v46 = vpack.c.bf16 %v1263_v45, %v1262_v44  ;;  %v1072_v47 = vpop.permute.xlu0 %1071  ;;  %v926_v44 = vld [vmem:[%s5739_s13 + $0x98] sm:$0xff] }
 0x323   : > { %v1066_v48 = vpop.permute.xlu1 %1065  ;;  %1074 = vst.msk [vmem:[#allocation3 + $0x58] sm:$0xf] %vm941_vm4, %v1072_v47  ;;  %v1239_v51 = vld [vmem:[#allocation3 + $0x40] sm:$0xff] }
 0x324   : > { %1068 = vst.msk [vmem:[#allocation3 + $0x54] sm:$0xf] %vm941_vm4, %v1066_v48  ;;  %3812 = vmatpush1.bf16.msra.mxu1 %v3811_v46  ;;  %v1264_v55 = vmul.f32 %v1239_v51, %v915_v49 }
 0x325   : > { %3813 = vmatprep.subr.bf16.mxu1 %v4168_v57 }
 0x326   : > { %v1084_v52 = vpop.permute.xlu0 %1083 }
 0x327   : > { %v1078_v53 = vpop.permute.xlu1 %1077  ;;  %v1240_v54 = vld [vmem:[#allocation3 + $0x48] sm:$0xff]  ;;  %1086 = vst.msk [vmem:[#allocation3 + $0x60] sm:$0xf] %vm941_vm4, %v1084_v52 }
 0x328   : > { %1080 = vst.msk [vmem:[#allocation3 + $0x5c] sm:$0xf] %vm941_vm4, %v1078_v53  ;;  %v1265_v56 = vmul.f32 %v1240_v54, %v916_v50  ;;  %v927_v54 = vld [vmem:[%s5739_s13 + $0xa0] sm:$0xff] }
 0x32a   : > { %v3814_v59 = vpack.c.bf16 %v1265_v56, %v1264_v55  ;;  %v1096_v60 = vpop.permute.xlu0 %1095  ;;  %v928_v55 = vld [vmem:[%s5739_s13 + $0xa8] sm:$0xff] }
 0x32b   : > { %v1090_v61 = vpop.permute.xlu1 %1089  ;;  %1098 = vst.msk [vmem:[#allocation3 + $0x68] sm:$0xf] %vm941_vm4, %v1096_v60  ;;  %v1241_v3 = vld [vmem:[#allocation3 + $0x50] sm:$0xff] }
 0x32c   : > { %1092 = vst.msk [vmem:[#allocation3 + $0x64] sm:$0xf] %vm941_vm4, %v1090_v61  ;;  %3815 = vmatpush1.bf16.msra.mxu1 %v3814_v59  ;;  %v1266_v6 = vmul.f32 %v1241_v3, %v917_v62 }
 0x32d   : > { %3816 = vmatprep.subr.bf16.mxu1 %v4168_v57 }
 0x32e   : > { %v1108_v4 = vpop.permute.xlu0 %1107 }
 0x32f   : > { %v1102_v5 = vpop.permute.xlu1 %1101  ;;  %v1242_v1 = vld [vmem:[#allocation3 + $0x58] sm:$0xff]  ;;  %1110 = vst.msk [vmem:[#allocation3 + $0x70] sm:$0xf] %vm941_vm4, %v1108_v4  ;;  %v929_v4 = vld [vmem:[%s5739_s13 + $0xb0] sm:$0xff] }
 0x330   : > { %1104 = vst.msk [vmem:[#allocation3 + $0x6c] sm:$0xf] %vm941_vm4, %v1102_v5  ;;  %v1267_v7 = vmul.f32 %v1242_v1, %v918_v63  ;;  %v930_v5 = vld [vmem:[%s5739_s13 + $0xb8] sm:$0xff] }
 0x332   : > { %v3817_v2 = vpack.c.bf16 %v1267_v7, %v1266_v6  ;;  %v1120_v8 = vpop.permute.xlu0 %1119 }
 0x333   : > { %v1114_v9 = vpop.permute.xlu1 %1113  ;;  %1122 = vst.msk [vmem:[#allocation3 + $0x78] sm:$0xf] %vm941_vm4, %v1120_v8  ;;  %v1243_v12 = vld [vmem:[#allocation3 + $0x60] sm:$0xff] }
 0x334   : > { %1116 = vst.msk [vmem:[#allocation3 + $0x74] sm:$0xf] %vm941_vm4, %v1114_v9  ;;  %3818 = vmatpush1.bf16.msra.mxu1 %v3817_v2  ;;  %v1268_v16 = vmul.f32 %v1243_v12, %v919_v10  ;;  %v931_v9 = vld [vmem:[%s5739_s13 + $0xc0] sm:$0xf] }
 0x335   : > { %3819 = vmatprep.subr.bf16.mxu1 %v4168_v57 }
 0x336   : > { %v1132_v13 = vpop.permute.xlu0 %1131 }
 0x337   : > { %v1126_v14 = vpop.permute.xlu1 %1125  ;;  %v1244_v15 = vld [vmem:[#allocation3 + $0x68] sm:$0xff]  ;;  %1134 = vst.msk [vmem:[#allocation3 + $0x80] sm:$0xf] %vm941_vm4, %v1132_v13 }
 0x338   : > { %1128 = vst.msk [vmem:[#allocation3 + $0x7c] sm:$0xf] %vm941_vm4, %v1126_v14  ;;  %v1269_v17 = vmul.f32 %v1244_v15, %v920_v11 }
 0x33a   : > { %v3820_v18 = vpack.c.bf16 %v1269_v17, %v1268_v16  ;;  %v1144_v19 = vpop.permute.xlu0 %1143  ;;  %v1365_v16 = vld [vmem:[%s5877_s17] sm:$0xff]  ;;  %v1366_v17 = vld [vmem:[%s5877_s17 + $0x8] sm:$0xff] }
 0x33b   : > { %v1138_v20 = vpop.permute.xlu1 %1137  ;;  %1146 = vst.msk [vmem:[#allocation3 + $0x88] sm:$0xf] %vm941_vm4, %v1144_v19  ;;  %v1245_v23 = vld [vmem:[#allocation3 + $0x70] sm:$0xff]  ;;  %v3838_v19 = vpack.c.bf16 %v1366_v17, %v1365_v16 }
 0x33c   : > { %1140 = vst.msk [vmem:[#allocation3 + $0x84] sm:$0xf] %vm941_vm4, %v1138_v20  ;;  %3821 = vmatpush1.bf16.msra.mxu1 %v3820_v18  ;;  %v1270_v27 = vmul.f32 %v1245_v23, %v921_v21  ;;  %v1367_v18 = vld [vmem:[%s5877_s17 + $0x10] sm:$0xff]  ;;  %v1368_v20 = vld [vmem:[%s5877_s17 + $0x18] sm:$0xff]  ;;  %v1370_v23 = vld [vmem:[%s5877_s17 + $0x28] sm:$0xff] }
 0x33d   : > { %3822 = vmatprep.subr.bf16.mxu1 %v4168_v57  ;;  %3839 = vmatpush3.bf16.msra.mxu0 %v3838_v19  ;;  %v3841_v21 = vpack.c.bf16 %v1368_v20, %v1367_v18  ;;  %v1465_v19 = vld [vmem:[%s5740_s14 + $0x10] sm:$0xff]  ;;  %v1466_v20 = vld [vmem:[%s5740_s14 + $0x18] sm:$0xff] }
 0x33e   : > { %v1156_v24 = vpop.permute.xlu0 %1155  ;;  %3840 = vmatprep.subr.bf16.mxu0 %v4168_v57 }
 0x33f   : > { %v1150_v25 = vpop.permute.xlu1 %1149  ;;  %v1246_v26 = vld [vmem:[#allocation3 + $0x78] sm:$0xff]  ;;  %1158 = vst.msk [vmem:[#allocation3 + $0x90] sm:$0xf] %vm941_vm4, %v1156_v24 }
 0x340   : > { %1152 = vst.msk [vmem:[#allocation3 + $0x8c] sm:$0xf] %vm941_vm4, %v1150_v25  ;;  %v1271_v28 = vmul.f32 %v1246_v26, %v922_v22  ;;  %v1369_v22 = vld [vmem:[%s5877_s17 + $0x20] sm:$0xff]  ;;  %v1371_v25 = vld [vmem:[%s5877_s17 + $0x30] sm:$0xff]  ;;  %v1372_v26 = vld [vmem:[%s5877_s17 + $0x38] sm:$0xff]  ;;  %s5835_s17 = smov 113  }
 0x341   : > { %3842 = vmatpush3.bf16.msra.mxu0 %v3841_v21  ;;  %v3844_v24 = vpack.c.bf16 %v1370_v23, %v1369_v22 }
 0x342   : > { %v3823_v29 = vpack.c.bf16 %v1271_v28, %v1270_v27  ;;  %v1168_v30 = vpop.permute.xlu0 %1167  ;;  %3843 = vmatprep.subr.bf16.mxu0 %v4168_v57  ;;  %v3847_v28 = vpack.c.bf16 %v1372_v26, %v1371_v25 }
 0x343   : > { %v1162_v31 = vpop.permute.xlu1 %1161  ;;  %1170 = vst.msk [vmem:[#allocation3 + $0x98] sm:$0xf] %vm941_vm4, %v1168_v30  ;;  %v1247_v34 = vld [vmem:[#allocation3 + $0x80] sm:$0xff] }
 0x344   : > { %1164 = vst.msk [vmem:[#allocation3 + $0x94] sm:$0xf] %vm941_vm4, %v1162_v31  ;;  %3824 = vmatpush1.bf16.msra.mxu1 %v3823_v29  ;;  %v1272_v38 = vmul.f32 %v1247_v34, %v923_v32 }
 0x345   : > { %3825 = vmatprep.subr.bf16.mxu1 %v4168_v57  ;;  %3845 = vmatpush3.bf16.msra.mxu0 %v3844_v24 }
 0x346   : > { %v1180_v35 = vpop.permute.xlu0 %1179  ;;  %3846 = vmatprep.subr.bf16.mxu0 %v4168_v57 }
 0x347   : > { %v1174_v36 = vpop.permute.xlu1 %1173  ;;  %v1248_v37 = vld [vmem:[#allocation3 + $0x88] sm:$0xff]  ;;  %1182 = vst.msk [vmem:[#allocation3 + $0xa0] sm:$0xf] %vm941_vm4, %v1180_v35 }
 0x348   : > { %1176 = vst.msk [vmem:[#allocation3 + $0x9c] sm:$0xf] %vm941_vm4, %v1174_v36  ;;  %v1273_v39 = vmul.f32 %v1248_v37, %v924_v33 }
 0x349   : > { %3848 = vmatpush3.bf16.msra.mxu0 %v3847_v28 }
 0x34a   : > { %v3826_v40 = vpack.c.bf16 %v1273_v39, %v1272_v38  ;;  %v1192_v41 = vpop.permute.xlu0 %1191  ;;  %3849 = vmatprep.subr.bf16.mxu0 %v4168_v57 }
 0x34b   : > { %v1186_v42 = vpop.permute.xlu1 %1185  ;;  %1194 = vst.msk [vmem:[#allocation3 + $0xa8] sm:$0xf] %vm941_vm4, %v1192_v41  ;;  %v1249_v45 = vld [vmem:[#allocation3 + $0x90] sm:$0xff] }
 0x34c   : > { %1188 = vst.msk [vmem:[#allocation3 + $0xa4] sm:$0xf] %vm941_vm4, %v1186_v42  ;;  %3827 = vmatpush1.bf16.msra.mxu1 %v3826_v40  ;;  %v1274_v49 = vmul.f32 %v1249_v45, %v925_v43 }
 0x34d   : > { %3828 = vmatprep.subr.bf16.mxu1 %v4168_v57 }
 0x34e   : > { %v1204_v46 = vpop.permute.xlu0 %1203 }
 0x34f   : > { %v1198_v47 = vpop.permute.xlu1 %1197  ;;  %v1250_v48 = vld [vmem:[#allocation3 + $0x98] sm:$0xff]  ;;  %1206 = vst.msk [vmem:[#allocation3 + $0xb0] sm:$0xf] %vm941_vm4, %v1204_v46 }
 0x350   : > { %1200 = vst.msk [vmem:[#allocation3 + $0xac] sm:$0xf] %vm941_vm4, %v1198_v47  ;;  %v1275_v50 = vmul.f32 %v1250_v48, %v926_v44 }
 0x352   : > { %v3829_v51 = vpack.c.bf16 %v1275_v50, %v1274_v49  ;;  %v1216_v52 = vpop.permute.xlu0 %1215 }
 0x353   : > { %v1210_v53 = vpop.permute.xlu1 %1209  ;;  %1218 = vst.msk [vmem:[#allocation3 + $0xb8] sm:$0xf] %vm941_vm4, %v1216_v52  ;;  %v1251_v56 = vld [vmem:[#allocation3 + $0xa0] sm:$0xff] }
 0x354   : > { %1212 = vst.msk [vmem:[#allocation3 + $0xb4] sm:$0xf] %vm941_vm4, %v1210_v53  ;;  %3830 = vmatpush1.bf16.msra.mxu1 %v3829_v51  ;;  %v1276_v62 = vmul.f32 %v1251_v56, %v927_v54 }
 0x355   : > { %3831 = vmatprep.subr.bf16.mxu1 %v4168_v57 }
 0x356   : > { %v1228_v59 = vpop.permute.xlu0 %1227 }
 0x357   : > { %v1222_v60 = vpop.permute.xlu1 %1221  ;;  %v1252_v61 = vld [vmem:[#allocation3 + $0xa8] sm:$0xff]  ;;  %1230 = vst.msk [vmem:[#allocation3 + $0xc0] sm:$0xf] %vm941_vm4, %v1228_v59 }
 0x358   : > { %1224 = vst.msk [vmem:[#allocation3 + $0xbc] sm:$0xf] %vm941_vm4, %v1222_v60  ;;  %v1277_v63 = vmul.f32 %v1252_v61, %v928_v55 }
 0x35a   : > { %v3832_v3 = vpack.c.bf16 %v1277_v63, %v1276_v62  ;;  %v1462_v63 = vld [vmem:[%s5893_s23] sm:$0xf]  ;;  %s5903_s23 = smov 107  }
 0x35b   : > { %v1253_v1 = vld [vmem:[#allocation3 + $0xb0] sm:$0xff] }
 0x35c   : > { %3833 = vmatpush1.bf16.msra.mxu1 %v3832_v3  ;;  %v1278_v7 = vmul.f32 %v1253_v1, %v929_v4 }
 0x35d   : > { %3834 = vmatprep.subr.bf16.mxu1 %v4168_v57 }
 0x35e   : > { %v1255_v10 = vld [vmem:[#allocation3 + $0xc0] sm:$0xf] }
 0x35f   : > { %v1254_v6 = vld [vmem:[#allocation3 + $0xb8] sm:$0xff]  ;;  %v1280_v11 = vmul.f32 %v1255_v10, %v931_v9 }
 0x360   : > { %v1279_v2 = vmul.f32 %v1254_v6, %v930_v5 }
 0x362   : > { %v3835_v8 = vpack.c.bf16 %v1279_v2, %v1278_v7  ;;  %v1463_v2 = vld [vmem:[%s5740_s14] sm:$0xff] }
 0x364   : > { %3836 = vmatpush1.bf16.msra.mxu1 %v3835_v8  ;;  %v1464_v8 = vld [vmem:[%s5740_s14 + $0x8] sm:$0xff] }
 0x365   : > { %1342 = vmatprep.subr.mxu1 %v4155_v0 }
 0x368   : > { %3477 = vmatpush1.msk.msra.mxu1 %vm810_vm0, %v1280_v11  ;;  %v1284_v12 = vpop.permute.xlu1 %1283 }
 0x369   : > { %1359 = vmatmul.mubr.f32.vlgmr.msra.gmra.mrb[0].mxu1 %v4643_v58  ;;  %3867 = vmatprep.subr.bf16.mxu1 %v4168_v57 }
 0x36a   : > { %3664 = vmatprep.mubr.msk.f32.mxu1 %vm4207_vm6, %v4155_v0 }
 0x43c   : > { %v1360_v13 = vpop.f32.mrb[0].mxu1 }
 0x43d   : > { %v4789_v14 = vadd.f32 %v1360_v13, %v1284_v12  ;;  %v1362_v15 = vpop.f32.mrb[1].mxu1 }
 0x43f   : > { %v1364_v58 = vmax.f32 %v4789_v14, 0.0  ;;  %v4983_v14 = vld [vmem:[%s5741_s15] sm:$0xff] }
 0x441   : > { %1375 = vst.msk [vmem:[#allocation2] sm:$0xf] %vm941_vm4, %v1364_v58 }
 0x448   : > { %v1376_v27 = vld [vmem:[#allocation2] sm:$0xf] }
 0x449   : > { %1378 = vrot.lane.b32.xlu0 %v1376_v27, %s5874_s3  ;;  %1476 = vst [vmem:[#allocation2] sm:$0xff] %v4155_v0 }
 0x4bb   : > { %v1379_v29 = vpop.permute.xlu0 %1378 }
 0x4bc   : > { %v1381_v30 = vmax.f32 %v1376_v27, %v1379_v29 }
 0x4be   : > { %1383 = vrot.lane.b32.xlu1 %v1381_v30, %s5826_s5 }
 0x530   : > { %v1384_v31 = vpop.permute.xlu1 %1383 }
 0x531   : > { %v1386_v32 = vmax.f32 %v1381_v30, %v1384_v31  ;;  %v1467_v30 = vld [vmem:[%s5740_s14 + $0x20] sm:$0xff]  ;;  %v1468_v31 = vld [vmem:[%s5740_s14 + $0x28] sm:$0xff] }
 0x533   : > { %3629 = vmatmul.mubr.msk.f32.vlgmr.msra.gmra.mrb[2].mxu0 %vm1387_vm7, %v1386_v32 }
 0x534   : > { %3657 = vmatprep.mubr.msk.f32.mxu0 %vm4207_vm6, %v4155_v0 }
 0x606   : > { %v1457_v33 = vpop.f32.mrb[2].mxu0 }
 0x607   : > { %1479 = vrot.lane.b32.xlu0 %v1457_v33, %s5821_s6  ;;  %v3630_v34 = vpop.f32.mrb[3].mxu0  ;;  %s5884_s6 = smov 116  }
 0x679   : > { %v1480_v35 = vpop.permute.xlu0 %1479 }
 0x67a   : > { %1483 = vst.msk [vmem:[#allocation2] sm:$0xf] %vm1482_vm8, %v1480_v35 }
 0x681   : > { %v1484_v36 = vld [vmem:[#allocation2] sm:$0xf] }
 0x682   : > { %v1493_v37 = vld [vmem:[#allocation2] sm:$0xf]  ;;  %1486 = vst.msk [vmem:[#allocation3] sm:$0xf] %vm1485_vm9, %v1484_v36 }
 0x683   : > { %v1487_v38 = vld [vmem:[#allocation2] sm:$0xf]  ;;  %1495 = vrot.lane.b32.xlu0 %v1493_v37, %s5822_s27  ;;  %s5885_s27 = smov 117  }
 0x684   : > { %1489 = vrot.lane.b32.xlu1 %v1487_v38, %s5874_s3  ;;  %v1505_v39 = vld [vmem:[#allocation2] sm:$0xf] }
 0x685   : > { %v1499_v40 = vld [vmem:[#allocation2] sm:$0xf] }
 0x686   : > { %v1517_v41 = vld [vmem:[#allocation2] sm:$0xf] }
 0x687   : > { %1507 = vrot.lane.b32.xlu0 %v1505_v39, %s5878_s26  ;;  %v1511_v42 = vld [vmem:[#allocation2] sm:$0xf] }
 0x688   : > { %1501 = vrot.lane.b32.xlu1 %v1499_v40, %s5879_s28  ;;  %v1529_v43 = vld [vmem:[#allocation2] sm:$0xf] }
 0x689   : > { %v1523_v44 = vld [vmem:[#allocation2] sm:$0xf] }
 0x68a   : > { %v1541_v45 = vld [vmem:[#allocation2] sm:$0xf] }
 0x68b   : > { %v1535_v46 = vld [vmem:[#allocation2] sm:$0xf]  ;;  %1519 = vrot.lane.b32.xlu0 %v1517_v41, %s5880_s9  ;;  %v1469_v41 = vld [vmem:[%s5740_s14 + $0x30] sm:$0xff] }
 0x68c   : > { %v1553_v47 = vld [vmem:[#allocation2] sm:$0xf]  ;;  %1513 = vrot.lane.b32.xlu1 %v1511_v42, %s5878_s26  ;;  %v1470_v42 = vld [vmem:[%s5740_s14 + $0x38] sm:$0xff] }
 0x68d   : > { %v1547_v48 = vld [vmem:[#allocation2] sm:$0xf] }
 0x68e   : > { %v1565_v49 = vld [vmem:[#allocation2] sm:$0xf] }
 0x68f   : > { %v1559_v50 = vld [vmem:[#allocation2] sm:$0xf]  ;;  %1531 = vrot.lane.b32.xlu0 %v1529_v43, %s5824_s30  ;;  %s5887_s30 = smov 114  }
 0x690   : > { %v1577_v51 = vld [vmem:[#allocation2] sm:$0xf]  ;;  %1525 = vrot.lane.b32.xlu1 %v1523_v44, %s5881_s0 }
 0x691   : > { %v1571_v52 = vld [vmem:[#allocation2] sm:$0xf] }
 0x692   : > { %v1589_v53 = vld [vmem:[#allocation2] sm:$0xf] }
 0x693   : > { %v1583_v54 = vld [vmem:[#allocation2] sm:$0xf]  ;;  %1543 = vrot.lane.b32.xlu0 %v1541_v45, %s5826_s5 }
 0x694   : > { %v1601_v55 = vld [vmem:[#allocation2] sm:$0xf]  ;;  %1537 = vrot.lane.b32.xlu1 %v1535_v46, %s5826_s5  ;;  %s5889_s5 = smov 110  }
 0x695   : > { %v1595_v56 = vld [vmem:[#allocation2] sm:$0xf] }
 0x696   : > { %v1613_v59 = vld [vmem:[#allocation2] sm:$0xf] }
 0x697   : > { %v1607_v60 = vld [vmem:[#allocation2] sm:$0xf]  ;;  %1555 = vrot.lane.b32.xlu0 %v1553_v47, %s5882_s29 }
 0x698   : > { %v1625_v61 = vld [vmem:[#allocation2] sm:$0xf]  ;;  %1549 = vrot.lane.b32.xlu1 %v1547_v48, %s5883_s1 }
 0x699   : > { %v1619_v62 = vld [vmem:[#allocation2] sm:$0xf] }
 0x69a   : > { %1742 = vst [vmem:[#allocation2] sm:$0xff] %v4155_v0 }
 0x69b   : > { %1567 = vrot.lane.b32.xlu0 %v1565_v49, %s5884_s6 }
 0x69c   : > { %1561 = vrot.lane.b32.xlu1 %v1559_v50, %s5885_s27 }
 0x69f   : > { %1579 = vrot.lane.b32.xlu0 %v1577_v51, %s5886_s16 }
 0x6a0   : > { %1573 = vrot.lane.b32.xlu1 %v1571_v52, %s5884_s6  ;;  %v1471_v52 = vld [vmem:[%s5740_s14 + $0x40] sm:$0xff] }
 0x6a3   : > { %1591 = vrot.lane.b32.xlu0 %v1589_v53, %s5835_s17  ;;  %v1472_v53 = vld [vmem:[%s5740_s14 + $0x48] sm:$0xff]  ;;  %s5896_s17 = smov 126  }
 0x6a4   : > { %1585 = vrot.lane.b32.xlu1 %v1583_v54, %s5887_s30 }
 0x6a7   : > { %1603 = vrot.lane.b32.xlu0 %v1601_v55, %s5888_s25 }
 0x6a8   : > { %1597 = vrot.lane.b32.xlu1 %v1595_v56, %s5888_s25 }
 0x6ab   : > { %1615 = vrot.lane.b32.xlu0 %v1613_v59, %s5889_s5 }
 0x6ac   : > { %1609 = vrot.lane.b32.xlu1 %v1607_v60, %s5890_s4 }
 0x6af   : > { %1627 = vrot.lane.b32.xlu0 %v1625_v61, %s5891_s7 }
 0x6b0   : > { %1621 = vrot.lane.b32.xlu1 %v1619_v62, %s5892_s2 }
 0x6b4   : > { %1659 = vperm.xlu1 %4086, %v1462_v63   ;;  %v1473_v63 = vld [vmem:[%s5740_s14 + $0x50] sm:$0xff] }
 0x6f5   : > { %v1496_v3 = vpop.permute.xlu0 %1495 }
 0x6f6   : > { %v1490_v4 = vpop.permute.xlu1 %1489  ;;  %1498 = vst.msk [vmem:[#allocation3 + $0x8] sm:$0xf] %vm1485_vm9, %v1496_v3  ;;  %v1474_v3 = vld [vmem:[%s5740_s14 + $0x58] sm:$0xff] }
 0x6f7   : > { %1492 = vst.msk [vmem:[#allocation3 + $0x4] sm:$0xf] %vm1485_vm9, %v1490_v4 }
 0x6f9   : > { %v1508_v5 = vpop.permute.xlu0 %1507 }
 0x6fa   : > { %v1502_v1 = vpop.permute.xlu1 %1501  ;;  %1510 = vst.msk [vmem:[#allocation3 + $0x10] sm:$0xf] %vm1485_vm9, %v1508_v5 }
 0x6fb   : > { %1504 = vst.msk [vmem:[#allocation3 + $0xc] sm:$0xf] %vm1485_vm9, %v1502_v1 }
 0x6fd   : > { %v1520_v6 = vpop.permute.xlu0 %1519 }
 0x6fe   : > { %v1514_v7 = vpop.permute.xlu1 %1513  ;;  %1522 = vst.msk [vmem:[#allocation3 + $0x18] sm:$0xf] %vm1485_vm9, %v1520_v6  ;;  %v1631_v9 = vld [vmem:[#allocation3] sm:$0xff] }
 0x6ff   : > { %1516 = vst.msk [vmem:[#allocation3 + $0x14] sm:$0xf] %vm1485_vm9, %v1514_v7  ;;  %v1644_v13 = vmul.f32 %v1631_v9, %v1463_v2  ;;  %v1475_v2 = vld [vmem:[%s5740_s14 + $0x60] sm:$0xf] }
 0x701   : > { %v1532_v10 = vpop.permute.xlu0 %1531 }
 0x702   : > { %v1526_v11 = vpop.permute.xlu1 %1525  ;;  %v1632_v12 = vld [vmem:[#allocation3 + $0x8] sm:$0xff]  ;;  %1534 = vst.msk [vmem:[#allocation3 + $0x20] sm:$0xf] %vm1485_vm9, %v1532_v10  ;;  %v1461_v10 = vld [vmem:[%s5894_s20] sm:$0xf]  ;;  %s5899_s20 = smov 10  }
 0x703   : > { %1528 = vst.msk [vmem:[#allocation3 + $0x1c] sm:$0xf] %vm1485_vm9, %v1526_v11  ;;  %v1645_v15 = vmul.f32 %v1632_v12, %v1464_v8 }
 0x705   : > { %v3850_v16 = vpack.c.bf16 %v1645_v15, %v1644_v13  ;;  %v1544_v17 = vpop.permute.xlu0 %1543 }
 0x706   : > { %v1538_v18 = vpop.permute.xlu1 %1537  ;;  %1546 = vst.msk [vmem:[#allocation3 + $0x28] sm:$0xf] %vm1485_vm9, %v1544_v17  ;;  %v1633_v21 = vld [vmem:[#allocation3 + $0x10] sm:$0xff]  ;;  %v1741_v17 = vld [vmem:[%s5895_s18 + $0x8] sm:$0xff] }
 0x707   : > { %1540 = vst.msk [vmem:[#allocation3 + $0x24] sm:$0xf] %vm1485_vm9, %v1538_v18  ;;  %3851 = vmatpush3.bf16.msra.mxu0 %v3850_v16  ;;  %v1646_v25 = vmul.f32 %v1633_v21, %v1465_v19  ;;  %v1740_v16 = vld [vmem:[%s5895_s18] sm:$0xff]  ;;  %s5907_s18 = smov 102  }
 0x708   : > { %3852 = vmatprep.subr.bf16.mxu0 %v4168_v57  ;;  %v3868_v19 = vpack.c.bf16 %v1741_v17, %v1740_v16 }
 0x709   : > { %v1556_v22 = vpop.permute.xlu0 %1555 }
 0x70a   : > { %v1550_v23 = vpop.permute.xlu1 %1549  ;;  %v1634_v24 = vld [vmem:[#allocation3 + $0x18] sm:$0xff]  ;;  %1558 = vst.msk [vmem:[#allocation3 + $0x30] sm:$0xf] %vm1485_vm9, %v1556_v22  ;;  %3869 = vmatpush3.bf16.msra.mxu1 %v3868_v19 }
 0x70b   : > { %1552 = vst.msk [vmem:[#allocation3 + $0x2c] sm:$0xf] %vm1485_vm9, %v1550_v23  ;;  %v1647_v26 = vmul.f32 %v1634_v24, %v1466_v20  ;;  %3870 = vmatprep.subr.bf16.mxu1 %v4168_v57 }
 0x70d   : > { %v3853_v27 = vpack.c.bf16 %v1647_v26, %v1646_v25  ;;  %v1568_v28 = vpop.permute.xlu0 %1567 }
 0x70e   : > { %v1562_v29 = vpop.permute.xlu1 %1561  ;;  %1570 = vst.msk [vmem:[#allocation3 + $0x38] sm:$0xf] %vm1485_vm9, %v1568_v28  ;;  %v1635_v32 = vld [vmem:[#allocation3 + $0x20] sm:$0xff] }
 0x70f   : > { %1564 = vst.msk [vmem:[#allocation3 + $0x34] sm:$0xf] %vm1485_vm9, %v1562_v29  ;;  %3854 = vmatpush3.bf16.msra.mxu0 %v3853_v27  ;;  %v1648_v36 = vmul.f32 %v1635_v32, %v1467_v30 }
 0x710   : > { %3855 = vmatprep.subr.bf16.mxu0 %v4168_v57 }
 0x711   : > { %v1580_v33 = vpop.permute.xlu0 %1579 }
 0x712   : > { %v1574_v34 = vpop.permute.xlu1 %1573  ;;  %v1636_v35 = vld [vmem:[#allocation3 + $0x28] sm:$0xff]  ;;  %1582 = vst.msk [vmem:[#allocation3 + $0x40] sm:$0xf] %vm1485_vm9, %v1580_v33 }
 0x713   : > { %1576 = vst.msk [vmem:[#allocation3 + $0x3c] sm:$0xf] %vm1485_vm9, %v1574_v34  ;;  %v1649_v37 = vmul.f32 %v1636_v35, %v1468_v31 }
 0x715   : > { %v3856_v38 = vpack.c.bf16 %v1649_v37, %v1648_v36  ;;  %v1592_v39 = vpop.permute.xlu0 %1591  ;;  %v1831_v37 = vld [vmem:[%s5897_s22] sm:$0xf]  ;;  %s5900_s22 = sld [smem:[#allocation22_spill]] }
 0x716   : > { %v1586_v40 = vpop.permute.xlu1 %1585  ;;  %1594 = vst.msk [vmem:[#allocation3 + $0x48] sm:$0xf] %vm1485_vm9, %v1592_v39  ;;  %v1637_v43 = vld [vmem:[#allocation3 + $0x30] sm:$0xff] }
 0x717   : > { %1588 = vst.msk [vmem:[#allocation3 + $0x44] sm:$0xf] %vm1485_vm9, %v1586_v40  ;;  %3857 = vmatpush3.bf16.msra.mxu0 %v3856_v38  ;;  %v1650_v47 = vmul.f32 %v1637_v43, %v1469_v41 }
 0x718   : > { %3858 = vmatprep.subr.bf16.mxu0 %v4168_v57 }
 0x719   : > { %v1604_v44 = vpop.permute.xlu0 %1603 }
 0x71a   : > { %v1598_v45 = vpop.permute.xlu1 %1597  ;;  %v1638_v46 = vld [vmem:[#allocation3 + $0x38] sm:$0xff]  ;;  %1606 = vst.msk [vmem:[#allocation3 + $0x50] sm:$0xf] %vm1485_vm9, %v1604_v44 }
 0x71b   : > { %1600 = vst.msk [vmem:[#allocation3 + $0x4c] sm:$0xf] %vm1485_vm9, %v1598_v45  ;;  %v1651_v48 = vmul.f32 %v1638_v46, %v1470_v42 }
 0x71d   : > { %v3859_v49 = vpack.c.bf16 %v1651_v48, %v1650_v47  ;;  %v1616_v50 = vpop.permute.xlu0 %1615 }
 0x71e   : > { %v1610_v51 = vpop.permute.xlu1 %1609  ;;  %1618 = vst.msk [vmem:[#allocation3 + $0x58] sm:$0xf] %vm1485_vm9, %v1616_v50  ;;  %v1639_v54 = vld [vmem:[#allocation3 + $0x40] sm:$0xff] }
 0x71f   : > { %1612 = vst.msk [vmem:[#allocation3 + $0x54] sm:$0xf] %vm1485_vm9, %v1610_v51  ;;  %3860 = vmatpush3.bf16.msra.mxu0 %v3859_v49  ;;  %v1652_v60 = vmul.f32 %v1639_v54, %v1471_v52  ;;  %v4999_v52 = vld [vmem:[%s5741_s15 + $0x10] sm:$0xff] }
 0x720   : > { %3861 = vmatprep.subr.bf16.mxu0 %v4168_v57 }
 0x721   : > { %v1628_v55 = vpop.permute.xlu0 %1627 }
 0x722   : > { %v1622_v56 = vpop.permute.xlu1 %1621  ;;  %v1640_v59 = vld [vmem:[#allocation3 + $0x48] sm:$0xff]  ;;  %1630 = vst.msk [vmem:[#allocation3 + $0x60] sm:$0xf] %vm1485_vm9, %v1628_v55 }
 0x723   : > { %1624 = vst.msk [vmem:[#allocation3 + $0x5c] sm:$0xf] %vm1485_vm9, %v1622_v56  ;;  %v1653_v61 = vmul.f32 %v1640_v59, %v1472_v53  ;;  %v5004_v53 = vld [vmem:[%s5741_s15 + $0x18] sm:$0xff] }
 0x725   : > { %v3862_v62 = vpack.c.bf16 %v1653_v61, %v1652_v60 }
 0x726   : > { %v1641_v4 = vld [vmem:[#allocation3 + $0x50] sm:$0xff] }
 0x727   : > { %3863 = vmatpush3.bf16.msra.mxu0 %v3862_v62  ;;  %v1654_v1 = vmul.f32 %v1641_v4, %v1473_v63 }
 0x728   : > { %3864 = vmatprep.subr.bf16.mxu0 %v4168_v57 }
 0x729   : > { %v1643_v8 = vld [vmem:[#allocation3 + $0x60] sm:$0xf] }
 0x72a   : > { %v1642_v5 = vld [vmem:[#allocation3 + $0x58] sm:$0xff]  ;;  %v1656_v9 = vmul.f32 %v1643_v8, %v1475_v2 }
 0x72b   : > { %v1655_v6 = vmul.f32 %v1642_v5, %v1474_v3  ;;  %v1836_v3 = vld [vmem:[%s5741_s15 + $0x20] sm:$0xf] }
 0x72c   : > { %v1830_v5 = vld [vmem:[%s5900_s22] sm:$0xf]  ;;  %s5905_s22 = smov 104  }
 0x72d   : > { %v3865_v7 = vpack.c.bf16 %v1655_v6, %v1654_v1 }
 0x72f   : > { %3866 = vmatpush3.bf16.msra.mxu0 %v3865_v7 }
 0x730   : > { %3655 = vmatprep.subr.mxu0 %v4155_v0 }
 0x733   : > { %3656 = vmatpush3.msk.msra.mxu0 %vm810_vm0, %v1656_v9  ;;  %v1660_v11 = vpop.permute.xlu1 %1659 }
 0x734   : > { %3658 = vmatmul.mubr.msk.f32.vlgmr.msra.gmra.mrb[4].mxu0 %vm1662_vm10, %v1461_v10  ;;  %3912 = vmatprep.subr.bf16.mxu0 %v4168_v57 }
 0x735   : > { %3706 = vmatprep.mubr.msk.f32.mxu0 %vm4207_vm6, %v4155_v0 }
 0x807   : > { %v1735_v12 = vpop.f32.mrb[4].mxu0 }
 0x808   : > { %v1736_v13 = vadd.f32 %v1735_v12, %v1660_v11  ;;  %v3659_v15 = vpop.f32.mrb[5].mxu0 }
 0x80a   : > { %v1739_v18 = vmax.f32 %v1736_v13, 0.0 }
 0x80c   : > { %1744 = vst.msk [vmem:[#allocation2] sm:$0xf] %vm1485_vm9, %v1739_v18 }
 0x813   : > { %v1745_v20 = vld [vmem:[#allocation2] sm:$0xf] }
 0x814   : > { %1747 = vrot.lane.b32.xlu0 %v1745_v20, %s5874_s3  ;;  %1837 = vst [vmem:[#allocation2] sm:$0xff] %v4155_v0 }
 0x886   : > { %v1748_v21 = vpop.permute.xlu0 %1747 }
 0x887   : > { %v1750_v22 = vmax.f32 %v1745_v20, %v1748_v21 }
 0x889   : > { %1752 = vrot.lane.b32.xlu1 %v1750_v22, %s5878_s26 }
 0x8fb   : > { %v1753_v23 = vpop.permute.xlu1 %1752 }
 0x8fc   : > { %v1755_v24 = vmax.f32 %v1750_v22, %v1753_v23 }
 0x8fe   : > { %3665 = vmatmul.mubr.msk.f32.vlgmr.msra.gmra.mrb[2].mxu1 %vm1756_vm11, %v1755_v24 }
 0x8ff   : > { %3677 = vmatprep.mubr.msk.f32.mxu1 %vm4207_vm6, %v4155_v0 }
 0x9d1   : > { %v1826_v25 = vpop.f32.mrb[2].mxu1 }
 0x9d2   : > { %1840 = vrot.lane.b32.xlu0 %v1826_v25, %s5838_s8  ;;  %v3666_v26 = vpop.f32.mrb[3].mxu1  ;;  %s5906_s8 = smov 101  }
 0xa44   : > { %v1841_v27 = vpop.permute.xlu0 %1840 }
 0xa45   : > { %1844 = vst.msk [vmem:[#allocation2] sm:$0xf] %vm1843_vm12, %v1841_v27 }
 0xa4c   : > { %v1845_v28 = vld [vmem:[#allocation2] sm:$0xf] }
 0xa4d   : > { %v1854_v29 = vld [vmem:[#allocation2] sm:$0xf]  ;;  %1847 = vst.msk [vmem:[#allocation3] sm:$0xf] %vm1846_vm13, %v1845_v28 }
 0xa4e   : > { %v1848_v30 = vld [vmem:[#allocation2] sm:$0xf]  ;;  %1856 = vrot.lane.b32.xlu0 %v1854_v29, %s5896_s17 }
 0xa4f   : > { %1850 = vrot.lane.b32.xlu1 %v1848_v30, %s5874_s3  ;;  %v1866_v31 = vld [vmem:[#allocation2] sm:$0xf] }
 0xa50   : > { %v1860_v32 = vld [vmem:[#allocation2] sm:$0xf] }
 0xa51   : > { %v1878_v33 = vld [vmem:[#allocation2] sm:$0xf] }
 0xa52   : > { %v1872_v34 = vld [vmem:[#allocation2] sm:$0xf]  ;;  %1868 = vrot.lane.b32.xlu0 %v1866_v31, %s5879_s28 }
 0xa53   : > { %v1890_v35 = vld [vmem:[#allocation2] sm:$0xf]  ;;  %1862 = vrot.lane.b32.xlu1 %v1860_v32, %s5896_s17 }
 0xa54   : > { %v1884_v36 = vld [vmem:[#allocation2] sm:$0xf] }
 0xa55   : > { %2016 = vst [vmem:[#allocation2] sm:$0xff] %v4155_v0 }
 0xa56   : > { %1880 = vrot.lane.b32.xlu0 %v1878_v33, %s5878_s26 }
 0xa57   : > { %1874 = vrot.lane.b32.xlu1 %v1872_v34, %s5878_s26 }
 0xa5a   : > { %1892 = vrot.lane.b32.xlu0 %v1890_v35, %s5881_s0 }
 0xa5b   : > { %1886 = vrot.lane.b32.xlu1 %v1884_v36, %s5880_s9 }
 0xa5e   : > { %2019 = vrot.lane.b32.xlu0 %v1364_v58, %s5898_s24  ;;  %v4988_v58 = vld [vmem:[%s5741_s15 + $0x8] sm:$0xff]  ;;  %s5901_s24 = smov 120  }
 0xa5f   : > { %1908 = vperm.xlu1 %4086, %v1831_v37  }
 0xa63   : > { %2464 = vrot.lane.b32.xlu1 %v1739_v18, %s5899_s20  ;;  %s5902_s20 = smov 106  }
 0xac0   : > { %v1857_v38 = vpop.permute.xlu0 %1856 }
 0xac1   : > { %v1851_v39 = vpop.permute.xlu1 %1850  ;;  %1859 = vst.msk [vmem:[#allocation3 + $0x8] sm:$0xf] %vm1846_vm13, %v1857_v38 }
 0xac2   : > { %1853 = vst.msk [vmem:[#allocation3 + $0x4] sm:$0xf] %vm1846_vm13, %v1851_v39 }
 0xac4   : > { %v1869_v40 = vpop.permute.xlu0 %1868 }
 0xac5   : > { %v1863_v41 = vpop.permute.xlu1 %1862  ;;  %1871 = vst.msk [vmem:[#allocation3 + $0x10] sm:$0xf] %vm1846_vm13, %v1869_v40 }
 0xac6   : > { %1865 = vst.msk [vmem:[#allocation3 + $0xc] sm:$0xf] %vm1846_vm13, %v1863_v41 }
 0xac8   : > { %v1881_v42 = vpop.permute.xlu0 %1880 }
 0xac9   : > { %v1875_v43 = vpop.permute.xlu1 %1874  ;;  %1883 = vst.msk [vmem:[#allocation3 + $0x18] sm:$0xf] %vm1846_vm13, %v1881_v42  ;;  %v1896_v44 = vld [vmem:[#allocation3] sm:$0xff] }
 0xaca   : > { %1877 = vst.msk [vmem:[#allocation3 + $0x14] sm:$0xf] %vm1846_vm13, %v1875_v43  ;;  %v1901_v48 = vmul.f32 %v1896_v44, %v4983_v14 }
 0xacc   : > { %v1893_v45 = vpop.permute.xlu0 %1892 }
 0xacd   : > { %v1887_v46 = vpop.permute.xlu1 %1886  ;;  %v1897_v47 = vld [vmem:[#allocation3 + $0x8] sm:$0xff]  ;;  %1895 = vst.msk [vmem:[#allocation3 + $0x20] sm:$0xf] %vm1846_vm13, %v1893_v45 }
 0xace   : > { %1889 = vst.msk [vmem:[#allocation3 + $0x1c] sm:$0xf] %vm1846_vm13, %v1887_v46  ;;  %v1902_v49 = vmul.f32 %v1897_v47, %v4988_v58 }
 0xad0   : > { %v3871_v50 = vpack.c.bf16 %v1902_v49, %v1901_v48  ;;  %v2020_v51 = vpop.permute.xlu0 %2019 }
 0xad1   : > { %2022 = vst.msk [vmem:[#allocation2] sm:$0xf] %vm938_vm3, %v2020_v51  ;;  %v1898_v54 = vld [vmem:[#allocation3 + $0x10] sm:$0xff] }
 0xad2   : > { %3872 = vmatpush3.bf16.msra.mxu1 %v3871_v50  ;;  %v1903_v56 = vmul.f32 %v1898_v54, %v4999_v52 }
 0xad3   : > { %3873 = vmatprep.subr.bf16.mxu1 %v4168_v57 }
 0xad4   : > { %v1900_v4 = vld [vmem:[#allocation3 + $0x20] sm:$0xf] }
 0xad5   : > { %v1899_v55 = vld [vmem:[#allocation3 + $0x18] sm:$0xff]  ;;  %v1905_v7 = vmul.f32 %v1900_v4, %v1836_v3 }
 0xad6   : > { %v1904_v59 = vmul.f32 %v1899_v55, %v5004_v53 }
 0xad8   : > { %v3874_v60 = vpack.c.bf16 %v1904_v59, %v1903_v56  ;;  %v2023_v61 = vld [vmem:[#allocation2] sm:$0xf] }
 0xad9   : > { %v2031_v62 = vld [vmem:[#allocation2] sm:$0xf]  ;;  %2024 = vst.msk [vmem:[#allocation3] sm:$0xf] %vm941_vm4, %v2023_v61 }
 0xada   : > { %v2025_v63 = vld [vmem:[#allocation2] sm:$0xf]  ;;  %2033 = vrot.lane.b32.xlu0 %v2031_v62, %s5896_s17  ;;  %3875 = vmatpush3.bf16.msra.mxu1 %v3874_v60 }
 0xadb   : > { %2027 = vrot.lane.b32.xlu1 %v2025_v63, %s5874_s3  ;;  %3675 = vmatprep.subr.mxu1 %v4155_v0  ;;  %v2043_v1 = vld [vmem:[#allocation2] sm:$0xf] }
 0xadc   : > { %v2037_v6 = vld [vmem:[#allocation2] sm:$0xf] }
 0xadd   : > { %v2049_v2 = vld [vmem:[#allocation2] sm:$0xf] }
 0xade   : > { %2045 = vrot.lane.b32.xlu0 %v2043_v1, %s5878_s26  ;;  %3676 = vmatpush3.msk.msra.mxu1 %vm810_vm0, %v1905_v7  ;;  %v2055_v8 = vld [vmem:[#allocation2] sm:$0xf]  ;;  %v5023_v9 = vpop.permute.xlu1 %1908 }
 0xadf   : > { %2039 = vrot.lane.b32.xlu1 %v2037_v6, %s5879_s28  ;;  %3678 = vmatmul.mubr.msk.f32.vlgmr.msra.gmra.mrb[4].mxu1 %vm1911_vm14, %v1830_v5  ;;  %v2061_v10 = vld [vmem:[#allocation2] sm:$0xf] }
 0xae0   : > { %3876 = vmatprep.subr.bf16.mxu1 %v4168_v57  ;;  %v2067_v11 = vld [vmem:[#allocation2] sm:$0xf] }
 0xae1   : > { %v2073_v12 = vld [vmem:[#allocation2] sm:$0xf] }
 0xae2   : > { %2057 = vrot.lane.b32.xlu0 %v2055_v8, %s5881_s0  ;;  %v2079_v13 = vld [vmem:[#allocation2] sm:$0xf]  ;;  %v2465_v47 = vpop.permute.xlu1 %2464 }
 0xae3   : > { %2051 = vrot.lane.b32.xlu1 %v2049_v2, %s5880_s9  ;;  %v2085_v15 = vld [vmem:[#allocation2] sm:$0xf] }
 0xae4   : > { %v2091_v16 = vld [vmem:[#allocation2] sm:$0xf] }
 0xae5   : > { %v2097_v17 = vld [vmem:[#allocation2] sm:$0xf] }
 0xae6   : > { %2069 = vrot.lane.b32.xlu0 %v2067_v11, %s5883_s1  ;;  %v2103_v18 = vld [vmem:[#allocation2] sm:$0xf] }
 0xae7   : > { %2063 = vrot.lane.b32.xlu1 %v2061_v10, %s5901_s24  ;;  %v2109_v19 = vld [vmem:[#allocation2] sm:$0xf] }
 0xae8   : > { %v2115_v20 = vld [vmem:[#allocation2] sm:$0xf] }
 0xae9   : > { %v5029_v21 = vld [vmem:[#allocation2] sm:$0xf] }
 0xaea   : > { %v5031_v22 = vld [vmem:[#allocation2] sm:$0xf]  ;;  %2081 = vrot.lane.b32.xlu0 %v2079_v13, %s5885_s27 }
 0xaeb   : > { %v5033_v23 = vld [vmem:[#allocation2] sm:$0xf]  ;;  %2075 = vrot.lane.b32.xlu1 %v2073_v12, %s5882_s29 }
 0xaec   : > { %v5035_v24 = vld [vmem:[#allocation2] sm:$0xf] }
 0xaed   : > { %v5037_v25 = vld [vmem:[#allocation2] sm:$0xf] }
 0xaee   : > { %v5039_v26 = vld [vmem:[#allocation2] sm:$0xf]  ;;  %2093 = vrot.lane.b32.xlu0 %v2091_v16, %s5886_s16 }
 0xaef   : > { %v5041_v27 = vld [vmem:[#allocation2] sm:$0xf]  ;;  %2087 = vrot.lane.b32.xlu1 %v2085_v15, %s5884_s6 }
 0xaf0   : > { %v5043_v28 = vld [vmem:[#allocation2] sm:$0xf] }
 0xaf1   : > { %v5045_v29 = vld [vmem:[#allocation2] sm:$0xf] }
 0xaf2   : > { %v5047_v30 = vld [vmem:[#allocation2] sm:$0xf]  ;;  %2105 = vrot.lane.b32.xlu0 %v2103_v18, %s5888_s25 }
 0xaf3   : > { %v5049_v31 = vld [vmem:[#allocation2] sm:$0xf]  ;;  %2099 = vrot.lane.b32.xlu1 %v2097_v17, %s5887_s30 }
 0xaf4   : > { %v5051_v32 = vld [vmem:[#allocation2] sm:$0xf] }
 0xaf5   : > { %v5053_v33 = vld [vmem:[#allocation2] sm:$0xf] }
 0xaf6   : > { %v5055_v34 = vld [vmem:[#allocation2] sm:$0xf]  ;;  %2117 = vrot.lane.b32.xlu0 %v2115_v20, %s5889_s5 }
 0xaf7   : > { %v5057_v35 = vld [vmem:[#allocation2] sm:$0xf]  ;;  %2111 = vrot.lane.b32.xlu1 %v2109_v19, %s5890_s4 }
 0xaf8   : > { %v5059_v36 = vld [vmem:[#allocation2] sm:$0xf] }
 0xaf9   : > { %v5061_v37 = vld [vmem:[#allocation2] sm:$0xf] }
 0xafa   : > { %v5063_v38 = vld [vmem:[#allocation2] sm:$0xf]  ;;  %2129 = vrot.lane.b32.xlu0 %v5031_v22, %s5891_s7 }
 0xafb   : > { %v5065_v39 = vld [vmem:[#allocation2] sm:$0xf]  ;;  %2123 = vrot.lane.b32.xlu1 %v5029_v21, %s5892_s2 }
 0xafc   : > { %v5067_v40 = vld [vmem:[#allocation2] sm:$0xf] }
 0xafd   : > { %v5069_v41 = vld [vmem:[#allocation2] sm:$0xf] }
 0xafe   : > { %v5071_v42 = vld [vmem:[#allocation2] sm:$0xf]  ;;  %2141 = vrot.lane.b32.xlu0 %v5035_v24, %s5902_s20  ;;  %s5910_s20 = smov 96  }
 0xaff   : > { %v5073_v43 = vld [vmem:[#allocation2] sm:$0xf]  ;;  %2135 = vrot.lane.b32.xlu1 %v5033_v23, %s5903_s23  ;;  %s5911_s23 = smov 98  }
 0xb00   : > { %v5075_v44 = vld [vmem:[#allocation2] sm:$0xf] }
 0xb01   : > { %v2265_v45 = vld [vmem:[#allocation2] sm:$0xf] }
 0xb02   : > { %v5077_v46 = vld [vmem:[#allocation2] sm:$0xf]  ;;  %2153 = vrot.lane.b32.xlu0 %v5039_v26, %s5904_s21  ;;  %s5912_s21 = smov 95  }
 0xb03   : > { %v2277_v48 = vld [vmem:[#allocation2] sm:$0xf]  ;;  %2147 = vrot.lane.b32.xlu1 %v5037_v25, %s5905_s22  ;;  %s5913_s22 = smov 93  }
 0xb04   : > { %v2283_v49 = vld [vmem:[#allocation2] sm:$0xf] }
 0xb05   : > { %v5079_v50 = vld [vmem:[#allocation2] sm:$0xf] }
 0xb06   : > { %v2295_v51 = vld [vmem:[#allocation2] sm:$0xf]  ;;  %2165 = vrot.lane.b32.xlu0 %v5043_v28, %s5906_s8  ;;  %s5914_s8 = smov 91  }
 0xb07   : > { %v5081_v54 = vld [vmem:[#allocation2] sm:$0xf]  ;;  %2159 = vrot.lane.b32.xlu1 %v5041_v27, %s5907_s18  ;;  %s5915_s18 = smov 88  }
 0xb08   : > { %v2307_v55 = vld [vmem:[#allocation2] sm:$0xf] }
 0xb09   : > { %2461 = vst [vmem:[#allocation2] sm:$0xff] %v4155_v0  ;;  %v1991_v28 = vld [vmem:[%s5739_s13] sm:$0xff] }
 0xb0a   : > { %2467 = vst.msk [vmem:[#allocation2] sm:$0xf] %vm1482_vm8, %v2465_v47  ;;  %2177 = vrot.lane.b32.xlu0 %v5047_v30, %s5908_s10  ;;  %s5916_s10 = smov 86  }
 0xb0b   : > { %2171 = vrot.lane.b32.xlu1 %v5045_v29, %s5909_s19  ;;  %s5917_s19 = smov 84   ;;  %v1992_v29 = vld [vmem:[%s5739_s13 + $0x8] sm:$0xff] }
 0xb0e   : > { %2189 = vrot.lane.b32.xlu0 %v5051_v32, %s5910_s20  ;;  %s5918_s20 = smov 82  }
 0xb0f   : > { %2183 = vrot.lane.b32.xlu1 %v5049_v31, %s5911_s23  ;;  %s5919_s23 = smov 79  }
 0xb11   : > { %v5093_v56 = vld [vmem:[#allocation2] sm:$0xf] }
 0xb12   : > { %v5095_v59 = vld [vmem:[#allocation2] sm:$0xf] }
 0xb13   : > { %v5097_v60 = vld [vmem:[#allocation2] sm:$0xf]  ;;  %2195 = vrot.lane.b32.xlu1 %v5053_v33, %s5912_s21  ;;  %s5920_s21 = smov 78  }
 0xb14   : > { %v5099_v61 = vld [vmem:[#allocation2] sm:$0xf] }
 0xb15   : > { %v5101_v62 = vld [vmem:[#allocation2] sm:$0xf] }
 0xb16   : > { %v5103_v63 = vld [vmem:[#allocation2] sm:$0xf] }
 0xb17   : > { %v5105_v3 = vld [vmem:[#allocation2] sm:$0xf]  ;;  %2207 = vrot.lane.b32.xlu1 %v5057_v35, %s5913_s22  ;;  %s5921_s22 = smov 76  }
 0xb18   : > { %v5107_v4 = vld [vmem:[#allocation2] sm:$0xf] }
 0xb19   : > { %v5109_v5 = vld [vmem:[#allocation2] sm:$0xf] }
 0xb1a   : > { %v5111_v1 = vld [vmem:[#allocation2] sm:$0xf] }
 0xb1b   : > { %v5113_v6 = vld [vmem:[#allocation2] sm:$0xf]  ;;  %2219 = vrot.lane.b32.xlu1 %v5061_v37, %s5914_s8  ;;  %s5922_s8 = smov 74  }
 0xb1c   : > { %v5115_v7 = vld [vmem:[#allocation2] sm:$0xf] }
 0xb1d   : > { %v5117_v2 = vld [vmem:[#allocation2] sm:$0xf] }
 0xb1e   : > { %v5119_v8 = vld [vmem:[#allocation2] sm:$0xf] }
 0xb1f   : > { %v5121_v10 = vld [vmem:[#allocation2] sm:$0xf]  ;;  %2231 = vrot.lane.b32.xlu1 %v5065_v39, %s5915_s18  ;;  %s5923_s18 = smov 121  }
 0xb20   : > { %v5123_v11 = vld [vmem:[#allocation2] sm:$0xf] }
 0xb21   : > { %v2476_v12 = vld [vmem:[#allocation2] sm:$0xf] }
 0xb22   : > { %v2488_v13 = vld [vmem:[#allocation2] sm:$0xf] }
 0xb23   : > { %v2500_v15 = vld [vmem:[#allocation2] sm:$0xf]  ;;  %2243 = vrot.lane.b32.xlu1 %v5069_v41, %s5916_s10  ;;  %s5928_s10 = smov 87  }
 0xb24   : > { %v2512_v16 = vld [vmem:[#allocation2] sm:$0xf] }
 0xb25   : > { %v5125_v17 = vld [vmem:[#allocation2] sm:$0xf] }
 0xb26   : > { %v5127_v18 = vld [vmem:[#allocation2] sm:$0xf] }
 0xb27   : > { %v5133_v19 = vld [vmem:[#allocation2] sm:$0xf]  ;;  %2255 = vrot.lane.b32.xlu1 %v5073_v43, %s5917_s19  ;;  %v1993_v43 = vld [vmem:[%s5739_s13 + $0x10] sm:$0xff]  ;;  %s5929_s19 = smov 85  }
 0xb28   : > { %v5135_v20 = vld [vmem:[#allocation2] sm:$0xf] }
 0xb29   : > { %v5137_v47 = vld [vmem:[#allocation2] sm:$0xf] }
 0xb2a   : > { %2729 = vst [vmem:[#allocation2] sm:$0xff] %v4155_v0 }
 0xb2b   : > { %2267 = vrot.lane.b32.xlu1 %v2265_v45, %s5918_s20  ;;  %v1994_v45 = vld [vmem:[%s5739_s13 + $0x18] sm:$0xff]  ;;  %s5930_s20 = smov 83  }
 0xb2f   : > { %2279 = vrot.lane.b32.xlu1 %v2277_v48, %s5919_s23  ;;  %s5931_s23 = smov 80  }
 0xb33   : > { %2478 = vrot.lane.b32.xlu1 %v2476_v12, %s5896_s17 }
 0xb37   : > { %2285 = vrot.lane.b32.xlu1 %v2283_v49, %s5920_s21  ;;  %s5924_s21 = smov 3  }
 0xb3b   : > { %2297 = vrot.lane.b32.xlu1 %v2295_v51, %s5921_s22  ;;  %s5925_s22 = smov 94  }
 0xb3f   : > { %2490 = vrot.lane.b32.xlu1 %v2488_v13, %s5878_s26 }
 0xb43   : > { %2502 = vrot.lane.b32.xlu1 %v2500_v15, %s5880_s9 }
 0xb47   : > { %2309 = vrot.lane.b32.xlu1 %v2307_v55, %s5922_s8  ;;  %s5926_s8 = smov 92  }
 0xb4b   : > { %2514 = vrot.lane.b32.xlu1 %v2512_v16, %s5923_s18  ;;  %s5927_s18 = smov 90  }
 0xb4c   : > { %v2034_v21 = vpop.permute.xlu0 %2033 }
 0xb4d   : > { %v2028_v22 = vpop.permute.xlu1 %2027  ;;  %2036 = vst.msk [vmem:[#allocation3 + $0x8] sm:$0xf] %vm941_vm4, %v2034_v21  ;;  %v1995_v21 = vld [vmem:[%s5739_s13 + $0x20] sm:$0xff] }
 0xb4e   : > { %2030 = vst.msk [vmem:[#allocation3 + $0x4] sm:$0xf] %vm941_vm4, %v2028_v22  ;;  %v1996_v22 = vld [vmem:[%s5739_s13 + $0x28] sm:$0xff] }
 0xb50   : > { %v2046_v23 = vpop.permute.xlu0 %2045 }
 0xb51   : > { %v2040_v24 = vpop.permute.xlu1 %2039  ;;  %2048 = vst.msk [vmem:[#allocation3 + $0x10] sm:$0xf] %vm941_vm4, %v2046_v23 }
 0xb52   : > { %2042 = vst.msk [vmem:[#allocation3 + $0xc] sm:$0xf] %vm941_vm4, %v2040_v24 }
 0xb54   : > { %v2058_v25 = vpop.permute.xlu0 %2057 }
 0xb55   : > { %v2052_v26 = vpop.permute.xlu1 %2051  ;;  %v2313_v27 = vld [vmem:[#allocation3] sm:$0xff]  ;;  %2060 = vst.msk [vmem:[#allocation3 + $0x18] sm:$0xf] %vm941_vm4, %v2058_v25 }
 0xb56   : > { %2054 = vst.msk [vmem:[#allocation3 + $0x14] sm:$0xf] %vm941_vm4, %v2052_v26  ;;  %v2338_v33 = vmul.f32 %v2313_v27, %v1991_v28 }
 0xb57   : > { %2469 = vst.msk [vmem:[#allocation3] sm:$0xf] %vm1485_vm9, %v5093_v56 }
 0xb58   : > { %v2070_v30 = vpop.permute.xlu0 %2069 }
 0xb59   : > { %v2064_v31 = vpop.permute.xlu1 %2063  ;;  %v2314_v32 = vld [vmem:[#allocation3 + $0x8] sm:$0xff]  ;;  %2072 = vst.msk [vmem:[#allocation3 + $0x20] sm:$0xf] %vm941_vm4, %v2070_v30 }
 0xb5a   : > { %2066 = vst.msk [vmem:[#allocation3 + $0x1c] sm:$0xf] %vm941_vm4, %v2064_v31  ;;  %v2339_v35 = vmul.f32 %v2314_v32, %v1992_v29  ;;  %v1997_v32 = vld [vmem:[%s5739_s13 + $0x30] sm:$0xff] }
 0xb5c   : > { %v3877_v37 = vpack.c.bf16 %v2339_v35, %v2338_v33  ;;  %v2082_v39 = vpop.permute.xlu0 %2081  ;;  %v1998_v33 = vld [vmem:[%s5739_s13 + $0x38] sm:$0xff] }
 0xb5d   : > { %v2076_v41 = vpop.permute.xlu1 %2075  ;;  %2084 = vst.msk [vmem:[#allocation3 + $0x28] sm:$0xf] %vm941_vm4, %v2082_v39  ;;  %v2315_v48 = vld [vmem:[#allocation3 + $0x10] sm:$0xff] }
 0xb5e   : > { %2078 = vst.msk [vmem:[#allocation3 + $0x24] sm:$0xf] %vm941_vm4, %v2076_v41  ;;  %3878 = vmatpush1.bf16.msra.mxu1 %v3877_v37  ;;  %v2340_v56 = vmul.f32 %v2315_v48, %v1993_v43 }
 0xb5f   : > { %3879 = vmatprep.subr.bf16.mxu1 %v4168_v57 }
 0xb60   : > { %v2094_v49 = vpop.permute.xlu0 %2093 }
 0xb61   : > { %v2088_v51 = vpop.permute.xlu1 %2087  ;;  %v2316_v55 = vld [vmem:[#allocation3 + $0x18] sm:$0xff]  ;;  %2096 = vst.msk [vmem:[#allocation3 + $0x30] sm:$0xf] %vm941_vm4, %v2094_v49 }
 0xb62   : > { %2090 = vst.msk [vmem:[#allocation3 + $0x2c] sm:$0xf] %vm941_vm4, %v2088_v51  ;;  %v2341_v12 = vmul.f32 %v2316_v55, %v1994_v45  ;;  %v1999_v55 = vld [vmem:[%s5739_s13 + $0x40] sm:$0xff] }
 0xb64   : > { %v3880_v13 = vpack.c.bf16 %v2341_v12, %v2340_v56  ;;  %v2106_v15 = vpop.permute.xlu0 %2105  ;;  %v2000_v56 = vld [vmem:[%s5739_s13 + $0x48] sm:$0xff] }
 0xb65   : > { %v2100_v16 = vpop.permute.xlu1 %2099  ;;  %2108 = vst.msk [vmem:[#allocation3 + $0x38] sm:$0xf] %vm941_vm4, %v2106_v15  ;;  %v2317_v23 = vld [vmem:[#allocation3 + $0x20] sm:$0xff] }
 0xb66   : > { %2102 = vst.msk [vmem:[#allocation3 + $0x34] sm:$0xf] %vm941_vm4, %v2100_v16  ;;  %3881 = vmatpush1.bf16.msra.mxu1 %v3880_v13  ;;  %v2342_v27 = vmul.f32 %v2317_v23, %v1995_v21 }
 0xb67   : > { %3882 = vmatprep.subr.bf16.mxu1 %v4168_v57 }
 0xb68   : > { %v2118_v24 = vpop.permute.xlu0 %2117 }
 0xb69   : > { %v2112_v25 = vpop.permute.xlu1 %2111  ;;  %v2318_v26 = vld [vmem:[#allocation3 + $0x28] sm:$0xff]  ;;  %2120 = vst.msk [vmem:[#allocation3 + $0x40] sm:$0xf] %vm941_vm4, %v2118_v24 }
 0xb6a   : > { %2114 = vst.msk [vmem:[#allocation3 + $0x3c] sm:$0xf] %vm941_vm4, %v2112_v25  ;;  %v2343_v28 = vmul.f32 %v2318_v26, %v1996_v22  ;;  %v2001_v26 = vld [vmem:[%s5739_s13 + $0x50] sm:$0xff] }
 0xb6c   : > { %v3883_v29 = vpack.c.bf16 %v2343_v28, %v2342_v27  ;;  %v2130_v30 = vpop.permute.xlu0 %2129  ;;  %v2002_v27 = vld [vmem:[%s5739_s13 + $0x58] sm:$0xff] }
 0xb6d   : > { %v2124_v31 = vpop.permute.xlu1 %2123  ;;  %2132 = vst.msk [vmem:[#allocation3 + $0x48] sm:$0xf] %vm941_vm4, %v2130_v30  ;;  %v2319_v35 = vld [vmem:[#allocation3 + $0x30] sm:$0xff] }
 0xb6e   : > { %2126 = vst.msk [vmem:[#allocation3 + $0x44] sm:$0xf] %vm941_vm4, %v2124_v31  ;;  %3884 = vmatpush1.bf16.msra.mxu1 %v3883_v29  ;;  %v2344_v43 = vmul.f32 %v2319_v35, %v1997_v32 }
 0xb6f   : > { %3885 = vmatprep.subr.bf16.mxu1 %v4168_v57 }
 0xb70   : > { %v2142_v37 = vpop.permute.xlu0 %2141 }
 0xb71   : > { %v2136_v39 = vpop.permute.xlu1 %2135  ;;  %v2320_v41 = vld [vmem:[#allocation3 + $0x38] sm:$0xff]  ;;  %2144 = vst.msk [vmem:[#allocation3 + $0x50] sm:$0xf] %vm941_vm4, %v2142_v37 }
 0xb72   : > { %2138 = vst.msk [vmem:[#allocation3 + $0x4c] sm:$0xf] %vm941_vm4, %v2136_v39  ;;  %v2345_v45 = vmul.f32 %v2320_v41, %v1998_v33  ;;  %v2003_v39 = vld [vmem:[%s5739_s13 + $0x60] sm:$0xff]  ;;  %v2004_v41 = vld [vmem:[%s5739_s13 + $0x68] sm:$0xff] }
 0xb74   : > { %v3886_v48 = vpack.c.bf16 %v2345_v45, %v2344_v43  ;;  %v2154_v49 = vpop.permute.xlu0 %2153 }
 0xb75   : > { %v2148_v51 = vpop.permute.xlu1 %2147  ;;  %2156 = vst.msk [vmem:[#allocation3 + $0x58] sm:$0xf] %vm941_vm4, %v2154_v49  ;;  %v2321_v12 = vld [vmem:[#allocation3 + $0x40] sm:$0xff] }
 0xb76   : > { %2150 = vst.msk [vmem:[#allocation3 + $0x54] sm:$0xf] %vm941_vm4, %v2148_v51  ;;  %3887 = vmatpush1.bf16.msra.mxu1 %v3886_v48  ;;  %v2346_v21 = vmul.f32 %v2321_v12, %v1999_v55 }
 0xb77   : > { %3888 = vmatprep.subr.bf16.mxu1 %v4168_v57 }
 0xb78   : > { %v2166_v13 = vpop.permute.xlu0 %2165 }
 0xb79   : > { %v2160_v15 = vpop.permute.xlu1 %2159  ;;  %v2322_v16 = vld [vmem:[#allocation3 + $0x48] sm:$0xff]  ;;  %2168 = vst.msk [vmem:[#allocation3 + $0x60] sm:$0xf] %vm941_vm4, %v2166_v13 }
 0xb7a   : > { %2162 = vst.msk [vmem:[#allocation3 + $0x5c] sm:$0xf] %vm941_vm4, %v2160_v15  ;;  %v2347_v22 = vmul.f32 %v2322_v16, %v2000_v56 }
 0xb7c   : > { %v3889_v23 = vpack.c.bf16 %v2347_v22, %v2346_v21  ;;  %v2178_v24 = vpop.permute.xlu0 %2177 }
 0xb7d   : > { %v2172_v25 = vpop.permute.xlu1 %2171  ;;  %2180 = vst.msk [vmem:[#allocation3 + $0x68] sm:$0xf] %vm941_vm4, %v2178_v24  ;;  %v2323_v28 = vld [vmem:[#allocation3 + $0x50] sm:$0xff] }
 0xb7e   : > { %2174 = vst.msk [vmem:[#allocation3 + $0x64] sm:$0xf] %vm941_vm4, %v2172_v25  ;;  %3890 = vmatpush1.bf16.msra.mxu1 %v3889_v23  ;;  %v2348_v32 = vmul.f32 %v2323_v28, %v2001_v26 }
 0xb7f   : > { %3891 = vmatprep.subr.bf16.mxu1 %v4168_v57 }
 0xb80   : > { %v2190_v29 = vpop.permute.xlu0 %2189 }
 0xb81   : > { %v2184_v30 = vpop.permute.xlu1 %2183  ;;  %v2324_v31 = vld [vmem:[#allocation3 + $0x58] sm:$0xff]  ;;  %2192 = vst.msk [vmem:[#allocation3 + $0x70] sm:$0xf] %vm941_vm4, %v2190_v29 }
 0xb82   : > { %2186 = vst.msk [vmem:[#allocation3 + $0x6c] sm:$0xf] %vm941_vm4, %v2184_v30  ;;  %v2349_v33 = vmul.f32 %v2324_v31, %v2002_v27 }
 0xb84   : > { %v3892_v35 = vpack.c.bf16 %v2349_v33, %v2348_v32 }
 0xb85   : > { %v2196_v37 = vpop.permute.xlu1 %2195  ;;  %v2325_v43 = vld [vmem:[#allocation3 + $0x60] sm:$0xff] }
 0xb86   : > { %2198 = vst.msk [vmem:[#allocation3 + $0x74] sm:$0xf] %vm941_vm4, %v2196_v37  ;;  %3893 = vmatpush1.bf16.msra.mxu1 %v3892_v35  ;;  %v2350_v49 = vmul.f32 %v2325_v43, %v2003_v39  ;;  %v2007_v43 = vld [vmem:[%s5739_s13 + $0x80] sm:$0xff] }
 0xb87   : > { %3894 = vmatprep.subr.bf16.mxu1 %v4168_v57 }
 0xb89   : > { %v2208_v45 = vpop.permute.xlu1 %2207  ;;  %v2326_v48 = vld [vmem:[#allocation3 + $0x68] sm:$0xff] }
 0xb8a   : > { %2210 = vst.msk [vmem:[#allocation3 + $0x7c] sm:$0xf] %vm941_vm4, %v2208_v45  ;;  %v2351_v51 = vmul.f32 %v2326_v48, %v2004_v41  ;;  %v2008_v45 = vld [vmem:[%s5739_s13 + $0x88] sm:$0xff] }
 0xb8c   : > { %v3895_v55 = vpack.c.bf16 %v2351_v51, %v2350_v49 }
 0xb8d   : > { %v2220_v56 = vpop.permute.xlu1 %2219 }
 0xb8e   : > { %2222 = vst.msk [vmem:[#allocation3 + $0x84] sm:$0xf] %vm941_vm4, %v2220_v56  ;;  %3896 = vmatpush1.bf16.msra.mxu1 %v3895_v55 }
 0xb8f   : > { %3897 = vmatprep.subr.bf16.mxu1 %v4168_v57 }
 0xb91   : > { %v2232_v12 = vpop.permute.xlu1 %2231 }
 0xb92   : > { %2234 = vst.msk [vmem:[#allocation3 + $0x8c] sm:$0xf] %vm941_vm4, %v2232_v12 }
 0xb95   : > { %v2244_v13 = vpop.permute.xlu1 %2243 }
 0xb96   : > { %2246 = vst.msk [vmem:[#allocation3 + $0x94] sm:$0xf] %vm941_vm4, %v2244_v13 }
 0xb99   : > { %v2256_v15 = vpop.permute.xlu1 %2255 }
 0xb9a   : > { %2258 = vst.msk [vmem:[#allocation3 + $0x9c] sm:$0xf] %vm941_vm4, %v2256_v15 }
 0xb9d   : > { %v2268_v16 = vpop.permute.xlu1 %2267 }
 0xb9e   : > { %2270 = vst.msk [vmem:[#allocation3 + $0xa4] sm:$0xf] %vm941_vm4, %v2268_v16 }
 0xba1   : > { %v2280_v21 = vpop.permute.xlu1 %2279 }
 0xba2   : > { %2282 = vst.msk [vmem:[#allocation3 + $0xac] sm:$0xf] %vm941_vm4, %v2280_v21  ;;  %v2009_v21 = vld [vmem:[%s5739_s13 + $0x90] sm:$0xff] }
 0xba5   : > { %v2479_v22 = vpop.permute.xlu1 %2478 }
 0xba6   : > { %2481 = vst.msk [vmem:[#allocation3 + $0x8] sm:$0xf] %vm1485_vm9, %v2479_v22  ;;  %v2010_v22 = vld [vmem:[%s5739_s13 + $0x98] sm:$0xff] }
 0xba9   : > { %v2286_v23 = vpop.permute.xlu1 %2285 }
 0xbaa   : > { %2288 = vst.msk [vmem:[#allocation3 + $0xb0] sm:$0xf] %vm941_vm4, %v2286_v23 }
 0xbad   : > { %v2298_v24 = vpop.permute.xlu1 %2297 }
 0xbae   : > { %2300 = vst.msk [vmem:[#allocation3 + $0xb8] sm:$0xf] %vm941_vm4, %v2298_v24 }
 0xbb1   : > { %v2491_v25 = vpop.permute.xlu1 %2490 }
 0xbb2   : > { %2493 = vst.msk [vmem:[#allocation3 + $0x10] sm:$0xf] %vm1485_vm9, %v2491_v25  ;;  %v1984_v26 = vpop.f32.mrb[4].mxu1 }
 0xbb3   : > { %v1985_v27 = vadd.f32 %v1984_v26, %v5023_v9  ;;  %v3679_v28 = vpop.f32.mrb[5].mxu1 }
 0xbb5   : > { %v2503_v29 = vpop.permute.xlu1 %2502  ;;  %v1988_v30 = vmax.f32 %v1985_v27, 0.0 }
 0xbb6   : > { %2505 = vst.msk [vmem:[#allocation3 + $0x18] sm:$0xf] %vm1485_vm9, %v2503_v29 }
 0xbb7   : > { %2732 = vrot.lane.b32.xlu0 %v1988_v30, %s5924_s21  ;;  %s5932_s21 = smov 77  }
 0xbb9   : > { %v2310_v31 = vpop.permute.xlu1 %2309 }
 0xbba   : > { %2312 = vst.msk [vmem:[#allocation3 + $0xc0] sm:$0xf] %vm941_vm4, %v2310_v31 }
 0xbbb   : > { %2201 = vrot.lane.b32.xlu0 %v5055_v34, %s5925_s22  ;;  %s5933_s22 = smov 75  }
 0xbbd   : > { %v2515_v32 = vpop.permute.xlu1 %2514 }
 0xbbe   : > { %2517 = vst.msk [vmem:[#allocation3 + $0x20] sm:$0xf] %vm1485_vm9, %v2515_v32 }
 0xbbf   : > { %2213 = vrot.lane.b32.xlu0 %v5059_v36, %s5926_s8 }
 0xbc3   : > { %2225 = vrot.lane.b32.xlu0 %v5063_v38, %s5927_s18  ;;  %s5938_s18 = sld [smem:[#allocation31_spill]] }
 0xbc7   : > { %2237 = vrot.lane.b32.xlu0 %v5067_v40, %s5928_s10  ;;  %s5934_s10 = sld [smem:[#allocation24_spill]] }
 0xbcb   : > { %2249 = vrot.lane.b32.xlu0 %v5071_v42, %s5929_s19 }
 0xbcd   : > { %v5302_v9 = vld [vmem:[%s5934_s10] sm:$0xff]  ;;  %s5941_s10 = sld [smem:[#allocation33_spill]] }
 0xbce   : > { %v2369_v34 = vcombine.high %v5302_v9, %v5302_v9 }
 0xbcf   : > { %2261 = vrot.lane.b32.xlu0 %v5075_v44, %s5930_s20 }
 0xbd0   : > { %3486 = vmatprep.mubr.msk.f32.mxu1 %vm1288_vm5, %v2369_v34 }
 0xbd3   : > { %2273 = vrot.lane.b32.xlu0 %v5077_v46, %s5931_s23  ;;  %v2005_v46 = vld [vmem:[%s5739_s13 + $0x70] sm:$0xff]  ;;  %s5947_s23 = sld [smem:[#allocation8_spill]] }
 0xbd7   : > { %2472 = vrot.lane.b32.xlu0 %v5125_v17, %s5874_s3 }
 0xbdb   : > { %2484 = vrot.lane.b32.xlu0 %v5127_v18, %s5879_s28 }
 0xbdf   : > { %2291 = vrot.lane.b32.xlu0 %v5079_v50, %s5932_s21  ;;  %v2006_v50 = vld [vmem:[%s5739_s13 + $0x78] sm:$0xff]  ;;  %s5948_s21 = sld [smem:[#allocation11_spill]] }
 0xbe3   : > { %2303 = vrot.lane.b32.xlu0 %v5081_v54, %s5933_s22  ;;  %v2327_v54 = vld [vmem:[#allocation3 + $0x70] sm:$0xff] }
 0xbe7   : > { %2496 = vrot.lane.b32.xlu0 %v5133_v19, %s5878_s26 }
 0xbeb   : > { %2508 = vrot.lane.b32.xlu0 %v5135_v20, %s5881_s0 }
 0xbef   : > { %2520 = vrot.lane.b32.xlu0 %v5137_v47, %s5901_s24  ;;  %v2352_v47 = vmul.f32 %v2327_v54, %v2005_v46  ;;  %v2723_v46 = vld [vmem:[%s5738_s12] sm:$0xf] }
 0xc29   : > { %v2733_v36 = vpop.permute.xlu0 %2732 }
 0xc2a   : > { %2735 = vst.msk [vmem:[#allocation2] sm:$0xf] %vm1843_vm12, %v2733_v36 }
 0xc2d   : > { %v2202_v38 = vpop.permute.xlu0 %2201 }
 0xc2e   : > { %2204 = vst.msk [vmem:[#allocation3 + $0x78] sm:$0xf] %vm941_vm4, %v2202_v38 }
 0xc31   : > { %v2214_v40 = vpop.permute.xlu0 %2213  ;;  %v2744_v42 = vld [vmem:[#allocation2] sm:$0xf] }
 0xc32   : > { %v2738_v44 = vld [vmem:[#allocation2] sm:$0xf]  ;;  %2216 = vst.msk [vmem:[#allocation3 + $0x80] sm:$0xf] %vm941_vm4, %v2214_v40  ;;  %2746 = vrot.lane.b32.xlu1 %v2744_v42, %s5896_s17 }
 0xc33   : > { %2740 = vrot.lane.b32.xlu0 %v2738_v44, %s5874_s3  ;;  %v2756_v18 = vld [vmem:[#allocation2] sm:$0xf]  ;;  %s5936_s3 = sld [smem:[#allocation25_spill]] }
 0xc34   : > { %v2750_v19 = vld [vmem:[#allocation2] sm:$0xf] }
 0xc35   : > { %v2226_v17 = vpop.permute.xlu0 %2225  ;;  %v2328_v20 = vld [vmem:[#allocation3 + $0x78] sm:$0xff]  ;;  %v2768_v39 = vld [vmem:[#allocation2] sm:$0xf] }
 0xc36   : > { %2228 = vst.msk [vmem:[#allocation3 + $0x88] sm:$0xf] %vm941_vm4, %v2226_v17  ;;  %2758 = vrot.lane.b32.xlu1 %v2756_v18, %s5879_s28  ;;  %v2353_v33 = vmul.f32 %v2328_v20, %v2006_v50  ;;  %v2762_v41 = vld [vmem:[#allocation2] sm:$0xf]  ;;  %s3503_s28 = sshll.u32 %s5948_s21, 7 }
 0xc37   : > { %2752 = vrot.lane.b32.xlu0 %v2750_v19, %s5896_s17  ;;  %v2780_v51 = vld [vmem:[#allocation2] sm:$0xf] }
 0xc38   : > { %v3898_v35 = vpack.c.bf16 %v2353_v33, %v2352_v47  ;;  %v2774_v55 = vld [vmem:[#allocation2] sm:$0xf]  ;;  %v2337_v33 = vld [vmem:[#allocation3 + $0xc0] sm:$0xf] }
 0xc39   : > { %v2238_v37 = vpop.permute.xlu0 %2237  ;;  %v2329_v48 = vld [vmem:[#allocation3 + $0x80] sm:$0xff]  ;;  %v2736_v32 = vld [vmem:[#allocation2] sm:$0xf] }
 0xc3a   : > { %2240 = vst.msk [vmem:[#allocation3 + $0x90] sm:$0xf] %vm941_vm4, %v2238_v37  ;;  %2770 = vrot.lane.b32.xlu1 %v2768_v39, %s5878_s26  ;;  %3899 = vmatpush1.bf16.msra.mxu1 %v3898_v35  ;;  %v2354_v12 = vmul.f32 %v2329_v48, %v2007_v43  ;;  %v1990_v18 = vld [vmem:[%s5936_s3] sm:$0xf]  ;;  %v2451_v35 = vld [vmem:[%s5740_s14 + $0x18] sm:$0xff] }
 0xc3b   : > { %2764 = vrot.lane.b32.xlu0 %v2762_v41, %s5878_s26  ;;  %3900 = vmatprep.subr.bf16.mxu1 %v4168_v57  ;;  %v2015_v47 = vld [vmem:[%s5739_s13 + $0xc0] sm:$0xf]  ;;  %s5937_s26 = sld [smem:[#allocation26_spill]] }
 0xc3c   : > { %v2362_v39 = vmul.f32 %v2337_v33, %v2015_v47 }
 0xc3d   : > { %v2250_v49 = vpop.permute.xlu0 %2249  ;;  %v2330_v56 = vld [vmem:[#allocation3 + $0x88] sm:$0xff] }
 0xc3e   : > { %2252 = vst.msk [vmem:[#allocation3 + $0x98] sm:$0xf] %vm941_vm4, %v2250_v49  ;;  %2782 = vrot.lane.b32.xlu1 %v2780_v51, %s5881_s0  ;;  %v2355_v13 = vmul.f32 %v2330_v56, %v2008_v45 }
 0xc3f   : > { %2776 = vrot.lane.b32.xlu0 %v2774_v55, %s5880_s9 }
 0xc40   : > { %v3901_v15 = vpack.c.bf16 %v2355_v13, %v2354_v12 }
 0xc41   : > { %v2262_v16 = vpop.permute.xlu0 %2261  ;;  %v2331_v23 = vld [vmem:[#allocation3 + $0x90] sm:$0xff] }
 0xc42   : > { %2264 = vst.msk [vmem:[#allocation3 + $0xa0] sm:$0xf] %vm941_vm4, %v2262_v16  ;;  %2532 = vrot.lane.b32.xlu1 %v5097_v60, %s5883_s1  ;;  %3902 = vmatpush1.bf16.msra.mxu1 %v3901_v15 }
 0xc43   : > { %2526 = vrot.lane.b32.xlu0 %v5095_v59, %s5901_s24  ;;  %3903 = vmatprep.subr.bf16.mxu1 %v4168_v57  ;;  %v2356_v59 = vmul.f32 %v2331_v23, %v2009_v21  ;;  %s4213_s24 = smov [#allocation4]  }
 0xc45   : > { %v2274_v24 = vpop.permute.xlu0 %2273  ;;  %v2332_v25 = vld [vmem:[#allocation3 + $0x98] sm:$0xff] }
 0xc46   : > { %2276 = vst.msk [vmem:[#allocation3 + $0xa8] sm:$0xf] %vm941_vm4, %v2274_v24  ;;  %2544 = vrot.lane.b32.xlu1 %v5101_v62, %s5885_s27  ;;  %v2357_v60 = vmul.f32 %v2332_v25, %v2010_v22  ;;  %v2011_v62 = vld [vmem:[%s5739_s13 + $0xa0] sm:$0xff]  ;;  %s5939_s27 = sld [smem:[#allocation27_spill]] }
 0xc47   : > { %2538 = vrot.lane.b32.xlu0 %v5099_v61, %s5882_s29  ;;  %v2012_v61 = vld [vmem:[%s5739_s13 + $0xa8] sm:$0xff]  ;;  %s5946_s29 = sld [smem:[#allocation16_spill]] }
 0xc48   : > { %v3904_v26 = vpack.c.bf16 %v2357_v60, %v2356_v59 }
 0xc49   : > { %v2473_v27 = vpop.permute.xlu0 %2472  ;;  %v2333_v28 = vld [vmem:[#allocation3 + $0xa0] sm:$0xff] }
 0xc4a   : > { %2475 = vst.msk [vmem:[#allocation3 + $0x4] sm:$0xf] %vm1485_vm9, %v2473_v27  ;;  %2556 = vrot.lane.b32.xlu1 %v5105_v3, %s5884_s6  ;;  %3905 = vmatpush1.bf16.msra.mxu1 %v3904_v26 }
 0xc4b   : > { %2550 = vrot.lane.b32.xlu0 %v5103_v63, %s5884_s6  ;;  %3906 = vmatprep.subr.bf16.mxu1 %v4168_v57  ;;  %v2358_v63 = vmul.f32 %v2333_v28, %v2011_v62  ;;  %s5935_s6 = smov 113   ;;  %v2452_v28 = vld [vmem:[%s5740_s14 + $0x20] sm:$0xff] }
 0xc4d   : > { %v2485_v29 = vpop.permute.xlu0 %2484  ;;  %v2334_v30 = vld [vmem:[#allocation3 + $0xa8] sm:$0xff] }
 0xc4e   : > { %2487 = vst.msk [vmem:[#allocation3 + $0xc] sm:$0xf] %vm1485_vm9, %v2485_v29  ;;  %2568 = vrot.lane.b32.xlu1 %v5109_v5, %s5887_s30  ;;  %v2359_v3 = vmul.f32 %v2334_v30, %v2012_v61  ;;  %v2449_v5 = vld [vmem:[%s5740_s14 + $0x8] sm:$0xff]  ;;  %s5940_s30 = sld [smem:[#allocation32_spill]] }
 0xc4f   : > { %2562 = vrot.lane.b32.xlu0 %v5107_v4, %s5886_s16  ;;  %v2448_v4 = vld [vmem:[%s5740_s14] sm:$0xff]  ;;  %v2453_v29 = vld [vmem:[%s5740_s14 + $0x28] sm:$0xff] }
 0xc50   : > { %v3907_v31 = vpack.c.bf16 %v2359_v3, %v2358_v63 }
 0xc51   : > { %v2292_v34 = vpop.permute.xlu0 %2291  ;;  %v2614_v36 = vld [vmem:[#allocation3] sm:$0xff] }
 0xc52   : > { %2294 = vst.msk [vmem:[#allocation3 + $0xb4] sm:$0xf] %vm941_vm4, %v2292_v34  ;;  %2580 = vrot.lane.b32.xlu1 %v5113_v6, %s5888_s25  ;;  %3908 = vmatpush1.bf16.msra.mxu1 %v3907_v31 }
 0xc53   : > { %2574 = vrot.lane.b32.xlu0 %v5111_v1, %s5935_s6  ;;  %2737 = vst.msk [vmem:[#allocation3] sm:$0xf] %vm1846_vm13, %v2736_v32  ;;  %3909 = vmatprep.subr.bf16.mxu1 %v4168_v57  ;;  %v2627_v1 = vmul.f32 %v2614_v36, %v2448_v4  ;;  %v2728_v32 = vld [vmem:[%s5741_s15 + $0x20] sm:$0xf]  ;;  %s4095_s6 = sshll.u32 %s4213_s24, 4  ;;  %s4096_s6 = int_to_ptr.vmem [resolvable:$false] %s4095_s6 }
 0xc55   : > { %v2304_v38 = vpop.permute.xlu0 %2303  ;;  %v2615_v40 = vld [vmem:[#allocation3 + $0x8] sm:$0xff] }
 0xc56   : > { %2306 = vst.msk [vmem:[#allocation3 + $0xbc] sm:$0xf] %vm941_vm4, %v2304_v38  ;;  %2592 = vrot.lane.b32.xlu1 %v5117_v2, %s5890_s4  ;;  %v2628_v6 = vmul.f32 %v2615_v40, %v2449_v5  ;;  %v2014_v2 = vld [vmem:[%s5739_s13 + $0xb8] sm:$0xff]  ;;  %v2722_v5 = vld [vmem:[%s5737_s11] sm:$0xf] }
 0xc57   : > { %2586 = vrot.lane.b32.xlu0 %v5115_v7, %s5888_s25  ;;  %v2013_v7 = vld [vmem:[%s5739_s13 + $0xb0] sm:$0xff]  ;;  %s5942_s25 = sld [smem:[#allocation34_spill]] }
 0xc58   : > { %v3913_v42 = vpack.c.bf16 %v2628_v6, %v2627_v1  ;;  %v2454_v1 = vld [vmem:[%s5740_s14 + $0x30] sm:$0xff]  ;;  %v2455_v6 = vld [vmem:[%s5740_s14 + $0x38] sm:$0xff] }
 0xc59   : > { %v2497_v44 = vpop.permute.xlu0 %2496  ;;  %v2335_v50 = vld [vmem:[#allocation3 + $0xb0] sm:$0xff] }
 0xc5a   : > { %2499 = vst.msk [vmem:[#allocation3 + $0x14] sm:$0xf] %vm1485_vm9, %v2497_v44  ;;  %2604 = vrot.lane.b32.xlu1 %v5121_v10, %s5892_s2  ;;  %3914 = vmatpush3.bf16.msra.mxu0 %v3913_v42  ;;  %s5944_s2 = sld [smem:[#allocation36_spill]] }
 0xc5b   : > { %2598 = vrot.lane.b32.xlu0 %v5119_v8, %s5889_s5  ;;  %3915 = vmatprep.subr.bf16.mxu0 %v4168_v57  ;;  %v2360_v8 = vmul.f32 %v2335_v50, %v2013_v7 }
 0xc5d   : > { %v2509_v10 = vpop.permute.xlu0 %2508  ;;  %v2336_v54 = vld [vmem:[#allocation3 + $0xb8] sm:$0xff] }
 0xc5e   : > { %2511 = vst.msk [vmem:[#allocation3 + $0x1c] sm:$0xf] %vm1485_vm9, %v2509_v10  ;;  %2798 = vperm.xlu1 %4086, %v2723_v46   ;;  %v2361_v17 = vmul.f32 %v2336_v54, %v2014_v2 }
 0xc5f   : > { %2610 = vrot.lane.b32.xlu0 %v5123_v11, %s5891_s7  ;;  %v2450_v11 = vld [vmem:[%s5740_s14 + $0x10] sm:$0xff] }
 0xc60   : > { %v3910_v19 = vpack.c.bf16 %v2361_v17, %v2360_v8  ;;  %v2456_v17 = vld [vmem:[%s5740_s14 + $0x40] sm:$0xff]  ;;  %s5945_s5 = smov %s5944_s2 }
 0xc61   : > { %v2521_v20 = vpop.permute.xlu0 %2520  ;;  %v2616_v37 = vld [vmem:[#allocation3 + $0x10] sm:$0xff] }
 0xc62   : > { %2523 = vst.msk [vmem:[#allocation3 + $0x24] sm:$0xf] %vm1485_vm9, %v2521_v20  ;;  %2365 = vperm.xlu1 %4086, %v1990_v18   ;;  %3911 = vmatpush1.bf16.msra.mxu1 %v3910_v19  ;;  %v2629_v43 = vmul.f32 %v2616_v37, %v2450_v11  ;;  %v2457_v18 = vld [vmem:[%s5740_s14 + $0x48] sm:$0xff] }
 0xc63   : > { %2423 = vmatprep.subr.mxu1 %v4155_v0 }
 0xc65   : > { %v2617_v41 = vld [vmem:[#allocation3 + $0x18] sm:$0xff] }
 0xc66   : > { %3485 = vmatpush1.msk.msra.mxu1 %vm810_vm0, %v2362_v39  ;;  %v2630_v45 = vmul.f32 %v2617_v41, %v2451_v35  ;;  %v2458_v41 = vld [vmem:[%s5740_s14 + $0x50] sm:$0xff] }
 0xc67   : > { %2440 = vmatmul.mubr.f32.vlgmr.msra.gmra.mrb[6].mxu1 %v5302_v9  ;;  %3930 = vmatprep.subr.bf16.mxu1 %v4168_v57 }
 0xc68   : > { %v3916_v48 = vpack.c.bf16 %v2630_v45, %v2629_v43  ;;  %3719 = vmatprep.mubr.msk.f32.mxu1 %vm4207_vm6, %v4155_v0  ;;  %v2459_v43 = vld [vmem:[%s5740_s14 + $0x58] sm:$0xff] }
 0xc69   : > { %v2618_v22 = vld [vmem:[#allocation3 + $0x20] sm:$0xff] }
 0xc6a   : > { %3917 = vmatpush3.bf16.msra.mxu0 %v3916_v48 }
 0xc6b   : > { %3918 = vmatprep.subr.bf16.mxu0 %v4168_v57 }
 0xca4   : > { %v2747_v49 = vpop.permute.xlu1 %2746 }
 0xca5   : > { %v2741_v51 = vpop.permute.xlu0 %2740  ;;  %2749 = vst.msk [vmem:[#allocation3 + $0x8] sm:$0xf] %vm1846_vm13, %v2747_v49 }
 0xca6   : > { %2743 = vst.msk [vmem:[#allocation3 + $0x4] sm:$0xf] %vm1846_vm13, %v2741_v51 }
 0xca8   : > { %v2759_v55 = vpop.permute.xlu1 %2758 }
 0xca9   : > { %v2753_v56 = vpop.permute.xlu0 %2752  ;;  %2761 = vst.msk [vmem:[#allocation3 + $0x10] sm:$0xf] %vm1846_vm13, %v2759_v55 }
 0xcaa   : > { %2755 = vst.msk [vmem:[#allocation3 + $0xc] sm:$0xf] %vm1846_vm13, %v2753_v56  ;;  %v2460_v56 = vld [vmem:[%s5740_s14 + $0x60] sm:$0xf] }
 0xcac   : > { %v2771_v9 = vpop.permute.xlu1 %2770 }
 0xcad   : > { %v2765_v12 = vpop.permute.xlu0 %2764  ;;  %2773 = vst.msk [vmem:[#allocation3 + $0x18] sm:$0xf] %vm1846_vm13, %v2771_v9  ;;  %v2786_v13 = vld [vmem:[#allocation3] sm:$0xff] }
 0xcae   : > { %2767 = vst.msk [vmem:[#allocation3 + $0x14] sm:$0xf] %vm1846_vm13, %v2765_v12  ;;  %v2791_v23 = vmul.f32 %v2786_v13, %v4983_v14  ;;  %v2446_v13 = vld [vmem:[%s5937_s26] sm:$0xf]  ;;  %s5943_s26 = sld [smem:[#allocation35_spill]] }
 0xcb0   : > { %v2783_v15 = vpop.permute.xlu1 %2782 }
 0xcb1   : > { %v2777_v16 = vpop.permute.xlu0 %2776  ;;  %v2787_v21 = vld [vmem:[#allocation3 + $0x8] sm:$0xff]  ;;  %2785 = vst.msk [vmem:[#allocation3 + $0x20] sm:$0xf] %vm1846_vm13, %v2783_v15  ;;  %v2878_v15 = vld [vmem:[%s5938_s18] sm:$0xf]  ;;  %s5950_s18 = sld [smem:[#allocation37_spill]] }
 0xcb2   : > { %2779 = vst.msk [vmem:[#allocation3 + $0x1c] sm:$0xf] %vm1846_vm13, %v2777_v16  ;;  %v2792_v24 = vmul.f32 %v2787_v21, %v4988_v58  ;;  %v2447_v16 = vld [vmem:[%s5939_s27] sm:$0xf] }
 0xcb3   : > { %2642 = vperm.xlu0 %4087, %v2447_v16   ;;  %v3208_v16 = vld [vmem:[%s5945_s5 + $0x70] sm:$0xff] }
 0xcb4   : > { %v3931_v25 = vpack.c.bf16 %v2792_v24, %v2791_v23  ;;  %v2533_v59 = vpop.permute.xlu1 %2532 }
 0xcb5   : > { %v2527_v60 = vpop.permute.xlu0 %2526  ;;  %2535 = vst.msk [vmem:[#allocation3 + $0x2c] sm:$0xf] %vm1485_vm9, %v2533_v59  ;;  %v2788_v26 = vld [vmem:[#allocation3 + $0x10] sm:$0xff] }
 0xcb6   : > { %2529 = vst.msk [vmem:[#allocation3 + $0x28] sm:$0xf] %vm1485_vm9, %v2527_v60  ;;  %3932 = vmatpush3.bf16.msra.mxu1 %v3931_v25  ;;  %v2793_v14 = vmul.f32 %v2788_v26, %v4999_v52  ;;  %v2631_v52 = vmul.f32 %v2618_v22, %v2452_v28  ;;  %v2879_v26 = vld [vmem:[%s5940_s30] sm:$0xff]  ;;  %s4097_s30 = scalar_lea.vmem %s4096_s6, 256 }
 0xcb7   : > { %3933 = vmatprep.subr.bf16.mxu1 %v4168_v57  ;;  %s5684_s9 = scalar_lea.hbm %s5950_s18, %s3503_s28 }
 0xcb8   : > { %v2545_v27 = vpop.permute.xlu1 %2544  ;;  %v2790_v34 = vld [vmem:[#allocation3 + $0x20] sm:$0xf] }
 0xcb9   : > { %v2539_v62 = vpop.permute.xlu0 %2538  ;;  %v2789_v61 = vld [vmem:[#allocation3 + $0x18] sm:$0xff]  ;;  %2547 = vst.msk [vmem:[#allocation3 + $0x34] sm:$0xf] %vm1485_vm9, %v2545_v27  ;;  %v2795_v4 = vmul.f32 %v2790_v34, %v2728_v32  ;;  %v3037_v32 = vld [vmem:[%s5942_s25 + $0x18] sm:$0xff] }
 0xcba   : > { %2541 = vst.msk [vmem:[#allocation3 + $0x30] sm:$0xf] %vm1485_vm9, %v2539_v62  ;;  %v2794_v58 = vmul.f32 %v2789_v61, %v5004_v53  ;;  %v3032_v61 = vld [vmem:[%s5941_s10] sm:$0xff] }
 0xcbc   : > { %v3934_v30 = vpack.c.bf16 %v2794_v58, %v2793_v14  ;;  %v2557_v63 = vpop.permute.xlu1 %2556  ;;  %v3033_v14 = vld [vmem:[%s5941_s10 + $0x8] sm:$0xff] }
 0xcbd   : > { %v2551_v3 = vpop.permute.xlu0 %2550  ;;  %v2619_v31 = vld [vmem:[#allocation3 + $0x28] sm:$0xff]  ;;  %2559 = vst.msk [vmem:[#allocation3 + $0x3c] sm:$0xf] %vm1485_vm9, %v2557_v63  ;;  %v3937_v58 = vpack.c.bf16 %v3033_v14, %v3032_v61  ;;  %v3035_v63 = vld [vmem:[%s5942_s25 + $0x8] sm:$0xff]  ;;  %v3214_v14 = vld [vmem:[%s5945_s5 + $0xa0] sm:$0xff] }
 0xcbe   : > { %2553 = vst.msk [vmem:[#allocation3 + $0x38] sm:$0xf] %vm1485_vm9, %v2551_v3  ;;  %3935 = vmatpush3.bf16.msra.mxu1 %v3934_v30  ;;  %v2632_v53 = vmul.f32 %v2619_v31, %v2453_v29  ;;  %v3034_v30 = vld [vmem:[%s5942_s25] sm:$0xff]  ;;  %v3036_v3 = vld [vmem:[%s5942_s25 + $0x10] sm:$0xff] }
 0xcbf   : > { %3717 = vmatprep.subr.mxu1 %v4155_v0  ;;  %v3940_v31 = vpack.c.bf16 %v3035_v63, %v3034_v30  ;;  %v3943_v34 = vpack.c.bf16 %v3037_v32, %v3036_v3  ;;  %v3218_v3 = vld [vmem:[%s5945_s5 + $0xc0] sm:$0xff]  ;;  %v3223_v32 = vld [vmem:[%s5945_s5 + $0xe8] sm:$0xff] }
 0xcc0   : > { %v3919_v36 = vpack.c.bf16 %v2632_v53, %v2631_v52  ;;  %v2569_v38 = vpop.permute.xlu1 %2568 }
 0xcc1   : > { %v2563_v40 = vpop.permute.xlu0 %2562  ;;  %2571 = vst.msk [vmem:[#allocation3 + $0x44] sm:$0xf] %vm1485_vm9, %v2569_v38  ;;  %v2620_v42 = vld [vmem:[#allocation3 + $0x30] sm:$0xff] }
 0xcc2   : > { %2565 = vst.msk [vmem:[#allocation3 + $0x40] sm:$0xf] %vm1485_vm9, %v2563_v40  ;;  %3920 = vmatpush3.bf16.msra.mxu0 %v3919_v36  ;;  %3718 = vmatpush3.msk.msra.mxu1 %vm810_vm0, %v2795_v4  ;;  %v2633_v2 = vmul.f32 %v2620_v42, %v2454_v1  ;;  %v3186_v40 = vld [vmem:[%s5943_s26] sm:$0xff]  ;;  %v3187_v1 = vld [vmem:[%s5943_s26 + $0x8] sm:$0xff] }
 0xcc3   : > { %3720 = vmatmul.mubr.msk.f32.vlgmr.msra.gmra.mrb[8].mxu1 %vm1911_vm14, %v2722_v5  ;;  %3921 = vmatprep.subr.bf16.mxu0 %v4168_v57  ;;  %v3946_v42 = vpack.c.bf16 %v3187_v1, %v3186_v40 }
 0xcc4   : > { %3936 = vmatprep.subr.bf16.mxu1 %v4168_v57  ;;  %3736 = vmatprep.mubr.msk.f32.mxu1 %vm4207_vm6, %v4155_v0  ;;  %v2581_v44 = vpop.permute.xlu1 %2580 }
 0xcc5   : > { %v2575_v46 = vpop.permute.xlu0 %2574  ;;  %v2621_v7 = vld [vmem:[#allocation3 + $0x38] sm:$0xff]  ;;  %2583 = vst.msk [vmem:[#allocation3 + $0x4c] sm:$0xf] %vm1485_vm9, %v2581_v44  ;;  %3938 = vmatpush3.bf16.msra.mxu1 %v3937_v58  ;;  %v3189_v44 = vld [vmem:[%s5943_s26 + $0x18] sm:$0xff]  ;;  %v3216_v58 = vld [vmem:[%s5945_s5 + $0xb0] sm:$0xff] }
 0xcc6   : > { %2577 = vst.msk [vmem:[#allocation3 + $0x48] sm:$0xf] %vm1485_vm9, %v2575_v46  ;;  %v2634_v50 = vmul.f32 %v2621_v7, %v2455_v6  ;;  %3945 = vmatprep.subr.bf16.mxu1 %v4168_v57  ;;  %v3188_v6 = vld [vmem:[%s5943_s26 + $0x10] sm:$0xff]  ;;  %v3190_v7 = vld [vmem:[%s5943_s26 + $0x20] sm:$0xff]  ;;  %v3979_v30 = vpack.c.bf16 %v3216_v58, %v3214_v14 }
 0xcc7   : > { %v3949_v46 = vpack.c.bf16 %v3189_v44, %v3188_v6 }
 0xcc8   : > { %v3922_v10 = vpack.c.bf16 %v2634_v50, %v2633_v2  ;;  %v2593_v54 = vpop.permute.xlu1 %2592  ;;  %v3191_v2 = vld [vmem:[%s5943_s26 + $0x28] sm:$0xff] }
 0xcc9   : > { %v2587_v8 = vpop.permute.xlu0 %2586  ;;  %2595 = vst.msk [vmem:[#allocation3 + $0x54] sm:$0xf] %vm1485_vm9, %v2593_v54  ;;  %v2622_v19 = vld [vmem:[#allocation3 + $0x40] sm:$0xff]  ;;  %v3952_v50 = vpack.c.bf16 %v3191_v2, %v3190_v7 }
 0xcca   : > { %2589 = vst.msk [vmem:[#allocation3 + $0x50] sm:$0xf] %vm1485_vm9, %v2587_v8  ;;  %3923 = vmatpush3.bf16.msra.mxu0 %v3922_v10  ;;  %v2635_v11 = vmul.f32 %v2622_v19, %v2456_v17  ;;  %v3192_v8 = vld [vmem:[%s5943_s26 + $0x30] sm:$0xff]  ;;  %v3193_v17 = vld [vmem:[%s5943_s26 + $0x38] sm:$0xff]  ;;  %v3195_v19 = vld [vmem:[%s5944_s2 + $0x8] sm:$0xff]  ;;  %s755_s2 = sand.u32 1, %s5947_s23  }
 0xccb   : > { %3924 = vmatprep.subr.bf16.mxu0 %v4168_v57  ;;  %s3474_s3 = sshll.u32 %s755_s2, 3  ;;  %s3397_s1 = scalar_lea.sflag [#allocation5], %s755_s2 }
 0xccc   : > { %v2605_v20 = vpop.permute.xlu1 %2604  ;;  %s757_s7 = scalar_lea.vmem [#allocation4], %s3474_s3 }
 0xccd   : > { %v2599_v47 = vpop.permute.xlu0 %2598  ;;  %v2623_v33 = vld [vmem:[#allocation3 + $0x48] sm:$0xff]  ;;  %2607 = vst.msk [vmem:[#allocation3 + $0x5c] sm:$0xf] %vm1485_vm9, %v2605_v20  ;;  %s3411_s8 = sshll.u32 %s757_s7, 4  ;;  %s5686_s8 = int_to_ptr.vmem [resolvable:$true] %s3411_s8 }
 0xcce   : > { %2601 = vst.msk [vmem:[#allocation3 + $0x58] sm:$0xf] %vm1485_vm9, %v2599_v47  ;;  %v2636_v35 = vmul.f32 %v2623_v33, %v2457_v18  ;;  %v3955_v18 = vpack.c.bf16 %v3193_v17, %v3192_v8  ;;  %v3196_v47 = vld [vmem:[%s5945_s5 + $0x10] sm:$0xff]  ;;  %v3199_v33 = vld [vmem:[%s5945_s5 + $0x28] sm:$0xff]  ;;  %s4091_s27 = scalar_lea.vmem %s5686_s8, 128  ;;  %p4098_p0 = scmp.lt.s32.totalorder %s5686_s8, %s4096_s6 }
 0xccf   : > { %p4092_p11 = scmp.ne.s32.totalorder %s5686_s8, %s4091_s27  ;;  %p4099_p1 = scmp.lt.s32.totalorder %s4097_s30, %s4091_s27 }
 0xcd0   : > { %v3925_v37 = vpack.c.bf16 %v2636_v35, %v2635_v11  ;;  %v3201_v11 = vld [vmem:[%s5945_s5 + $0x38] sm:$0xff] }
 0xcd1   : > { %v2611_v39 = vpop.permute.xlu0 %2610  ;;  %v2624_v45 = vld [vmem:[#allocation3 + $0x50] sm:$0xff]  ;;  %p4093_p12 = pnand %p4092_p11, %p4382_p5  ;;  %p4100_p2 = por %p4099_p1, %p4098_p0 }
 0xcd2   : > { %2613 = vst.msk [vmem:[#allocation3 + $0x60] sm:$0xf] %vm1485_vm9, %v2611_v39  ;;  %3926 = vmatpush3.bf16.msra.mxu0 %v3925_v37  ;;  %v2637_v49 = vmul.f32 %v2624_v45, %v2458_v41  ;;  %v3961_v37 = vpack.c.bf16 %v3201_v11, %v3199_v33  ;;  %v3198_v39 = vld [vmem:[%s5945_s5 + $0x20] sm:$0xff]  ;;  %v3200_v41 = vld [vmem:[%s5945_s5 + $0x30] sm:$0xff]  ;;  %v3205_v45 = vld [vmem:[%s5945_s5 + $0x58] sm:$0xff] }
 0xcd3   : > { %3927 = vmatprep.subr.bf16.mxu0 %v4168_v57  ;;  %p4094_p13 = pneg %p4093_p12 }
 0xcd5   : > { %v2625_v48 = vld [vmem:[#allocation3 + $0x58] sm:$0xff]  ;;  %p4101_p3 = pnand %p4100_p2, %p4094_p13 }
 0xcd6   : > { %v2638_v51 = vmul.f32 %v2625_v48, %v2459_v43  ;;  %v3203_v43 = vld [vmem:[%s5945_s5 + $0x48] sm:$0xff]  ;;  %v3963_v48 = vpack.c.bf16 %v3200_v41, %v3198_v39 }
 0xcd8   : > { %v3928_v55 = vpack.c.bf16 %v2638_v51, %v2637_v49  ;;  %v3965_v49 = vpack.c.bf16 %v3205_v45, %v3203_v43  ;;  %v3202_v51 = vld [vmem:[%s5945_s5 + $0x40] sm:$0xff] }
 0xcd9   : > { %v2626_v9 = vld [vmem:[#allocation3 + $0x60] sm:$0xf] }
 0xcda   : > { %3929 = vmatpush3.bf16.msra.mxu0 %v3928_v55  ;;  %v2639_v12 = vmul.f32 %v2626_v9, %v2460_v56  ;;  %v3204_v55 = vld [vmem:[%s5945_s5 + $0x50] sm:$0xff]  ;;  %v3207_v56 = vld [vmem:[%s5945_s5 + $0x68] sm:$0xff]  ;;  %v3209_v9 = vld [vmem:[%s5945_s5 + $0x78] sm:$0xff] }
 0xcdb   : > { %3704 = vmatprep.subr.mxu0 %v4155_v0 }
 0xcdd   : > { %v2799_v23 = vpop.permute.xlu1 %2798 }
 0xcde   : > { %3705 = vmatpush3.msk.msra.mxu0 %vm810_vm0, %v2639_v12  ;;  %v3967_v12 = vpack.c.bf16 %v3204_v55, %v3202_v51 }
 0xcdf   : > { %3707 = vmatmul.mubr.msk.f32.vlgmr.msra.gmra.mrb[6].mxu0 %vm1662_vm10, %v2446_v13  ;;  %3722 = vmatprep.subr.mxu0 %v4155_v0  ;;  %v3969_v13 = vpack.c.bf16 %v3209_v9, %v3207_v56 }
 0xce0   : > { %3724 = vmatprep.mubr.msk.f32.mxu0 %vm4207_vm6, %v4155_v0  ;;  %3723 = vmatpush3.msk.msra.mxu0 %vm810_vm0, %v2878_v15  ;;  %v3206_v15 = vld [vmem:[%s5945_s5 + $0x60] sm:$0xff] }
 0xce1   : > { %3727 = vmatprep.subr.mxu0 %v4155_v0 }
 0xd32   : > { %v2643_v52 = vpop.permute.xlu0 %2642 }
 0xd3a   : > { %v5517_v21 = vpop.f32.mrb[6].mxu1 }
 0xd3b   : > { %v2443_v22 = vpop.f32.mrb[7].mxu1 }
 0xd3c   : > { %v3211_v22 = vld [vmem:[%s5945_s5 + $0x88] sm:$0xff] }
 0xd96   : > { %v2873_v24 = vpop.f32.mrb[8].mxu1 }
 0xd97   : > { %v2874_v25 = vadd.f32 %v2873_v24, %v2799_v23  ;;  %v3721_v59 = vpop.f32.mrb[9].mxu1  ;;  %v3213_v23 = vld [vmem:[%s5945_s5 + $0x98] sm:$0xff]  ;;  %v3971_v24 = vpack.c.bf16 %v3208_v16, %v3206_v15 }
 0xd98   : > { %v3210_v59 = vld [vmem:[%s5945_s5 + $0x80] sm:$0xff] }
 0xd99   : > { %v2877_v60 = vmax.f32 %v2874_v25, 0.0  ;;  %v3973_v25 = vpack.c.bf16 %v3213_v23, %v3211_v22 }
 0xd9b   : > { %3725 = vmatmul.mubr.msk.f32.vlgmr.msra.gmra.mrb[8].mxu0 %vm2880_vm15, %v2877_v60  ;;  %v3212_v60 = vld [vmem:[%s5945_s5 + $0x90] sm:$0xff] }
 0xd9c   : > { %3728 = vmatpush3.msra.mxu0 %v2879_v26  ;;  %3729 = vmatprep.mubr.msk.f32.mxu0 %vm4207_vm6, %v4155_v0  ;;  %v3215_v26 = vld [vmem:[%s5945_s5 + $0xa8] sm:$0xff] }
 0xd9d   : > { %3939 = vmatprep.subr.bf16.mxu0 %v4168_v57 }
 0xdb2   : > { %v2717_v27 = vpop.f32.mrb[6].mxu0 }
 0xdb3   : > { %v3708_v62 = vpop.f32.mrb[7].mxu0  ;;  %v2718_v53 = vadd.f32 %v2717_v27, %v2643_v52  ;;  %v3217_v27 = vld [vmem:[%s5945_s5 + $0xb8] sm:$0xff] }
 0xdb4   : > { %v3975_v62 = vpack.c.bf16 %v3212_v60, %v3210_v59  ;;  %v3977_v61 = vpack.c.bf16 %v3217_v27, %v3215_v26 }
 0xdb5   : > { %v2721_v36 = vmax.f32 %v2718_v53, 0.0 }
 0xe6e   : > { %v2953_v28 = vpop.f32.mrb[8].mxu0 }
 0xe6f   : > { %v3726_v29 = vpop.f32.mrb[9].mxu0  ;;  %3730 = vmatmul.mubr.msk.f32.vlgmr.msra.gmra.mrb[10].mxu0 %vm2957_vm1, %v2953_v28  ;;  %v3219_v28 = vld [vmem:[%s5945_s5 + $0xc8] sm:$0xff] }
 0xe70   : > { %3747 = vmatprep.mubr.msk.f32.mxu0 %vm4207_vm6, %v4155_v0  ;;  %3941 = vmatpush3.bf16.msra.mxu0 %v3940_v31  ;;  %v3221_v29 = vld [vmem:[%s5945_s5 + $0xd8] sm:$0xff]  ;;  %v3220_v31 = vld [vmem:[%s5945_s5 + $0xd0] sm:$0xff] }
 0xe71   : > { %3942 = vmatprep.subr.bf16.mxu0 %v4168_v57  ;;  %v3981_v63 = vpack.c.bf16 %v3221_v29, %v3219_v28  ;;  %v3983_v52 = vpack.c.bf16 %v3220_v31, %v3218_v3 }
 0xe74   : > { %3944 = vmatpush3.bf16.msra.mxu0 %v3943_v34  ;;  %v3225_v34 = vld [vmem:[%s5945_s5 + $0xf8] sm:$0xff] }
 0xe75   : > { %v3985_v53 = vpack.c.bf16 %v3225_v34, %v3223_v32 }
 0xf42   : > { %v3027_v4 = vpop.f32.mrb[10].mxu0 }
 0xf43   : > { %v3031_v5 = vadd.f32 %v3027_v4, %v2721_v36  ;;  %v3731_v38 = vpop.f32.mrb[11].mxu0  ;;  %v3222_v36 = vld [vmem:[%s5945_s5 + $0xe0] sm:$0xff]  ;;  %v3224_v4 = vld [vmem:[%s5945_s5 + $0xf0] sm:$0xff] }
 0xf44   : > { %v2366_v38 = vpop.permute.xlu1 %2365 }
 0xf45   : > { %3737 = vmatmul.mubr.msk.f32.vlgmr.msra.gmra.mrb[10].mxu1 %vm1756_vm11, %v3031_v5  ;;  %v3987_v5 = vpack.c.bf16 %v3224_v4, %v3222_v36  ;;  %v2442_v40 = vadd.f32 %v5517_v21, %v2366_v38  ;;  %v4212_v21 = vmov 839922192  }
 0xf46   : > { %3766 = vmatprep.mubr.msk.f32.mxu1 %vm4207_vm6, %v4155_v0  ;;  %3947 = vmatpush3.bf16.msra.mxu1 %v3946_v42  ;;  %v3387_v17 = vunpack.c.l.s4 %v4212_v21 }
 0xf47   : > { %3948 = vmatprep.subr.bf16.mxu1 %v4168_v57  ;;  %v2445_v1 = vmax.f32 %v2442_v40, 0.0 }
 0xf4a   : > { %3950 = vmatpush3.bf16.msra.mxu1 %v3949_v46  ;;  %v4090_v46 = vld [vmem:[%s5946_s29] sm:$0xff] }
 0xf4b   : > { %3951 = vmatprep.subr.bf16.mxu1 %v4168_v57  ;;  %v3371_v7 = vcombine.high %v4090_v46, %v4090_v46  ;;  %v3373_v2 = vsel %vm810_vm0, %v4090_v46, 0.0 }
 0xf4e   : > { %3953 = vmatpush3.bf16.msra.mxu1 %v3952_v50  ;;  %v3374_v50 = vsel %vm810_vm0, %v3371_v7, 0.0 }
 0xf4f   : > { %3954 = vmatprep.subr.bf16.mxu1 %v4168_v57  ;;  %v3197_v57 = vld [vmem:[%s5945_s5 + $0x18] sm:$0xff] }
 0xf50   : > { %v3957_v20 = vpack.c.bf16 %v3197_v57, %v3195_v19  ;;  %v3388_v19 = vunpack.c.0.s8 %v3387_v17 }
 0xf52   : > { %3956 = vmatpush3.bf16.msra.mxu1 %v3955_v18  ;;  %3958 = vmatprep.subr.bf16.mxu0 %v3957_v20  ;;  %v3389_v18 = vlaneseq }
 0xf54   : > { %v3390_v57 = vshrl.u32 %v3389_v18, 7 }
 0xf56   : > { %v3391_v20 = vsub.s32 %v3388_v19, %v3390_v57 }
0x1018   : > { %v3107_v10 = vpop.f32.mrb[10].mxu1 }
0x1019   : > { %v3738_v54 = vpop.f32.mrb[11].mxu1  ;;  %3748 = vmatmul.mubr.msk.f32.vlgmr.msra.gmra.mrb[12].mxu0 %vm3111_vm2, %v3107_v10  ;;  %v3375_v10 = vadd.f32 %v3374_v50, %v3373_v2 }
0x101a   : > { %3363 = vmatprep.mubr.f32.mxu0 %v4155_v0  ;;  %v3194_v0 = vld [vmem:[%s5945_s5] sm:$0xff] }
0x101b   : > { %v3959_v35 = vpack.c.bf16 %v3196_v47, %v3194_v0  ;;  %3376 = vadd.xlane.f32.xlu1 %v3375_v10 }
0x101d   : > { %3960 = vmatpush1.bf16.msra.mxu0 %v3959_v35 }
0x101e   : > { %3962 = vmatprep.subr.bf16.mxu0 %v3961_v37 }
0x1021   : > { %3964 = vmatpush1.bf16.msra.mxu0 %v3963_v48 }
0x1022   : > { %3966 = vmatprep.subr.bf16.mxu0 %v3965_v49 }
0x1025   : > { %3968 = vmatpush1.bf16.msra.mxu0 %v3967_v12 }
0x1026   : > { %3970 = vmatprep.subr.bf16.mxu0 %v3969_v13 }
0x1029   : > { %3972 = vmatpush1.bf16.msra.mxu0 %v3971_v24 }
0x102a   : > { %3974 = vmatprep.subr.bf16.mxu0 %v3973_v25 }
0x102d   : > { %3976 = vmatpush1.bf16.msra.mxu0 %v3975_v62 }
0x102e   : > { %3978 = vmatprep.subr.bf16.mxu0 %v3977_v61 }
0x1031   : > { %3980 = vmatpush1.bf16.msra.mxu0 %v3979_v30 }
0x1032   : > { %3982 = vmatprep.subr.bf16.mxu0 %v3981_v63 }
0x1035   : > { %3984 = vmatpush1.bf16.msra.mxu0 %v3983_v52 }
0x1036   : > { %3986 = vmatprep.subr.bf16.mxu0 %v3985_v53 }
0x1039   : > { %3988 = vmatpush1.bf16.msra.mxu0 %v3987_v5 }
0x10a8   : > { %v3377_v0 = vpop.xlane.xlu1 %3376 }
0x10a9   : > { %v3379_v47 = vmul.f32 0.00390625, %v3377_v0 }
0x10ab   : > { %v3392_v35 = vrot.slane %v3379_v47, %v3391_v20 }
0x10ec   : > { %v3181_v6 = vpop.f32.mrb[12].mxu0 }
0x10ed   : > { %v3185_v42 = vadd.f32 %v3181_v6, %v2445_v1  ;;  %v3749_v44 = vpop.f32.mrb[13].mxu0 }
0x10ef   : > { %3767 = vmatmul.mubr.msk.f32.vlgmr.msra.gmra.mrb[12].mxu1 %vm1387_vm7, %v3185_v42 }
0x11c2   : > { %v3295_v54 = vpop.f32.mrb[12].mxu1 }
0x11c3   : > { %v3768_v8 = vpop.f32.mrb[13].mxu1  ;;  %3364 = vmatmul.mubr.f32.vlgmr.msra.gmra.mrb[14].mxu0 %v3295_v54 }
0x1296   : > { %v3365_v33 = vpop.f32.mrb[14].mxu0 }
0x1297   : > { %v3367_v11 = vpop.f32.mrb[15].mxu0 }
0x1298   : > { %v3382_v37 = vcombine.low %v3365_v33, %v3367_v11 }
0x129a   : > { %v3384_v39 = vmul.f32 %v4090_v46, %v3382_v37 }
0x129c   : > { %v3394_v41 = vadd.f32 %v3392_v35, %v3384_v39 }
0x129e   : > { %3395 = vst [vmem:[%s757_s7] sm:$0xff] %v3394_v41 }
0x129f   : > { %4104 = shalt.err (!%p4101_p3)
}
0x12a0   : > { %s4105_s29 = scalar_lea.hbm %s5684_s9, 128  ;;  %s4109_s20 = scalar_lea.hbm %s5950_s18, 256 }
0x12a1   : > { %p4106_p4 = scmp.ne.s32.totalorder %s5684_s9, %s4105_s29  ;;  %p4110_p9 = scmp.lt.u32.totalorder %s5684_s9, %s5950_s18 }
0x12a2   : > { %p4111_p10 = scmp.lt.u32.totalorder %s4109_s20, %s4105_s29  ;;  %p4113_p12 = scmp.lt.u32.totalorder %s4105_s29, %s5684_s9 }
0x12a3   : > { %p4107_p7 = pnand %p4106_p4, %p4382_p5 }
0x12a4   : > { %p4112_p11 = por %p4111_p10, %p4110_p9 }
0x12a5   : > { %p4108_p8 = pneg %p4107_p7 }
0x12a6   : > { %p4114_p13 = por %p4113_p12, %p4112_p11 }
0x12a8   : > { %p4115_p0 = pnand %p4114_p13, %p4108_p8 }
0x12aa   : > { %4118 = shalt.err (!%p4115_p0)
}
0x12ab   : > { %3989 = dma.vmem_to_hbm [thread:$0]  (%p4382_p5), %s5686_s8, 128, %s5684_s9, %s3397_s1  }
0x12ac PF: > { %s5951_s21 = sld [smem:[#allocation10_spill]]  ;;  %s5952_s2 = sld [smem:[#allocation7_spill]] }
0x12b2   : > { %p3995_p1 = scmp.ge.s32.totalorder %s5951_s21, 2  ;;  %s3423_s28 = sand.u32 1, %s5952_s2  }
0x12b3   : > { %s3424_s7 = scalar_lea.sflag [#allocation5], %s3423_s28 }
0x12b4   : > { %p3992_p2 = pnand %p3995_p1, %p4386_p6 }
0x12b6   : > { %4136 = dma.done.wait (!%p3992_p2), %s3424_s7, 128  }
0x12b7   : > { %4138 = vsyncadd (!%p3992_p2), %s3424_s7, 4294967168  ;;  %s5954_s30 = sld [smem:[#allocation12_spill]]  ;;  %s5955_s29 = sld [smem:[#allocation8_spill]] }
0x12b8   : > { %s5956_s2 = sld [smem:[#allocation9_spill]]  ;;  %s5957_s6 = sld [smem:[#allocation13_spill]] }
0x12bd   : > { %p35_p3 = scmp.ge.s32.totalorder %s5954_s30, 4  }
0x12bf   :  { %37 = sbr.rel (!%p35_p3) target bundleno = 25 (0x19), region = 155 }
0x12c6   :  { %3429 = vsyncpa [#allocation5], 1 }
0x12c7   :  { %3431 = vsyncpa [#allocation5 + $0x1], 1 }

</bundles_post_ra>
